<compile_context>
chip_gen: v6e
topology: v6e:2x2x1
jax: 0.10.0
libtpu: 0.0.40
codegen_flags: <defaults>
</compile_context>

<pallas_src>
import functools

import jax
import jax.numpy as jnp
import numpy as np
from jax.experimental import pallas as pl
from jax.experimental.pallas import tpu as pltpu


# ----------------------------------------------------------------------------
# Fused Pallas kernel: all temporal blocks + linear head in one pallas_call.
# ----------------------------------------------------------------------------
def _fused_tcn_kernel(*refs, layer_meta, ksize, use_residual, dot_dtype):
    x_ref = refs[0]
    out_ref = refs[-1]
    wrefs = refs[1:-1]

    TB, T, C0 = x_ref.shape                      # per-grid-step batch block
    BT = TB * T
    h = x_ref[...].reshape(BT, C0)               # flat rows: fills MXU M dim

    # Per-row time index inside its own window (for causal masking of rolled taps).
    t_local = jax.lax.broadcasted_iota(jnp.int32, (BT, 1), 0) % T

    def causal_conv(hin, w_ref, b_ref, dilation):
        """conv1d(padding=(K-1)*d) + Chomp1d == causal dilated conv.

        out[t] = sum_j x[t - (K-1-j)*d] @ W_j     (zeros for t-(K-1-j)*d < 0)

        Implemented as K accumulated matmuls.  The shifted copies are made with
        pltpu.roll on the flat (BT, Cin) rows (XLU sublane rotation, free slot);
        wrapped rows (t_local < shift, including cross-batch wrap) are masked to
        zero, which exactly reproduces the causal left-zero-padding.

        hin:   (BT, Cin) f32
        w_ref: (K, Cin, Cout) ref in dot_dtype (tap j <-> shift (K-1-j)*d)
        b_ref: (1, Cout) f32
        """
        h_dot = hin.astype(dot_dtype)
        # Tap j = K-1 has zero shift: plain matmul, no roll / mask.
        acc = jnp.dot(h_dot, w_ref[ksize - 1],
                      preferred_element_type=jnp.float32)
        for j in range(ksize - 1):
            s = (ksize - 1 - j) * dilation
            if s >= T:                           # fully masked -> contributes 0
                continue
            rolled = pltpu.roll(hin, shift=s, axis=0)       # XLU, not vld/vst
            masked = jnp.where(t_local >= s, rolled, 0.0)   # causal zeros
            acc = acc + jnp.dot(masked.astype(dot_dtype), w_ref[j],
                                preferred_element_type=jnp.float32)
        return acc + b_ref[...]

    idx = 0
    for meta in layer_meta:
        w1, b1, w2, b2 = (wrefs[idx], wrefs[idx + 1],
                          wrefs[idx + 2], wrefs[idx + 3])
        idx += 4
        d = meta["dilation"]

        # conv1 -> chomp -> relu -> dropout(identity)
        h1 = jnp.maximum(causal_conv(h, w1, b1, d), 0.0)
        # conv2 -> chomp -> relu -> dropout(identity)
        h2 = jnp.maximum(causal_conv(h1, w2, b2, d), 0.0)

        if use_residual:
            if meta["has_down"]:
                wd, bd = wrefs[idx], wrefs[idx + 1]
                idx += 2
                res = jnp.dot(h.astype(dot_dtype), wd[...],
                              preferred_element_type=jnp.float32) + bd[...]
            else:
                res = h
            h = jnp.maximum(h2 + res, 0.0)       # last_relu
        else:
            h = jnp.maximum(h2, 0.0)             # last_relu

    # Head: Linear(y1[:, :, -1]) — only the last time step of each window.
    lin_w, lin_b = wrefs[idx], wrefs[idx + 1]
    c_last = h.shape[-1]
    last = h.reshape(TB, T, c_last)[:, T - 1, :]             # (TB, C_last)
    out_ref[...] = (jnp.dot(last.astype(dot_dtype), lin_w[...],
                            preferred_element_type=jnp.float32) + lin_b[...])


# ----------------------------------------------------------------------------
# One-time parameter layout preparation (done outside the forward call).
# ----------------------------------------------------------------------------
def prepare_params(params, dot_dtype=jnp.float32):
    """PyTorch-layout params -> kernel-ready layout.

    dot_dtype: dtype of the matmul operands (weights stored in it; activations
    cast at the dot).  Use jnp.bfloat16 on v6e/v7x for MXU-native throughput;
    accumulation stays f32 either way.
    """
    layers = []
    for lp in params["layers"]:
        cout, cin, k = lp["w1"].shape
        entry = dict(
            dilation=int(lp["dilation"]),
            # (Cout, Cin, K) -> (K, Cin, Cout): w[j] is the tap-j (Cin,Cout) matrix.
            w1=jnp.transpose(lp["w1"], (2, 1, 0)).astype(dot_dtype),
            b1=lp["b1"].reshape(1, cout).astype(jnp.float32),
            w2=jnp.transpose(lp["w2"], (2, 1, 0)).astype(dot_dtype),
            b2=lp["b2"].reshape(1, cout).astype(jnp.float32),
        )
        if lp["wd"] is not None:
            entry["wd"] = jnp.transpose(lp["wd"][:, :, 0], (1, 0)).astype(dot_dtype)
            entry["bd"] = lp["bd"].reshape(1, cout).astype(jnp.float32)
        layers.append(entry)
    return dict(
        layers=layers,
        lin_w=jnp.transpose(params["lin_w"], (1, 0)).astype(dot_dtype),  # (C_last,1)
        lin_b=params["lin_b"].reshape(1, 1).astype(jnp.float32),
        dot_dtype=dot_dtype,
    )


# ----------------------------------------------------------------------------
# Forward wrapper
# ----------------------------------------------------------------------------
def eeg_tcn_forward(x_nct, prepped, *, kernel_size, use_residual, block_b=None):
    """Full EEGTCNModelSub.forward. x_nct follows PyTorch NCW (B, 63, T).

    block_b: per-grid-step batch tile.  None -> whole batch in one step (best
    for single-TC v5e/v6e).  Set a multiple of 8 that divides B to split the
    batch across grid steps (megacore / v7x, or large-B pipelining).
    """
    x_btc = jnp.transpose(x_nct, (0, 2, 1)).astype(jnp.float32)  # (B, T, C)
    B, T, C0 = x_btc.shape
    if block_b is None:
        block_b = B
    assert B % block_b == 0, "block_b must divide B"
    grid = (B // block_b,)

    def _const_spec(arr):                    # weights: same block every step
        nd = arr.ndim
        return pl.BlockSpec(arr.shape, lambda b, _nd=nd: (0,) * _nd)

    def _nbytes(a):
        return int(a.size) * a.dtype.itemsize

    operands = [x_btc]
    in_specs = [pl.BlockSpec((block_b, T, C0), lambda b: (b, 0, 0))]
    layer_meta = []
    flops = 0
    bt = B * T
    for lp in prepped["layers"]:
        k, cin, cout = lp["w1"].shape
        flops += 2 * bt * k * cin * cout + 2 * bt * k * cout * cout
        operands += [lp["w1"], lp["b1"], lp["w2"], lp["b2"]]
        in_specs += [_const_spec(lp["w1"]), _const_spec(lp["b1"]),
                     _const_spec(lp["w2"]), _const_spec(lp["b2"])]
        has_down = use_residual and ("wd" in lp)
        if has_down:
            flops += 2 * bt * cin * cout
            operands += [lp["wd"], lp["bd"]]
            in_specs += [_const_spec(lp["wd"]), _const_spec(lp["bd"])]
        layer_meta.append(dict(dilation=int(lp["dilation"]), has_down=has_down))
    operands += [prepped["lin_w"], prepped["lin_b"]]
    in_specs += [_const_spec(prepped["lin_w"]), _const_spec(prepped["lin_b"])]
    flops += 2 * B * int(prepped["lin_w"].shape[0])

    wt_bytes = sum(_nbytes(o) for o in operands[1:])
    bytes_accessed = _nbytes(x_btc) + wt_bytes + B * 4

    # VMEM budget: input block + a few activation-sized temporaries + weights,
    # with headroom; clamped to a range that is safe on v5e/v6e/v7x.
    cmax = max([C0] + [int(lp["w1"].shape[2]) for lp in prepped["layers"]])
    act_bytes = block_b * T * cmax * 4
    vmem_limit = int(min(max(act_bytes * 12 + wt_bytes * 3 + (2 << 20),
                             16 << 20), 32 << 20))

    kernel = functools.partial(
        _fused_tcn_kernel, layer_meta=layer_meta, ksize=kernel_size,
        use_residual=use_residual, dot_dtype=prepped["dot_dtype"])

    return pl.pallas_call(
        kernel,
        grid=grid,
        out_shape=jax.ShapeDtypeStruct((B, 1), jnp.float32),
        in_specs=in_specs,
        out_specs=pl.BlockSpec((block_b, 1), lambda b: (b, 0)),
        compiler_params=pltpu.CompilerParams(
            dimension_semantics=("parallel",),
            vmem_limit_bytes=vmem_limit),
        cost_estimate=pl.CostEstimate(flops=int(flops), transcendentals=0,
                                      bytes_accessed=int(bytes_accessed)),
    )(*operands)


# ----------------------------------------------------------------------------
# Deterministic parameter init (weight_norm folded into effective weights)
# ----------------------------------------------------------------------------
def _weight_norm_init(key, cout, cin, k):
    kv, kg = jax.random.split(key)
    v = 0.01 * jax.random.normal(kv, (cout, cin, k), jnp.float32)
    g = jax.random.uniform(kg, (cout,), jnp.float32, 0.5, 1.5)
    norm = jnp.sqrt(jnp.sum(v * v, axis=(1, 2), keepdims=True)) + 1e-12
    return g[:, None, None] * v / norm           # effective (Cout, Cin, K)


def init_params(key, num_channels, kernel_size, in_first=63):
    layers = []
    for i, cout in enumerate(num_channels):
        cin = in_first if i == 0 else num_channels[i - 1]
        key, k1, k2, k3, k4, k5, k6 = jax.random.split(key, 7)
        lp = dict(
            dilation=2 ** i,
            w1=_weight_norm_init(k1, cout, cin, kernel_size),
            b1=jax.random.uniform(k2, (cout,), jnp.float32, -0.1, 0.1),
            w2=_weight_norm_init(k3, cout, cout, kernel_size),
            b2=jax.random.uniform(k4, (cout,), jnp.float32, -0.1, 0.1),
        )
        if cin != cout:                          # downsample = Conv1d(cin, cout, 1)
            lp["wd"] = 0.01 * jax.random.normal(k5, (cout, cin, 1), jnp.float32)
            lp["bd"] = jax.random.uniform(k6, (cout,), jnp.float32, -0.1, 0.1)
        else:
            lp["wd"] = None
            lp["bd"] = None
        layers.append(lp)
    key, kw, kb = jax.random.split(key, 3)
    c_last = num_channels[-1]
    bound = 1.0 / float(np.sqrt(c_last))
    lin_w = jax.random.uniform(kw, (1, c_last), jnp.float32, -bound, bound)
    lin_b = jax.random.uniform(kb, (1,), jnp.float32, -bound, bound)
    return dict(layers=layers, lin_w=lin_w, lin_b=lin_b)


# ----------------------------------------------------------------------------
# Pure-JAX reference (lax.conv_general_dilated) for correctness checking
# ----------------------------------------------------------------------------
def _conv1d_causal_ref(x_nct, w_oik, b, dilation):
    k = w_oik.shape[-1]
    p = (k - 1) * dilation
    y = jax.lax.conv_general_dilated(
        x_nct, w_oik, window_strides=(1,), padding=[(p, p)],
        rhs_dilation=(dilation,), dimension_numbers=("NCH", "OIH", "NCH"))
    y = y + b[None, :, None]
    return y[:, :, : x_nct.shape[2]]             # Chomp1d(p)


def ref_forward(x_nct, params, *, kernel_size, use_residual):
    del kernel_size
    h = x_nct.astype(jnp.float32)
    for lp in params["layers"]:
        out = jax.nn.relu(_conv1d_causal_ref(h, lp["w1"], lp["b1"], lp["dilation"]))
        out = jax.nn.relu(_conv1d_causal_ref(out, lp["w2"], lp["b2"], lp["dilation"]))
        if use_residual:
            if lp["wd"] is not None:
                res = jax.lax.conv_general_dilated(
                    h, lp["wd"], (1,), "VALID",
                    dimension_numbers=("NCH", "OIH", "NCH")) + lp["bd"][None, :, None]
            else:
                res = h
            h = jax.nn.relu(out + res)
        else:
            h = jax.nn.relu(out)
    last = h[:, :, -1]                           # (B, C_last)
    return last @ params["lin_w"].T + params["lin_b"]


# ----------------------------------------------------------------------------
if __name__ == "__main__":
    key = jax.random.PRNGKey(0)
    kx, kp = jax.random.split(key)

    # EEG has 63 input channels (fixed in the module); small TCN widths,
    # modest sequence.  B*T = 256 so the MXU M dimension is reasonably filled.
    num_channels = [16, 16]
    kernel_size = 3
    use_residual = True
    B, T = 4, 64

    x = jax.random.normal(kx, (B, 63, T), jnp.float32)      # PyTorch NCW input
    params = init_params(kp, num_channels, kernel_size)

    # --- f32 dot operands: exact parity with the lax.conv reference ----------
    prepped_f32 = prepare_params(params, dot_dtype=jnp.float32)
    out = jax.block_until_ready(
        eeg_tcn_forward(x, prepped_f32, kernel_size=kernel_size,
                        use_residual=use_residual))
    assert out.shape == (B, 1)
    ref = ref_forward(x, params, kernel_size=kernel_size,
                      use_residual=use_residual)
    np.testing.assert_allclose(np.asarray(out), np.asarray(ref),
                               rtol=1e-4, atol=1e-4)

    # --- bf16 dot operands (v6e/v7x MXU-native), f32 accumulation ------------
    prepped_bf16 = prepare_params(params, dot_dtype=jnp.bfloat16)
    out_bf16 = jax.block_until_ready(
        eeg_tcn_forward(x, prepped_bf16, kernel_size=kernel_size,
                        use_residual=use_residual))
    np.testing.assert_allclose(np.asarray(out_bf16), np.asarray(ref),
                               rtol=5e-2, atol=5e-2)

    # --- batch-gridded variant (parallel grid over batch, e.g. v7x 2 TCs) ----
    B2 = 16
    x2 = jax.random.normal(jax.random.PRNGKey(1), (B2, 63, T), jnp.float32)
    out2 = jax.block_until_ready(
        eeg_tcn_forward(x2, prepped_f32, kernel_size=kernel_size,
                        use_residual=use_residual, block_b=8))
    ref2 = ref_forward(x2, params, kernel_size=kernel_size,
                       use_residual=use_residual)
    np.testing.assert_allclose(np.asarray(out2), np.asarray(ref2),
                               rtol=1e-4, atol=1e-4)

    print("KERNEL_OK")
</pallas_src>

<mosaic_0001>
module attributes {stable_mosaic.version = 11 : i64} {
  func.func @_fused_tcn_kernel(%arg0: i32, %arg1: memref<4x64x63xf32, #tpu.memory_space<vmem>>, %arg2: memref<3x63x16xf32, #tpu.memory_space<vmem>>, %arg3: memref<1x16xf32, #tpu.memory_space<vmem>>, %arg4: memref<3x16x16xf32, #tpu.memory_space<vmem>>, %arg5: memref<1x16xf32, #tpu.memory_space<vmem>>, %arg6: memref<63x16xf32, #tpu.memory_space<vmem>>, %arg7: memref<1x16xf32, #tpu.memory_space<vmem>>, %arg8: memref<3x16x16xf32, #tpu.memory_space<vmem>>, %arg9: memref<1x16xf32, #tpu.memory_space<vmem>>, %arg10: memref<3x16x16xf32, #tpu.memory_space<vmem>>, %arg11: memref<1x16xf32, #tpu.memory_space<vmem>>, %arg12: memref<16x1xf32, #tpu.memory_space<vmem>>, %arg13: memref<1x1xf32, #tpu.memory_space<vmem>>, %arg14: memref<4x1xf32, #tpu.memory_space<vmem>>) attributes {dimension_semantics = [#tpu.dimension_semantics<parallel>], iteration_bounds = array<i64: 1>, scalar_prefetch = 0 : i64, scratch_operands = 0 : i64, tpu.core_type = #tpu.core_type<tc>, window_params = [{transform_indices = @transform_0, window_bounds = array<i64: 4, 64, 63>}, {pipeline_mode = #tpu.pipeline_mode<synchronous>, transform_indices = @transform_1, window_bounds = array<i64: 3, 63, 16>}, {pipeline_mode = #tpu.pipeline_mode<synchronous>, transform_indices = @transform_2, window_bounds = array<i64: 1, 16>}, {pipeline_mode = #tpu.pipeline_mode<synchronous>, transform_indices = @transform_3, window_bounds = array<i64: 3, 16, 16>}, {pipeline_mode = #tpu.pipeline_mode<synchronous>, transform_indices = @transform_4, window_bounds = array<i64: 1, 16>}, {pipeline_mode = #tpu.pipeline_mode<synchronous>, transform_indices = @transform_5, window_bounds = array<i64: 63, 16>}, {pipeline_mode = #tpu.pipeline_mode<synchronous>, transform_indices = @transform_6, window_bounds = array<i64: 1, 16>}, {pipeline_mode = #tpu.pipeline_mode<synchronous>, transform_indices = @transform_7, window_bounds = array<i64: 3, 16, 16>}, {pipeline_mode = #tpu.pipeline_mode<synchronous>, transform_indices = @transform_8, window_bounds = array<i64: 1, 16>}, {pipeline_mode = #tpu.pipeline_mode<synchronous>, transform_indices = @transform_9, window_bounds = array<i64: 3, 16, 16>}, {pipeline_mode = #tpu.pipeline_mode<synchronous>, transform_indices = @transform_10, window_bounds = array<i64: 1, 16>}, {pipeline_mode = #tpu.pipeline_mode<synchronous>, transform_indices = @transform_11, window_bounds = array<i64: 16, 1>}, {pipeline_mode = #tpu.pipeline_mode<synchronous>, transform_indices = @transform_12, window_bounds = array<i64: 1, 1>}, {transform_indices = @transform_13, window_bounds = array<i64: 4, 1>}]} {
    %c0 = arith.constant 0 : index
    %c0_0 = arith.constant 0 : index
    %c0_1 = arith.constant 0 : index
    %0 = vector.load %arg1[%c0, %c0_0, %c0_1] : memref<4x64x63xf32, #tpu.memory_space<vmem>>, vector<4x64x63xf32>
    %1 = vector.shape_cast %0 : vector<4x64x63xf32> to vector<256x63xf32>
    %2 = tpu.iota {dimensions = array<i32: 0>} : vector<256x1xi32>
    %c64_i32 = arith.constant 64 : i32
    %c0_i32 = arith.constant 0 : i32
    %3 = arith.cmpi eq, %c64_i32, %c0_i32 : i32
    %c1_i32 = arith.constant 1 : i32
    %4 = arith.select %3, %c1_i32, %c64_i32 : i32
    %5 = vector.broadcast %4 : i32 to vector<256x1xi32>
    %6 = arith.remsi %2, %5 : vector<256x1xi32>
    %c0_i32_2 = arith.constant 0 : i32
    %7 = vector.broadcast %c0_i32_2 : i32 to vector<256x1xi32>
    %8 = arith.cmpi ne, %6, %7 : vector<256x1xi32>
    %c0_i32_3 = arith.constant 0 : i32
    %9 = vector.broadcast %c0_i32_3 : i32 to vector<256x1xi32>
    %10 = arith.cmpi slt, %6, %9 : vector<256x1xi32>
    %c0_i32_4 = arith.constant 0 : i32
    %11 = arith.cmpi slt, %4, %c0_i32_4 : i32
    %12 = vector.broadcast %11 : i1 to vector<256x1xi1>
    %13 = vector.broadcast %12 : vector<256x1xi1> to vector<256x1xi1>
    %14 = arith.xori %10, %13 : vector<256x1xi1>
    %15 = arith.andi %14, %8 : vector<256x1xi1>
    %16 = vector.broadcast %4 : i32 to vector<256x1xi32>
    %17 = arith.addi %6, %16 : vector<256x1xi32>
    %18 = arith.select %15, %17, %6 : vector<256x1xi1>, vector<256x1xi32>
    %c2 = arith.constant 2 : index
    %c0_5 = arith.constant 0 : index
    %c0_6 = arith.constant 0 : index
    %19 = vector.load %arg2[%c2, %c0_5, %c0_6] : memref<3x63x16xf32, #tpu.memory_space<vmem>>, vector<1x63x16xf32>
    %20 = vector.shape_cast %19 : vector<1x63x16xf32> to vector<63x16xf32>
    %cst = arith.constant dense<0.000000e+00> : vector<256x16xf32>
    %21 = tpu.matmul %1, %20, %cst {dimension_numbers = #tpu.dot_dimension_numbers<[1], [0], [0], [1], [0, 0, 1, 1], [], []>} : vector<256x63xf32>, vector<63x16xf32>, vector<256x16xf32> -> vector<256x16xf32>
    %c2_i32 = arith.constant 2 : i32
    %22 = tpu.dynamic_rotate %1 by %c2_i32 dim 0 : vector<256x63xf32>, i32 -> vector<256x63xf32>
    %c2_i32_7 = arith.constant 2 : i32
    %23 = vector.broadcast %c2_i32_7 : i32 to vector<256x1xi32>
    %24 = arith.cmpi sge, %18, %23 : vector<256x1xi32>
    %cst_8 = arith.constant 0.000000e+00 : f32
    %25 = vector.shape_cast %24 : vector<256x1xi1> to vector<256x1xi1>
    %26 = vector.broadcast %25 : vector<256x1xi1> to vector<256x63xi1>
    %27 = vector.broadcast %cst_8 : f32 to vector<256x63xf32>
    %28 = arith.select %26, %22, %27 : vector<256x63xi1>, vector<256x63xf32>
    %c0_9 = arith.constant 0 : index
    %c0_10 = arith.constant 0 : index
    %c0_11 = arith.constant 0 : index
    %29 = vector.load %arg2[%c0_9, %c0_10, %c0_11] : memref<3x63x16xf32, #tpu.memory_space<vmem>>, vector<1x63x16xf32>
    %30 = vector.shape_cast %29 : vector<1x63x16xf32> to vector<63x16xf32>
    %cst_12 = arith.constant dense<0.000000e+00> : vector<256x16xf32>
    %31 = tpu.matmul %28, %30, %cst_12 {dimension_numbers = #tpu.dot_dimension_numbers<[1], [0], [0], [1], [0, 0, 1, 1], [], []>} : vector<256x63xf32>, vector<63x16xf32>, vector<256x16xf32> -> vector<256x16xf32>
    %32 = arith.addf %21, %31 : vector<256x16xf32>
    %c1_i32_13 = arith.constant 1 : i32
    %33 = tpu.dynamic_rotate %1 by %c1_i32_13 dim 0 : vector<256x63xf32>, i32 -> vector<256x63xf32>
    %c1_i32_14 = arith.constant 1 : i32
    %34 = vector.broadcast %c1_i32_14 : i32 to vector<256x1xi32>
    %35 = arith.cmpi sge, %18, %34 : vector<256x1xi32>
    %cst_15 = arith.constant 0.000000e+00 : f32
    %36 = vector.shape_cast %35 : vector<256x1xi1> to vector<256x1xi1>
    %37 = vector.broadcast %36 : vector<256x1xi1> to vector<256x63xi1>
    %38 = vector.broadcast %cst_15 : f32 to vector<256x63xf32>
    %39 = arith.select %37, %33, %38 : vector<256x63xi1>, vector<256x63xf32>
    %c1 = arith.constant 1 : index
    %c0_16 = arith.constant 0 : index
    %c0_17 = arith.constant 0 : index
    %40 = vector.load %arg2[%c1, %c0_16, %c0_17] : memref<3x63x16xf32, #tpu.memory_space<vmem>>, vector<1x63x16xf32>
    %41 = vector.shape_cast %40 : vector<1x63x16xf32> to vector<63x16xf32>
    %cst_18 = arith.constant dense<0.000000e+00> : vector<256x16xf32>
    %42 = tpu.matmul %39, %41, %cst_18 {dimension_numbers = #tpu.dot_dimension_numbers<[1], [0], [0], [1], [0, 0, 1, 1], [], []>} : vector<256x63xf32>, vector<63x16xf32>, vector<256x16xf32> -> vector<256x16xf32>
    %43 = arith.addf %32, %42 : vector<256x16xf32>
    %c0_19 = arith.constant 0 : index
    %c0_20 = arith.constant 0 : index
    %44 = vector.load %arg3[%c0_19, %c0_20] : memref<1x16xf32, #tpu.memory_space<vmem>>, vector<1x16xf32>
    %45 = vector.broadcast %44 : vector<1x16xf32> to vector<256x16xf32>
    %46 = arith.addf %43, %45 : vector<256x16xf32>
    %cst_21 = arith.constant 0.000000e+00 : f32
    %47 = vector.broadcast %cst_21 : f32 to vector<256x16xf32>
    %48 = arith.maximumf %46, %47 : vector<256x16xf32>
    %c2_22 = arith.constant 2 : index
    %c0_23 = arith.constant 0 : index
    %c0_24 = arith.constant 0 : index
    %49 = vector.load %arg4[%c2_22, %c0_23, %c0_24] : memref<3x16x16xf32, #tpu.memory_space<vmem>>, vector<1x16x16xf32>
    %50 = vector.shape_cast %49 : vector<1x16x16xf32> to vector<16x16xf32>
    %cst_25 = arith.constant dense<0.000000e+00> : vector<256x16xf32>
    %51 = tpu.matmul %48, %50, %cst_25 {dimension_numbers = #tpu.dot_dimension_numbers<[1], [0], [0], [1], [0, 0, 1, 1], [], []>} : vector<256x16xf32>, vector<16x16xf32>, vector<256x16xf32> -> vector<256x16xf32>
    %c2_i32_26 = arith.constant 2 : i32
    %52 = tpu.dynamic_rotate %48 by %c2_i32_26 dim 0 : vector<256x16xf32>, i32 -> vector<256x16xf32>
    %c2_i32_27 = arith.constant 2 : i32
    %53 = vector.broadcast %c2_i32_27 : i32 to vector<256x1xi32>
    %54 = arith.cmpi sge, %18, %53 : vector<256x1xi32>
    %cst_28 = arith.constant 0.000000e+00 : f32
    %55 = vector.shape_cast %54 : vector<256x1xi1> to vector<256x1xi1>
    %56 = vector.broadcast %55 : vector<256x1xi1> to vector<256x16xi1>
    %57 = vector.broadcast %cst_28 : f32 to vector<256x16xf32>
    %58 = arith.select %56, %52, %57 : vector<256x16xi1>, vector<256x16xf32>
    %c0_29 = arith.constant 0 : index
    %c0_30 = arith.constant 0 : index
    %c0_31 = arith.constant 0 : index
    %59 = vector.load %arg4[%c0_29, %c0_30, %c0_31] : memref<3x16x16xf32, #tpu.memory_space<vmem>>, vector<1x16x16xf32>
    %60 = vector.shape_cast %59 : vector<1x16x16xf32> to vector<16x16xf32>
    %cst_32 = arith.constant dense<0.000000e+00> : vector<256x16xf32>
    %61 = tpu.matmul %58, %60, %cst_32 {dimension_numbers = #tpu.dot_dimension_numbers<[1], [0], [0], [1], [0, 0, 1, 1], [], []>} : vector<256x16xf32>, vector<16x16xf32>, vector<256x16xf32> -> vector<256x16xf32>
    %62 = arith.addf %51, %61 : vector<256x16xf32>
    %c1_i32_33 = arith.constant 1 : i32
    %63 = tpu.dynamic_rotate %48 by %c1_i32_33 dim 0 : vector<256x16xf32>, i32 -> vector<256x16xf32>
    %c1_i32_34 = arith.constant 1 : i32
    %64 = vector.broadcast %c1_i32_34 : i32 to vector<256x1xi32>
    %65 = arith.cmpi sge, %18, %64 : vector<256x1xi32>
    %cst_35 = arith.constant 0.000000e+00 : f32
    %66 = vector.shape_cast %65 : vector<256x1xi1> to vector<256x1xi1>
    %67 = vector.broadcast %66 : vector<256x1xi1> to vector<256x16xi1>
    %68 = vector.broadcast %cst_35 : f32 to vector<256x16xf32>
    %69 = arith.select %67, %63, %68 : vector<256x16xi1>, vector<256x16xf32>
    %c1_36 = arith.constant 1 : index
    %c0_37 = arith.constant 0 : index
    %c0_38 = arith.constant 0 : index
    %70 = vector.load %arg4[%c1_36, %c0_37, %c0_38] : memref<3x16x16xf32, #tpu.memory_space<vmem>>, vector<1x16x16xf32>
    %71 = vector.shape_cast %70 : vector<1x16x16xf32> to vector<16x16xf32>
    %cst_39 = arith.constant dense<0.000000e+00> : vector<256x16xf32>
    %72 = tpu.matmul %69, %71, %cst_39 {dimension_numbers = #tpu.dot_dimension_numbers<[1], [0], [0], [1], [0, 0, 1, 1], [], []>} : vector<256x16xf32>, vector<16x16xf32>, vector<256x16xf32> -> vector<256x16xf32>
    %73 = arith.addf %62, %72 : vector<256x16xf32>
    %c0_40 = arith.constant 0 : index
    %c0_41 = arith.constant 0 : index
    %74 = vector.load %arg5[%c0_40, %c0_41] : memref<1x16xf32, #tpu.memory_space<vmem>>, vector<1x16xf32>
    %75 = vector.broadcast %74 : vector<1x16xf32> to vector<256x16xf32>
    %76 = arith.addf %73, %75 : vector<256x16xf32>
    %cst_42 = arith.constant 0.000000e+00 : f32
    %77 = vector.broadcast %cst_42 : f32 to vector<256x16xf32>
    %78 = arith.maximumf %76, %77 : vector<256x16xf32>
    %c0_43 = arith.constant 0 : index
    %c0_44 = arith.constant 0 : index
    %79 = vector.load %arg6[%c0_43, %c0_44] : memref<63x16xf32, #tpu.memory_space<vmem>>, vector<63x16xf32>
    %cst_45 = arith.constant dense<0.000000e+00> : vector<256x16xf32>
    %80 = tpu.matmul %1, %79, %cst_45 {dimension_numbers = #tpu.dot_dimension_numbers<[1], [0], [0], [1], [0, 0, 1, 1], [], []>} : vector<256x63xf32>, vector<63x16xf32>, vector<256x16xf32> -> vector<256x16xf32>
    %c0_46 = arith.constant 0 : index
    %c0_47 = arith.constant 0 : index
    %81 = vector.load %arg7[%c0_46, %c0_47] : memref<1x16xf32, #tpu.memory_space<vmem>>, vector<1x16xf32>
    %82 = vector.broadcast %81 : vector<1x16xf32> to vector<256x16xf32>
    %83 = arith.addf %80, %82 : vector<256x16xf32>
    %84 = arith.addf %78, %83 : vector<256x16xf32>
    %cst_48 = arith.constant 0.000000e+00 : f32
    %85 = vector.broadcast %cst_48 : f32 to vector<256x16xf32>
    %86 = arith.maximumf %84, %85 : vector<256x16xf32>
    %c2_49 = arith.constant 2 : index
    %c0_50 = arith.constant 0 : index
    %c0_51 = arith.constant 0 : index
    %87 = vector.load %arg8[%c2_49, %c0_50, %c0_51] : memref<3x16x16xf32, #tpu.memory_space<vmem>>, vector<1x16x16xf32>
    %88 = vector.shape_cast %87 : vector<1x16x16xf32> to vector<16x16xf32>
    %cst_52 = arith.constant dense<0.000000e+00> : vector<256x16xf32>
    %89 = tpu.matmul %86, %88, %cst_52 {dimension_numbers = #tpu.dot_dimension_numbers<[1], [0], [0], [1], [0, 0, 1, 1], [], []>} : vector<256x16xf32>, vector<16x16xf32>, vector<256x16xf32> -> vector<256x16xf32>
    %c4_i32 = arith.constant 4 : i32
    %90 = tpu.dynamic_rotate %86 by %c4_i32 dim 0 : vector<256x16xf32>, i32 -> vector<256x16xf32>
    %c4_i32_53 = arith.constant 4 : i32
    %91 = vector.broadcast %c4_i32_53 : i32 to vector<256x1xi32>
    %92 = arith.cmpi sge, %18, %91 : vector<256x1xi32>
    %cst_54 = arith.constant 0.000000e+00 : f32
    %93 = vector.shape_cast %92 : vector<256x1xi1> to vector<256x1xi1>
    %94 = vector.broadcast %93 : vector<256x1xi1> to vector<256x16xi1>
    %95 = vector.broadcast %cst_54 : f32 to vector<256x16xf32>
    %96 = arith.select %94, %90, %95 : vector<256x16xi1>, vector<256x16xf32>
    %c0_55 = arith.constant 0 : index
    %c0_56 = arith.constant 0 : index
    %c0_57 = arith.constant 0 : index
    %97 = vector.load %arg8[%c0_55, %c0_56, %c0_57] : memref<3x16x16xf32, #tpu.memory_space<vmem>>, vector<1x16x16xf32>
    %98 = vector.shape_cast %97 : vector<1x16x16xf32> to vector<16x16xf32>
    %cst_58 = arith.constant dense<0.000000e+00> : vector<256x16xf32>
    %99 = tpu.matmul %96, %98, %cst_58 {dimension_numbers = #tpu.dot_dimension_numbers<[1], [0], [0], [1], [0, 0, 1, 1], [], []>} : vector<256x16xf32>, vector<16x16xf32>, vector<256x16xf32> -> vector<256x16xf32>
    %100 = arith.addf %89, %99 : vector<256x16xf32>
    %c2_i32_59 = arith.constant 2 : i32
    %101 = tpu.dynamic_rotate %86 by %c2_i32_59 dim 0 : vector<256x16xf32>, i32 -> vector<256x16xf32>
    %c2_i32_60 = arith.constant 2 : i32
    %102 = vector.broadcast %c2_i32_60 : i32 to vector<256x1xi32>
    %103 = arith.cmpi sge, %18, %102 : vector<256x1xi32>
    %cst_61 = arith.constant 0.000000e+00 : f32
    %104 = vector.shape_cast %103 : vector<256x1xi1> to vector<256x1xi1>
    %105 = vector.broadcast %104 : vector<256x1xi1> to vector<256x16xi1>
    %106 = vector.broadcast %cst_61 : f32 to vector<256x16xf32>
    %107 = arith.select %105, %101, %106 : vector<256x16xi1>, vector<256x16xf32>
    %c1_62 = arith.constant 1 : index
    %c0_63 = arith.constant 0 : index
    %c0_64 = arith.constant 0 : index
    %108 = vector.load %arg8[%c1_62, %c0_63, %c0_64] : memref<3x16x16xf32, #tpu.memory_space<vmem>>, vector<1x16x16xf32>
    %109 = vector.shape_cast %108 : vector<1x16x16xf32> to vector<16x16xf32>
    %cst_65 = arith.constant dense<0.000000e+00> : vector<256x16xf32>
    %110 = tpu.matmul %107, %109, %cst_65 {dimension_numbers = #tpu.dot_dimension_numbers<[1], [0], [0], [1], [0, 0, 1, 1], [], []>} : vector<256x16xf32>, vector<16x16xf32>, vector<256x16xf32> -> vector<256x16xf32>
    %111 = arith.addf %100, %110 : vector<256x16xf32>
    %c0_66 = arith.constant 0 : index
    %c0_67 = arith.constant 0 : index
    %112 = vector.load %arg9[%c0_66, %c0_67] : memref<1x16xf32, #tpu.memory_space<vmem>>, vector<1x16xf32>
    %113 = vector.broadcast %112 : vector<1x16xf32> to vector<256x16xf32>
    %114 = arith.addf %111, %113 : vector<256x16xf32>
    %cst_68 = arith.constant 0.000000e+00 : f32
    %115 = vector.broadcast %cst_68 : f32 to vector<256x16xf32>
    %116 = arith.maximumf %114, %115 : vector<256x16xf32>
    %c2_69 = arith.constant 2 : index
    %c0_70 = arith.constant 0 : index
    %c0_71 = arith.constant 0 : index
    %117 = vector.load %arg10[%c2_69, %c0_70, %c0_71] : memref<3x16x16xf32, #tpu.memory_space<vmem>>, vector<1x16x16xf32>
    %118 = vector.shape_cast %117 : vector<1x16x16xf32> to vector<16x16xf32>
    %cst_72 = arith.constant dense<0.000000e+00> : vector<256x16xf32>
    %119 = tpu.matmul %116, %118, %cst_72 {dimension_numbers = #tpu.dot_dimension_numbers<[1], [0], [0], [1], [0, 0, 1, 1], [], []>} : vector<256x16xf32>, vector<16x16xf32>, vector<256x16xf32> -> vector<256x16xf32>
    %c4_i32_73 = arith.constant 4 : i32
    %120 = tpu.dynamic_rotate %116 by %c4_i32_73 dim 0 : vector<256x16xf32>, i32 -> vector<256x16xf32>
    %c4_i32_74 = arith.constant 4 : i32
    %121 = vector.broadcast %c4_i32_74 : i32 to vector<256x1xi32>
    %122 = arith.cmpi sge, %18, %121 : vector<256x1xi32>
    %cst_75 = arith.constant 0.000000e+00 : f32
    %123 = vector.shape_cast %122 : vector<256x1xi1> to vector<256x1xi1>
    %124 = vector.broadcast %123 : vector<256x1xi1> to vector<256x16xi1>
    %125 = vector.broadcast %cst_75 : f32 to vector<256x16xf32>
    %126 = arith.select %124, %120, %125 : vector<256x16xi1>, vector<256x16xf32>
    %c0_76 = arith.constant 0 : index
    %c0_77 = arith.constant 0 : index
    %c0_78 = arith.constant 0 : index
    %127 = vector.load %arg10[%c0_76, %c0_77, %c0_78] : memref<3x16x16xf32, #tpu.memory_space<vmem>>, vector<1x16x16xf32>
    %128 = vector.shape_cast %127 : vector<1x16x16xf32> to vector<16x16xf32>
    %cst_79 = arith.constant dense<0.000000e+00> : vector<256x16xf32>
    %129 = tpu.matmul %126, %128, %cst_79 {dimension_numbers = #tpu.dot_dimension_numbers<[1], [0], [0], [1], [0, 0, 1, 1], [], []>} : vector<256x16xf32>, vector<16x16xf32>, vector<256x16xf32> -> vector<256x16xf32>
    %130 = arith.addf %119, %129 : vector<256x16xf32>
    %c2_i32_80 = arith.constant 2 : i32
    %131 = tpu.dynamic_rotate %116 by %c2_i32_80 dim 0 : vector<256x16xf32>, i32 -> vector<256x16xf32>
    %c2_i32_81 = arith.constant 2 : i32
    %132 = vector.broadcast %c2_i32_81 : i32 to vector<256x1xi32>
    %133 = arith.cmpi sge, %18, %132 : vector<256x1xi32>
    %cst_82 = arith.constant 0.000000e+00 : f32
    %134 = vector.shape_cast %133 : vector<256x1xi1> to vector<256x1xi1>
    %135 = vector.broadcast %134 : vector<256x1xi1> to vector<256x16xi1>
    %136 = vector.broadcast %cst_82 : f32 to vector<256x16xf32>
    %137 = arith.select %135, %131, %136 : vector<256x16xi1>, vector<256x16xf32>
    %c1_83 = arith.constant 1 : index
    %c0_84 = arith.constant 0 : index
    %c0_85 = arith.constant 0 : index
    %138 = vector.load %arg10[%c1_83, %c0_84, %c0_85] : memref<3x16x16xf32, #tpu.memory_space<vmem>>, vector<1x16x16xf32>
    %139 = vector.shape_cast %138 : vector<1x16x16xf32> to vector<16x16xf32>
    %cst_86 = arith.constant dense<0.000000e+00> : vector<256x16xf32>
    %140 = tpu.matmul %137, %139, %cst_86 {dimension_numbers = #tpu.dot_dimension_numbers<[1], [0], [0], [1], [0, 0, 1, 1], [], []>} : vector<256x16xf32>, vector<16x16xf32>, vector<256x16xf32> -> vector<256x16xf32>
    %141 = arith.addf %130, %140 : vector<256x16xf32>
    %c0_87 = arith.constant 0 : index
    %c0_88 = arith.constant 0 : index
    %142 = vector.load %arg11[%c0_87, %c0_88] : memref<1x16xf32, #tpu.memory_space<vmem>>, vector<1x16xf32>
    %143 = vector.broadcast %142 : vector<1x16xf32> to vector<256x16xf32>
    %144 = arith.addf %141, %143 : vector<256x16xf32>
    %cst_89 = arith.constant 0.000000e+00 : f32
    %145 = vector.broadcast %cst_89 : f32 to vector<256x16xf32>
    %146 = arith.maximumf %144, %145 : vector<256x16xf32>
    %147 = arith.addf %146, %86 : vector<256x16xf32>
    %cst_90 = arith.constant 0.000000e+00 : f32
    %148 = vector.broadcast %cst_90 : f32 to vector<256x16xf32>
    %149 = arith.maximumf %147, %148 : vector<256x16xf32>
    %150 = vector.shape_cast %149 : vector<256x16xf32> to vector<4x64x16xf32>
    %151 = vector.extract_strided_slice %150 {offsets = [0, 63, 0], sizes = [4, 1, 16], strides = [1, 1, 1]} : vector<4x64x16xf32> to vector<4x1x16xf32>
    %152 = vector.shape_cast %151 : vector<4x1x16xf32> to vector<4x16xf32>
    %c0_91 = arith.constant 0 : index
    %c0_92 = arith.constant 0 : index
    %153 = vector.load %arg12[%c0_91, %c0_92] : memref<16x1xf32, #tpu.memory_space<vmem>>, vector<16x1xf32>
    %cst_93 = arith.constant dense<0.000000e+00> : vector<4x1xf32>
    %154 = tpu.matmul %152, %153, %cst_93 {dimension_numbers = #tpu.dot_dimension_numbers<[1], [0], [0], [1], [0, 0, 1, 1], [], []>} : vector<4x16xf32>, vector<16x1xf32>, vector<4x1xf32> -> vector<4x1xf32>
    %c0_94 = arith.constant 0 : index
    %c0_95 = arith.constant 0 : index
    %155 = vector.load %arg13[%c0_94, %c0_95] : memref<1x1xf32, #tpu.memory_space<vmem>>, vector<1x1xf32>
    %156 = vector.broadcast %155 : vector<1x1xf32> to vector<4x1xf32>
    %157 = arith.addf %154, %156 : vector<4x1xf32>
    %c0_96 = arith.constant 0 : index
    %c0_97 = arith.constant 0 : index
    %158 = vector.load %arg14[%c0_96, %c0_97] : memref<4x1xf32, #tpu.memory_space<vmem>>, vector<4x1xf32>
    tpu.vector_store %arg14[%c0_96, %c0_97], %157 {strides = array<i32>} : memref<4x1xf32, #tpu.memory_space<vmem>>, vector<4x1xf32>,
    return
  }
  func.func @transform_0(%arg0: i32) -> (i32, i32, i32) {
    %c0_i32 = arith.constant 0 : i32
    %c0_i32_0 = arith.constant 0 : i32
    %c0_i32_1 = arith.constant 0 : i32
    return %arg0, %c0_i32, %c0_i32_0 : i32, i32, i32
  }
  func.func @transform_1(%arg0: i32) -> (i32, i32, i32) {
    %c0_i32 = arith.constant 0 : i32
    %c0_i32_0 = arith.constant 0 : i32
    %c0_i32_1 = arith.constant 0 : i32
    %c0_i32_2 = arith.constant 0 : i32
    return %c0_i32, %c0_i32_0, %c0_i32_1 : i32, i32, i32
  }
  func.func @transform_2(%arg0: i32) -> (i32, i32) {
    %c0_i32 = arith.constant 0 : i32
    %c0_i32_0 = arith.constant 0 : i32
    %c0_i32_1 = arith.constant 0 : i32
    return %c0_i32, %c0_i32_0 : i32, i32
  }
  func.func @transform_3(%arg0: i32) -> (i32, i32, i32) {
    %c0_i32 = arith.constant 0 : i32
    %c0_i32_0 = arith.constant 0 : i32
    %c0_i32_1 = arith.constant 0 : i32
    %c0_i32_2 = arith.constant 0 : i32
    return %c0_i32, %c0_i32_0, %c0_i32_1 : i32, i32, i32
  }
  func.func @transform_4(%arg0: i32) -> (i32, i32) {
    %c0_i32 = arith.constant 0 : i32
    %c0_i32_0 = arith.constant 0 : i32
    %c0_i32_1 = arith.constant 0 : i32
    return %c0_i32, %c0_i32_0 : i32, i32
  }
  func.func @transform_5(%arg0: i32) -> (i32, i32) {
    %c0_i32 = arith.constant 0 : i32
    %c0_i32_0 = arith.constant 0 : i32
    %c0_i32_1 = arith.constant 0 : i32
    return %c0_i32, %c0_i32_0 : i32, i32
  }
  func.func @transform_6(%arg0: i32) -> (i32, i32) {
    %c0_i32 = arith.constant 0 : i32
    %c0_i32_0 = arith.constant 0 : i32
    %c0_i32_1 = arith.constant 0 : i32
    return %c0_i32, %c0_i32_0 : i32, i32
  }
  func.func @transform_7(%arg0: i32) -> (i32, i32, i32) {
    %c0_i32 = arith.constant 0 : i32
    %c0_i32_0 = arith.constant 0 : i32
    %c0_i32_1 = arith.constant 0 : i32
    %c0_i32_2 = arith.constant 0 : i32
    return %c0_i32, %c0_i32_0, %c0_i32_1 : i32, i32, i32
  }
  func.func @transform_8(%arg0: i32) -> (i32, i32) {
    %c0_i32 = arith.constant 0 : i32
    %c0_i32_0 = arith.constant 0 : i32
    %c0_i32_1 = arith.constant 0 : i32
    return %c0_i32, %c0_i32_0 : i32, i32
  }
  func.func @transform_9(%arg0: i32) -> (i32, i32, i32) {
    %c0_i32 = arith.constant 0 : i32
    %c0_i32_0 = arith.constant 0 : i32
    %c0_i32_1 = arith.constant 0 : i32
    %c0_i32_2 = arith.constant 0 : i32
    return %c0_i32, %c0_i32_0, %c0_i32_1 : i32, i32, i32
  }
  func.func @transform_10(%arg0: i32) -> (i32, i32) {
    %c0_i32 = arith.constant 0 : i32
    %c0_i32_0 = arith.constant 0 : i32
    %c0_i32_1 = arith.constant 0 : i32
    return %c0_i32, %c0_i32_0 : i32, i32
  }
  func.func @transform_11(%arg0: i32) -> (i32, i32) {
    %c0_i32 = arith.constant 0 : i32
    %c0_i32_0 = arith.constant 0 : i32
    %c0_i32_1 = arith.constant 0 : i32
    return %c0_i32, %c0_i32_0 : i32, i32
  }
  func.func @transform_12(%arg0: i32) -> (i32, i32) {
    %c0_i32 = arith.constant 0 : i32
    %c0_i32_0 = arith.constant 0 : i32
    %c0_i32_1 = arith.constant 0 : i32
    return %c0_i32, %c0_i32_0 : i32, i32
  }
  func.func @transform_13(%arg0: i32) -> (i32, i32) {
    %c0_i32 = arith.constant 0 : i32
    %c0_i32_0 = arith.constant 0 : i32
    return %arg0, %c0_i32 : i32, i32
  }
}

</mosaic_0001>

<bundles_post_ra>
// kernel: tpu_custom_call.1
= control target key start
LH: loop header
LB: loop body
LE: loop exit
PB: predicated region body
PF: predicated region fallthrough
CT: control target
= control target key end

     0   :  { %vm802_vm0 = vcmask 1046528   ;;  %v78_v0 = vlaneseq  ;;  %vm705_vm3 = vcmask 515072   ;;  %vm2085_vm12 = vcmask 130048   ;;  %s10915_s1 = inlined_call_operand.vmem [shape: f32[3,63,16], index: 1, kind: input, shape index: {}]   ;;  %s10916_s0 = inlined_call_operand.vmem [shape: f32[4,64,63], index: 0, kind: input, shape index: {}]   ;;  %s10917_s3 = inlined_call_operand.vmem [shape: f32[3,16,16], index: 3, kind: input, shape index: {}]   ;;  %s10918_s5 = inlined_call_operand.vmem [shape: f32[63,16], index: 5, kind: input, shape index: {}]   ;;  %s10919_s2 = inlined_call_operand.vmem [shape: f32[1,16], index: 2, kind: input, shape index: {}]   ;;  %s10920_s7 = inlined_call_operand.vmem [shape: f32[3,16,16], index: 7, kind: input, shape index: {}]   ;;  %s10921_s4 = inlined_call_operand.vmem [shape: f32[1,16], index: 4, kind: input, shape index: {}]   ;;  %s10922_s6 = inlined_call_operand.vmem [shape: f32[1,16], index: 6, kind: input, shape index: {}]   ;;  %s10923_s9 = inlined_call_operand.vmem [shape: f32[3,16,16], index: 9, kind: input, shape index: {}]   ;;  %s10924_s8 = inlined_call_operand.vmem [shape: f32[1,16], index: 8, kind: input, shape index: {}]   ;;  %s10925_s11 = inlined_call_operand.vmem [shape: f32[16,1], index: 11, kind: input, shape index: {}]   ;;  %s10926_s12 = inlined_call_operand.<no memory space> [shape: f32[1,1], index: 12, kind: input, shape index: {}]   ;;  %s10927_s10 = inlined_call_operand.vmem [shape: f32[1,16], index: 10, kind: input, shape index: {}]   ;;  %s10928_s13 = inlined_call_operand.vmem [shape: f32[4,1], index: 13, kind: output, shape index: {}]  }
   0x1   :  { %v704_v1 = vld [vmem:[%s10915_s1 + $0x38] sm:$0x7f]  ;;  %v703_v2 = vld [vmem:[%s10915_s1 + $0x30] sm:$0xff]  ;;  %v702_v3 = vld [vmem:[%s10915_s1 + $0x28] sm:$0xff] }
   0x2   :  { %7052 = vmatprep.subr.msk.mxu0 %vm802_vm0, %v704_v1  ;;  %7783 = vmatprep.subr.msk.mxu1 %vm802_vm0, %v704_v1  ;;  %v7918_v4 = vshrl.u32 %v78_v0, 7  ;;  %v701_v5 = vld [vmem:[%s10915_s1 + $0x20] sm:$0xff]  ;;  %v7931_v7 = vld [vmem:[%s10916_s0 + $0xf8] sm:$0xff]  ;;  %v7944_v12 = vld [vmem:[%s10916_s0 + $0x88] sm:$0xff] }
   0x3   :  { %7053 = vmatpush3.msk.msra.mxu0 %vm802_vm0, %v704_v1  ;;  %7791 = vmatpush3.msk.msra.mxu1 %vm802_vm0, %v704_v1  ;;  %v7926_v6 = vld [vmem:[%s10916_s0] sm:$0xff]  ;;  %v700_v8 = vld [vmem:[%s10915_s1 + $0x18] sm:$0xff]  ;;  %v535_v11 = vrot.slane %v7931_v7, 6  ;;  %v7949_v13 = vld [vmem:[%s10916_s0 + $0x90] sm:$0xff]  ;;  %v521_v19 = vrot.slane %v7944_v12, 6 }
   0x4   :  { %7054 = vmatprep.subr.mxu0 %v703_v2  ;;  %7784 = vmatprep.subr.mxu1 %v703_v2  ;;  %v7937_v9 = vand.u32 63, %v7918_v4  ;;  %v504_v10 = vrot.slane %v7926_v6, 6  ;;  %v699_v14 = vld [vmem:[%s10915_s1 + $0x10] sm:$0xff]  ;;  %vm536_vm1 = vcmp.lt.s32.totalorder %v7918_v4, 2  ;;  %v7958_v15 = vld [vmem:[%s10916_s0 + $0x8] sm:$0xff]  ;;  %v7963_v16 = vld [vmem:[%s10916_s0 + $0x98] sm:$0xff] }
   0x5   :  { %7055 = vmatpush3.msra.mxu0 %v703_v2  ;;  %7792 = vmatpush3.msra.mxu1 %v703_v2  ;;  %v7968_v17 = vld [vmem:[%s10916_s0 + $0x10] sm:$0xff]  ;;  %v698_v18 = vld [vmem:[%s10915_s1 + $0x8] sm:$0xff]  ;;  %v522_v20 = vrot.slane %v7949_v13, 6  ;;  %v7978_v21 = vld [vmem:[%s10916_s0 + $0xa0] sm:$0xff]  ;;  %v505_v23 = vrot.slane %v7958_v15, 6  ;;  %v523_v24 = vrot.slane %v7963_v16, 6 }
   0x6   :  { %7056 = vmatprep.subr.mxu0 %v702_v3  ;;  %7785 = vmatprep.subr.mxu1 %v702_v3  ;;  %10957 = vst [vmem:[#allocation3_spill] sm:$0xff] %v7937_v9  ;;  %v568_v22 = vsel %vm536_vm1, %v535_v11, %v504_v10  ;;  %vm569_vm2 = vcmp.ge.s32.totalorder %v7937_v9, 2  ;;  %v697_v25 = vld [vmem:[%s10915_s1] sm:$0xff]  ;;  %v506_v26 = vrot.slane %v7968_v17, 6  ;;  %v7994_v27 = vld [vmem:[%s10916_s0 + $0x18] sm:$0xff]  ;;  %v7999_v28 = vld [vmem:[%s10916_s0 + $0xa8] sm:$0xff] }
   0x7   :  { %7057 = vmatpush3.msra.mxu0 %v702_v3  ;;  %7793 = vmatpush3.msra.mxu1 %v702_v3  ;;  %v524_v29 = vrot.slane %v7978_v21, 6  ;;  %v8005_v30 = vld [vmem:[%s10916_s0 + $0x20] sm:$0xff]  ;;  %v665_v31 = vsel %vm569_vm2, %v568_v22, 0.0  ;;  %v550_v32 = vsel %vm536_vm1, %v521_v19, %v522_v20  ;;  %v8016_v33 = vld [vmem:[%s10916_s0 + $0xb0] sm:$0xff]  ;;  %v103_v34 = vadd.s32 192, %v7918_v4  ;;  %v8039_v43 = vld [vmem:[%s10916_s0 + $0x28] sm:$0xff] }
   0x8   :  { %7058 = vmatprep.subr.mxu0 %v701_v5  ;;  %7786 = vmatprep.subr.mxu1 %v701_v5  ;;  %v567_v35 = vsel %vm536_vm1, %v504_v10, %v505_v23  ;;  %v549_v36 = vsel %vm536_vm1, %v522_v20, %v523_v24  ;;  %v507_v37 = vrot.slane %v7994_v27, 6  ;;  %v525_v38 = vrot.slane %v7999_v28, 6  ;;  %v8028_v39 = vld [vmem:[%s10916_s0 + $0xc0] sm:$0xff]  ;;  %v6209_v40 = vld [vmem:[%s10915_s1 + $0x78] sm:$0x7f]  ;;  %v8054_v47 = vld [vmem:[%s10916_s0 + $0x30] sm:$0xff] }
   0x9   :  { %7059 = vmatpush3.msra.mxu0 %v701_v5  ;;  %7794 = vmatpush3.msra.mxu1 %v701_v5  ;;  %v566_v41 = vsel %vm536_vm1, %v505_v23, %v506_v26  ;;  %v508_v42 = vrot.slane %v8005_v30, 6  ;;  %v8044_v44 = vld [vmem:[%s10916_s0 + $0xb8] sm:$0xff]  ;;  %v548_v45 = vsel %vm536_vm1, %v523_v24, %v524_v29  ;;  %v526_v46 = vrot.slane %v8016_v33, 6  ;;  %v6208_v49 = vld [vmem:[%s10915_s1 + $0x70] sm:$0xff]  ;;  %v8071_v53 = vld [vmem:[%s10916_s0 + $0x40] sm:$0xff] }
   0xa   :  { %7060 = vmatprep.subr.mxu0 %v700_v8  ;;  %7787 = vmatprep.subr.mxu1 %v700_v8  ;;  %v87_v48 = vadd.s32 64, %v7918_v4  ;;  %v6135_v50 = vld [vmem:[%s10915_s1 + $0xb8] sm:$0x7f]  ;;  %v8065_v51 = vand.u32 63, %v103_v34  ;;  %v528_v52 = vrot.slane %v8028_v39, 6  ;;  %v565_v54 = vsel %vm536_vm1, %v506_v26, %v507_v37  ;;  %v8094_v61 = vld [vmem:[%s10916_s0 + $0xc8] sm:$0xff] }
   0xb   :  { %7061 = vmatpush3.msra.mxu0 %v700_v8  ;;  %7795 = vmatpush3.msra.mxu1 %v700_v8  ;;  %v547_v55 = vsel %vm536_vm1, %v524_v29, %v525_v38  ;;  %v509_v56 = vrot.slane %v8039_v43, 6  ;;  %v527_v57 = vrot.slane %v8044_v44, 6  ;;  %v564_v58 = vsel %vm536_vm1, %v507_v37, %v508_v42  ;;  %v8089_v60 = vld [vmem:[%s10916_s0 + $0x38] sm:$0xff]  ;;  %v6207_v1 = vld [vmem:[%s10915_s1 + $0x68] sm:$0xff]  ;;  %v6134_v2 = vld [vmem:[%s10915_s1 + $0xb0] sm:$0xff] }
   0xc   :  { %7062 = vmatprep.subr.mxu0 %v699_v14  ;;  %7788 = vmatprep.subr.mxu1 %v699_v14  ;;  %10958 = vst [vmem:[#allocation4_spill] sm:$0xff] %v8065_v51  ;;  %v510_v59 = vrot.slane %v8054_v47, 6  ;;  %v546_v62 = vsel %vm536_vm1, %v525_v38, %v526_v46  ;;  %v8099_v63 = vand.u32 63, %v87_v48  ;;  %v512_v0 = vrot.slane %v8071_v53, 6  ;;  %v8116_v5 = vld [vmem:[%s10916_s0 + $0xd0] sm:$0xff]  ;;  %v8132_v22 = vld [vmem:[%s10916_s0 + $0x48] sm:$0xff] }
   0xd   :  { %7063 = vmatpush3.msra.mxu0 %v699_v14  ;;  %7796 = vmatpush3.msra.mxu1 %v699_v14  ;;  %v544_v3 = vsel %vm536_vm1, %v527_v57, %v528_v52  ;;  %vm593_vm4 = vcmp.ge.s32.totalorder %v8065_v51, 2  ;;  %v563_v8 = vsel %vm536_vm1, %v508_v42, %v509_v56  ;;  %v545_v10 = vsel %vm536_vm1, %v526_v46, %v527_v57  ;;  %v8137_v23 = vld [vmem:[%s10916_s0 + $0xd8] sm:$0xff]  ;;  %v8148_v29 = vld [vmem:[%s10916_s0 + $0x50] sm:$0xff]  ;;  %v8161_v34 = vld [vmem:[%s10916_s0 + $0xe0] sm:$0xff] }
   0xe   :  { %7064 = vmatprep.subr.mxu0 %v698_v18  ;;  %7789 = vmatprep.subr.mxu1 %v698_v18  ;;  %10959 = vst [vmem:[#allocation5_spill] sm:$0xff] %v8099_v63  ;;  %v511_v14 = vrot.slane %v8089_v60, 6  ;;  %v562_v20 = vsel %vm536_vm1, %v509_v56, %v510_v59  ;;  %v689_v24 = vsel %vm593_vm4, %v544_v3, 0.0  ;;  %vm577_vm5 = vcmp.ge.s32.totalorder %v8099_v63, 2  ;;  %v8177_v42 = vld [vmem:[%s10916_s0 + $0x58] sm:$0xff]  ;;  %v8227_v3 = vld [vmem:[%s10916_s0 + $0x70] sm:$0xff] }
   0xf   :  { %7065 = vmatpush3.msra.mxu0 %v698_v18  ;;  %7797 = vmatpush3.msra.mxu1 %v698_v18  ;;  %v529_v18 = vrot.slane %v8094_v61, 6  ;;  %v530_v26 = vrot.slane %v8116_v5, 6  ;;  %v513_v37 = vrot.slane %v8132_v22, 6  ;;  %v531_v38 = vrot.slane %v8137_v23, 6 }
  0x10   :  { %7066 = vmatprep.subr.mxu0 %v697_v25  ;;  %7790 = vmatprep.subr.mxu1 %v697_v25  ;;  %v532_v48 = vrot.slane %v8161_v34, 6  ;;  %v515_v57 = vrot.slane %v8177_v42, 6  ;;  %vm1387_vm7 = vcmp.lt.s32.totalorder %v7918_v4, 1  ;;  %vm1420_vm8 = vcmp.ge.s32.totalorder %v7937_v9, 1 }
  0x11   :  { %7067 = vmatpush3.msra.mxu0 %v697_v25  ;;  %7798 = vmatpush3.msra.mxu1 %v697_v25  ;;  %v560_v25 = vsel %vm536_vm1, %v511_v14, %v512_v0  ;;  %v542_v46 = vsel %vm536_vm1, %v529_v18, %v530_v26  ;;  %v541_v56 = vsel %vm536_vm1, %v530_v26, %v531_v38  ;;  %vm1428_vm9 = vcmp.ge.s32.totalorder %v8099_v63, 1 }
  0x12   :  { %7068 = vmatprep.mubr.msk.f32.mxu0 %vm705_vm3, %v665_v31  ;;  %7095 = vmatprep.mubr.msk.f32.mxu1 %vm705_vm3, %v550_v32  ;;  %v6133_v31 = vld [vmem:[%s10915_s1 + $0xa8] sm:$0xff]  ;;  %v6206_v32 = vld [vmem:[%s10915_s1 + $0x60] sm:$0xff]  ;;  %vm1444_vm11 = vcmp.ge.s32.totalorder %v8065_v51, 1  ;;  %vm3593_vm13 = vcmp.lt.s32.totalorder %v7918_v4, 4 }
  0x13   :  { %7069 = vmatmul.mubr.msk.f32.vlgmr.msra.gmra.mxu0 %vm705_vm3, %v567_v35  ;;  %7096 = vmatmul.mubr.msk.f32.vlgmr.msra.gmra.mxu1 %vm705_vm3, %v549_v36  ;;  %v561_v35 = vsel %vm536_vm1, %v510_v59, %v511_v14  ;;  %v543_v36 = vsel %vm536_vm1, %v528_v52, %v529_v18  ;;  %v6205_v52 = vld [vmem:[%s10915_s1 + $0x58] sm:$0xff]  ;;  %v95_v14 = vadd.s32 128, %v7918_v4 }
  0x14   :  { %7180 = vmatprep.subr.msk.mxu0 %vm802_vm0, %v6209_v40  ;;  %7071 = vmatprep.mubr.msk.f32.mxu0 %vm705_vm3, %v566_v41  ;;  %v514_v41 = vrot.slane %v8148_v29, 6 }
  0x15   :  { %7181 = vmatpush3.msk.msra.mxu0 %vm802_vm0, %v6209_v40  ;;  %7098 = vmatprep.mubr.msk.f32.mxu1 %vm705_vm3, %v548_v45  ;;  %v673_v40 = vsel %vm577_vm5, %v560_v25, 0.0  ;;  %v8182_v45 = vld [vmem:[%s10916_s0 + $0xe8] sm:$0xff]  ;;  %v8247_v25 = vld [vmem:[%s10916_s0 + $0x80] sm:$0xff] }
  0x16   :  { %7182 = vmatprep.subr.mxu0 %v6208_v49  ;;  %7116 = vmatprep.subr.msk.mxu1 %vm802_vm0, %v6135_v50  ;;  %v558_v59 = vsel %vm536_vm1, %v513_v37, %v514_v41  ;;  %v557_v18 = vsel %vm536_vm1, %v514_v41, %v515_v57 }
  0x17   :  { %7072 = vmatmul.mubr.msk.f32.gmra.mxu0 %vm705_vm3, %v565_v54  ;;  %7099 = vmatmul.mubr.msk.f32.gmra.mxu1 %vm705_vm3, %v547_v55  ;;  %v8203_v54 = vld [vmem:[%s10916_s0 + $0xf0] sm:$0xff]  ;;  %v559_v55 = vsel %vm536_vm1, %v512_v0, %v513_v37  ;;  %v540_v0 = vsel %vm536_vm1, %v531_v38, %v532_v48  ;;  %v8265_v37 = vand.u32 63, %v95_v14  ;;  %v520_v38 = vrot.slane %v8247_v25, 6 }
  0x18   :  { %7183 = vmatpush3.msra.mxu0 %v6208_v49  ;;  %7074 = vmatprep.mubr.msk.f32.mxu0 %vm705_vm3, %v564_v58  ;;  %v8190_v49 = vld [vmem:[%s10916_s0 + $0x60] sm:$0xff]  ;;  %v533_v58 = vrot.slane %v8182_v45, 6  ;;  %v1359_v14 = vrot.slane %v8005_v30, 7 }
  0x19   :  { %7101 = vmatprep.mubr.msk.f32.mxu1 %vm705_vm3, %v546_v62  ;;  %7117 = vmatpush3.msk.msra.mxu1 %vm802_vm0, %v6135_v50  ;;  %v6132_v50 = vld [vmem:[%s10915_s1 + $0xa0] sm:$0xff]  ;;  %v516_v62 = vrot.slane %v8190_v49, 6  ;;  %10960 = vst [vmem:[#allocation6_spill] sm:$0xff] %v8265_v37  ;;  %vm585_vm6 = vcmp.ge.s32.totalorder %v8265_v37, 2  ;;  %vm1436_vm10 = vcmp.ge.s32.totalorder %v8265_v37, 1 }
  0x1a   :  { %7184 = vmatprep.subr.mxu0 %v6207_v1  ;;  %7118 = vmatprep.subr.mxu1 %v6134_v2 }
  0x1b   :  { %7075 = vmatmul.mubr.msk.f32.gmra.mxu0 %vm705_vm3, %v563_v8  ;;  %7102 = vmatmul.mubr.msk.f32.gmra.mxu1 %vm705_vm3, %v545_v10  ;;  %v6131_v8 = vld [vmem:[%s10915_s1 + $0x98] sm:$0xff]  ;;  %v6204_v10 = vld [vmem:[%s10915_s1 + $0x50] sm:$0xff]  ;;  %v556_v26 = vsel %vm536_vm1, %v515_v57, %v516_v62  ;;  %v1386_v57 = vrot.slane %v7931_v7, 7 }
  0x1c   :  { %7185 = vmatpush3.msra.mxu0 %v6207_v1  ;;  %7077 = vmatprep.mubr.msk.f32.mxu0 %vm705_vm3, %v562_v20  ;;  %v8219_v1 = vld [vmem:[%s10916_s0 + $0x68] sm:$0xff]  ;;  %v539_v20 = vsel %vm536_vm1, %v532_v48, %v533_v58 }
  0x1d   :  { %7104 = vmatprep.mubr.msk.f32.mxu1 %vm705_vm3, %v689_v24  ;;  %7119 = vmatpush3.msra.mxu1 %v6134_v2  ;;  %v534_v2 = vrot.slane %v8203_v54, 6  ;;  %v517_v24 = vrot.slane %v8219_v1, 6  ;;  %v6129_v48 = vld [vmem:[%s10915_s1 + $0x88] sm:$0xff] }
  0x1e   :  { %7120 = vmatprep.subr.mxu1 %v6133_v31  ;;  %7186 = vmatprep.subr.mxu0 %v6206_v32 }
  0x1f   :  { %7078 = vmatmul.mubr.msk.f32.gmra.mxu0 %vm705_vm3, %v561_v35  ;;  %7105 = vmatmul.mubr.msk.f32.gmra.mxu1 %vm705_vm3, %v543_v36  ;;  %v6130_v35 = vld [vmem:[%s10915_s1 + $0x90] sm:$0xff]  ;;  %v538_v36 = vsel %vm536_vm1, %v533_v58, %v534_v2  ;;  %v537_v41 = vsel %vm536_vm1, %v534_v2, %v535_v11  ;;  %v6128_v11 = vld [vmem:[%s10915_s1 + $0x80] sm:$0xff]  ;;  %v1356_v2 = vrot.slane %v7958_v15, 7 }
  0x20   :  { %7121 = vmatpush3.msra.mxu1 %v6133_v31  ;;  %7080 = vmatprep.mubr.msk.f32.mxu0 %vm705_vm3, %v673_v40  ;;  %v518_v31 = vrot.slane %v8227_v3, 6  ;;  %v555_v40 = vsel %vm536_vm1, %v516_v62, %v517_v24  ;;  %v6202_v62 = vld [vmem:[%s10915_s1 + $0x40] sm:$0xff] }
  0x21   :  { %7107 = vmatprep.mubr.msk.f32.mxu1 %vm705_vm3, %v542_v46  ;;  %7187 = vmatpush3.msra.mxu0 %v6206_v32  ;;  %v8256_v32 = vld [vmem:[%s10916_s0 + $0x78] sm:$0xff] }
  0x22   :  { %7122 = vmatprep.subr.mxu1 %v6132_v50  ;;  %7188 = vmatprep.subr.mxu0 %v6205_v52  ;;  %v519_v46 = vrot.slane %v8256_v32, 6 }
  0x23   :  { %7081 = vmatmul.mubr.msk.f32.gmra.mxu0 %vm705_vm3, %v559_v55  ;;  %7108 = vmatmul.mubr.msk.f32.gmra.mxu1 %vm705_vm3, %v541_v56  ;;  %v1355_v56 = vrot.slane %v7926_v6, 7 }
  0x24   :  { %7123 = vmatpush3.msra.mxu1 %v6132_v50  ;;  %7083 = vmatprep.mubr.msk.f32.mxu0 %vm705_vm3, %v558_v59  ;;  %v554_v50 = vsel %vm536_vm1, %v517_v24, %v518_v31  ;;  %v552_v55 = vsel %vm536_vm1, %v519_v46, %v520_v38  ;;  %v553_v58 = vsel %vm536_vm1, %v518_v31, %v519_v46  ;;  %v1363_v24 = vrot.slane %v8071_v53, 7 }
  0x25   :  { %7110 = vmatprep.mubr.msk.f32.mxu1 %vm705_vm3, %v540_v0  ;;  %7189 = vmatpush3.msra.mxu0 %v6205_v52  ;;  %v6203_v52 = vld [vmem:[%s10915_s1 + $0x48] sm:$0xff]  ;;  %v681_v59 = vsel %vm585_vm6, %v552_v55, 0.0  ;;  %v1419_v0 = vsel %vm1387_vm7, %v1386_v57, %v1355_v56  ;;  %v1373_v55 = vrot.slane %v7949_v13, 7 }
  0x26   :  { %7124 = vmatprep.subr.mxu1 %v6131_v8  ;;  %7190 = vmatprep.subr.mxu0 %v6204_v10 }
  0x27   :  { %7084 = vmatmul.mubr.msk.f32.gmra.mxu0 %vm705_vm3, %v557_v18  ;;  %7111 = vmatmul.mubr.msk.f32.gmra.mxu1 %vm705_vm3, %v539_v20  ;;  %v1360_v18 = vrot.slane %v8039_v43, 7 }
  0x28   :  { %7125 = vmatpush3.msra.mxu1 %v6131_v8  ;;  %7086 = vmatprep.mubr.msk.f32.mxu0 %vm705_vm3, %v556_v26  ;;  %v1357_v8 = vrot.slane %v7968_v17, 7  ;;  %v1362_v26 = vrot.slane %v8089_v60, 7 }
  0x29   :  { %7126 = vmatprep.subr.mxu1 %v6130_v35  ;;  %7113 = vmatprep.mubr.msk.f32.mxu1 %vm705_vm3, %v538_v36  ;;  %v1365_v36 = vrot.slane %v8148_v29, 7 }
  0x2a   :  { %7127 = vmatpush3.msra.mxu1 %v6130_v35  ;;  %7191 = vmatpush3.msra.mxu0 %v6204_v10  ;;  %v1516_v10 = vsel %vm1420_vm8, %v1419_v0, 0.0  ;;  %v1411_v31 = vsel %vm1387_vm7, %v1362_v26, %v1363_v24  ;;  %v1379_v0 = vrot.slane %v8028_v39, 7 }
  0x2b   :  { %7087 = vmatmul.mubr.msk.f32.gmra.mxu0 %vm705_vm3, %v555_v40  ;;  %7114 = vmatmul.mubr.msk.f32.gmra.mxu1 %vm705_vm3, %v537_v41  ;;  %v1524_v35 = vsel %vm1428_vm9, %v1411_v31, 0.0 }
  0x2c   :  { %7128 = vmatprep.subr.mxu1 %v6129_v48  ;;  %7089 = vmatprep.mubr.msk.f32.mxu0 %vm705_vm3, %v554_v50  ;;  %v1370_v50 = vrot.slane %v8256_v32, 7 }
  0x2d   :  { %7129 = vmatpush3.msra.mxu1 %v6129_v48  ;;  %7132 = vmatprep.mubr.msk.f32.mxu1 %vm705_vm3, %v7926_v6  ;;  %v551_v6 = vsel %vm536_vm1, %v520_v38, %v521_v19  ;;  %v1358_v19 = vrot.slane %v7994_v27, 7  ;;  %v1371_v48 = vrot.slane %v8247_v25, 7 }
  0x2e   :  { %7130 = vmatprep.subr.mxu1 %v6128_v11  ;;  %7192 = vmatprep.subr.mxu0 %v6203_v52 }
  0x2f   :  { %7131 = vmatpush3.msra.mxu1 %v6128_v11  ;;  %7090 = vmatmul.mubr.msk.f32.gmra.mxu0 %vm705_vm3, %v553_v58  ;;  %v1415_v20 = vsel %vm1387_vm7, %v1358_v19, %v1359_v14  ;;  %v1403_v11 = vsel %vm1387_vm7, %v1370_v50, %v1371_v48 }
  0x30   :  { %7133 = vmatmul.mubr.msk.f32.vlgmr.msra.gmra.mxu1 %vm705_vm3, %v7958_v15  ;;  %7193 = vmatpush3.msra.mxu0 %v6203_v52  ;;  %v1418_v15 = vsel %vm1387_vm7, %v1355_v56, %v1356_v2  ;;  %v1532_v52 = vsel %vm1436_vm10, %v1403_v11, 0.0 }
  0x31   :  { %7092 = vmatprep.mubr.msk.f32.mxu0 %vm705_vm3, %v681_v59  ;;  %7135 = vmatprep.mubr.msk.f32.mxu1 %vm705_vm3, %v7968_v17  ;;  %v1417_v17 = vsel %vm1387_vm7, %v1356_v2, %v1357_v8 }
  0x32   :  { %7194 = vmatprep.subr.mxu0 %v6202_v62 }
  0x33   :  { %7093 = vmatmul.mubr.msk.f32.gmra.mxu0 %vm705_vm3, %v551_v6  ;;  %v1378_v6 = vrot.slane %v8044_v44, 7 }
  0x34   :  { %7136 = vmatmul.mubr.msk.f32.gmra.mxu1 %vm705_vm3, %v7994_v27  ;;  %7195 = vmatpush3.msra.mxu0 %v6202_v62  ;;  %v1416_v27 = vsel %vm1387_vm7, %v1357_v8, %v1358_v19 }
  0x35   :  { %7138 = vmatprep.mubr.msk.f32.mxu1 %vm705_vm3, %v8005_v30  ;;  %7196 = vmatprep.mubr.msk.f32.mxu0 %vm705_vm3, %v1516_v10  ;;  %v1361_v30 = vrot.slane %v8054_v47, 7  ;;  %v1395_v2 = vsel %vm1387_vm7, %v1378_v6, %v1379_v0  ;;  %v1381_v10 = vrot.slane %v8116_v5, 7 }
  0x36   :  { %v1540_v8 = vsel %vm1444_vm11, %v1395_v2, 0.0 }
  0x37   :  { %7197 = vmatmul.mubr.msk.f32.vlgmr.msra.gmra.mxu0 %vm705_vm3, %v1418_v15 }
  0x38   :  { %7139 = vmatmul.mubr.msk.f32.gmra.mxu1 %vm705_vm3, %v8039_v43  ;;  %7199 = vmatprep.mubr.msk.f32.mxu0 %vm705_vm3, %v1417_v17  ;;  %v1414_v43 = vsel %vm1387_vm7, %v1359_v14, %v1360_v18 }
  0x39   :  { %7141 = vmatprep.mubr.msk.f32.mxu1 %vm705_vm3, %v8054_v47  ;;  %v1413_v47 = vsel %vm1387_vm7, %v1360_v18, %v1361_v30  ;;  %v6245_v18 = vld [vmem:[%s10917_s3 + $0x28] sm:$0xff] }
  0x3a   :  { %7296 = vmatprep.subr.mxu0 %v6245_v18 }
  0x3b   :  { %7200 = vmatmul.mubr.msk.f32.gmra.mxu0 %vm705_vm3, %v1416_v27 }
  0x3c   :  { %7142 = vmatmul.mubr.msk.f32.gmra.mxu1 %vm705_vm3, %v8089_v60  ;;  %7202 = vmatprep.mubr.msk.f32.mxu0 %vm705_vm3, %v1415_v20  ;;  %v1412_v60 = vsel %vm1387_vm7, %v1361_v30, %v1362_v26  ;;  %v6244_v20 = vld [vmem:[%s10917_s3 + $0x20] sm:$0xff]  ;;  %v8532_v30 = vld [vmem:[%s10917_s3 + $0x18] sm:$0xff] }
  0x3d   :  { %7144 = vmatprep.mubr.msk.f32.mxu1 %vm705_vm3, %v8071_v53  ;;  %v1364_v53 = vrot.slane %v8132_v22, 7  ;;  %7297 = vmatpush3.msra.mxu0 %v6245_v18 }
  0x3e   :  { %7298 = vmatprep.subr.mxu0 %v6244_v20 }
  0x3f   :  { %7203 = vmatmul.mubr.msk.f32.gmra.mxu0 %vm705_vm3, %v1414_v43  ;;  %v1410_v38 = vsel %vm1387_vm7, %v1363_v24, %v1364_v53  ;;  %v1409_v40 = vsel %vm1387_vm7, %v1364_v53, %v1365_v36  ;;  %v8538_v24 = vld [vmem:[%s10918_s5 + $0x38] sm:$0x7f] }
  0x40   :  { %7145 = vmatmul.mubr.msk.f32.gmra.mxu1 %vm705_vm3, %v8132_v22  ;;  %7205 = vmatprep.mubr.msk.f32.mxu0 %vm705_vm3, %v1413_v47  ;;  %v1366_v22 = vrot.slane %v8177_v42, 7 }
  0x41   :  { %7147 = vmatprep.mubr.msk.f32.mxu1 %vm705_vm3, %v8148_v29  ;;  %v1367_v29 = vrot.slane %v8190_v49, 7  ;;  %7299 = vmatpush3.msra.mxu0 %v6244_v20 }
  0x42   :  { %v1408_v41 = vsel %vm1387_vm7, %v1365_v36, %v1366_v22  ;;  %7400 = vmatprep.subr.msk.mxu0 %vm802_vm0, %v8538_v24 }
  0x43   :  { %7206 = vmatmul.mubr.msk.f32.gmra.mxu0 %vm705_vm3, %v1412_v60  ;;  %v1407_v46 = vsel %vm1387_vm7, %v1366_v22, %v1367_v29 }
  0x44   :  { %7148 = vmatmul.mubr.msk.f32.gmra.mxu1 %vm705_vm3, %v8177_v42  ;;  %7208 = vmatprep.mubr.msk.f32.mxu0 %vm705_vm3, %v1524_v35  ;;  %v1368_v42 = vrot.slane %v8219_v1, 7 }
  0x45   :  { %7150 = vmatprep.mubr.msk.f32.mxu1 %vm705_vm3, %v8190_v49  ;;  %v1369_v49 = vrot.slane %v8227_v3, 7 }
  0x47   :  { %7209 = vmatmul.mubr.msk.f32.gmra.mxu0 %vm705_vm3, %v1410_v38 }
  0x48   :  { %7151 = vmatmul.mubr.msk.f32.gmra.mxu1 %vm705_vm3, %v8219_v1  ;;  %7211 = vmatprep.mubr.msk.f32.mxu0 %vm705_vm3, %v1409_v40  ;;  %v1406_v1 = vsel %vm1387_vm7, %v1367_v29, %v1368_v42 }
  0x49   :  { %7153 = vmatprep.mubr.msk.f32.mxu1 %vm705_vm3, %v8227_v3  ;;  %v1405_v3 = vsel %vm1387_vm7, %v1368_v42, %v1369_v49 }
  0x4b   :  { %7212 = vmatmul.mubr.msk.f32.gmra.mxu0 %vm705_vm3, %v1408_v41 }
  0x4c   :  { %7154 = vmatmul.mubr.msk.f32.gmra.mxu1 %vm705_vm3, %v8256_v32  ;;  %7214 = vmatprep.mubr.msk.f32.mxu0 %vm705_vm3, %v1407_v46  ;;  %v1404_v32 = vsel %vm1387_vm7, %v1369_v49, %v1370_v50 }
  0x4d   :  { %7156 = vmatprep.mubr.msk.f32.mxu1 %vm705_vm3, %v8247_v25  ;;  %v1372_v25 = vrot.slane %v7944_v12, 7 }
  0x4f   :  { %7215 = vmatmul.mubr.msk.f32.gmra.mxu0 %vm705_vm3, %v1406_v1  ;;  %v1402_v56 = vsel %vm1387_vm7, %v1371_v48, %v1372_v25  ;;  %v1401_v58 = vsel %vm1387_vm7, %v1372_v25, %v1373_v55 }
  0x50   :  { %7157 = vmatmul.mubr.msk.f32.gmra.mxu1 %vm705_vm3, %v7944_v12  ;;  %7217 = vmatprep.mubr.msk.f32.mxu0 %vm705_vm3, %v1405_v3  ;;  %v1374_v12 = vrot.slane %v7963_v16, 7 }
  0x51   :  { %7159 = vmatprep.mubr.msk.f32.mxu1 %vm705_vm3, %v7949_v13  ;;  %v1375_v13 = vrot.slane %v7978_v21, 7 }
  0x52   :  { %v1400_v59 = vsel %vm1387_vm7, %v1373_v55, %v1374_v12 }
  0x53   :  { %7218 = vmatmul.mubr.msk.f32.gmra.mxu0 %vm705_vm3, %v1404_v32  ;;  %v1399_v62 = vsel %vm1387_vm7, %v1374_v12, %v1375_v13 }
  0x54   :  { %7160 = vmatmul.mubr.msk.f32.gmra.mxu1 %vm705_vm3, %v7963_v16  ;;  %7220 = vmatprep.mubr.msk.f32.mxu0 %vm705_vm3, %v1532_v52  ;;  %v1376_v16 = vrot.slane %v7999_v28, 7 }
  0x55   :  { %7162 = vmatprep.mubr.msk.f32.mxu1 %vm705_vm3, %v7978_v21  ;;  %v1377_v21 = vrot.slane %v8016_v33, 7 }
  0x57   :  { %7221 = vmatmul.mubr.msk.f32.gmra.mxu0 %vm705_vm3, %v1402_v56 }
  0x58   :  { %7163 = vmatmul.mubr.msk.f32.gmra.mxu1 %vm705_vm3, %v7999_v28  ;;  %7223 = vmatprep.mubr.msk.f32.mxu0 %vm705_vm3, %v1401_v58  ;;  %v1398_v28 = vsel %vm1387_vm7, %v1375_v13, %v1376_v16 }
  0x59   :  { %7165 = vmatprep.mubr.msk.f32.mxu1 %vm705_vm3, %v8016_v33  ;;  %v1397_v33 = vsel %vm1387_vm7, %v1376_v16, %v1377_v21 }
  0x5b   :  { %7224 = vmatmul.mubr.msk.f32.gmra.mxu0 %vm705_vm3, %v1400_v59 }
  0x5c   :  { %7166 = vmatmul.mubr.msk.f32.gmra.mxu1 %vm705_vm3, %v8044_v44  ;;  %7226 = vmatprep.mubr.msk.f32.mxu0 %vm705_vm3, %v1399_v62  ;;  %v1396_v44 = vsel %vm1387_vm7, %v1377_v21, %v1378_v6 }
  0x5d   :  { %7168 = vmatprep.mubr.msk.f32.mxu1 %vm705_vm3, %v8028_v39  ;;  %v1380_v39 = vrot.slane %v8094_v61, 7 }
  0x5f   :  { %7227 = vmatmul.mubr.msk.f32.gmra.mxu0 %vm705_vm3, %v1398_v28  ;;  %v1394_v15 = vsel %vm1387_vm7, %v1379_v0, %v1380_v39  ;;  %v1393_v19 = vsel %vm1387_vm7, %v1380_v39, %v1381_v10 }
  0x60   :  { %7169 = vmatmul.mubr.msk.f32.gmra.mxu1 %vm705_vm3, %v8094_v61  ;;  %7229 = vmatprep.mubr.msk.f32.mxu0 %vm705_vm3, %v1397_v33  ;;  %v1382_v61 = vrot.slane %v8137_v23, 7 }
  0x61   :  { %7171 = vmatprep.mubr.msk.f32.mxu1 %vm705_vm3, %v8116_v5  ;;  %v1383_v5 = vrot.slane %v8161_v34, 7 }
  0x62   :  { %v1392_v17 = vsel %vm1387_vm7, %v1381_v10, %v1382_v61 }
  0x63   :  { %7230 = vmatmul.mubr.msk.f32.gmra.mxu0 %vm705_vm3, %v1396_v44  ;;  %v1391_v14 = vsel %vm1387_vm7, %v1382_v61, %v1383_v5  ;;  %v8595_v44 = vld [vmem:[%s10919_s2] ss:$0 sm:$0xff] }
  0x64   :  { %7172 = vmatmul.mubr.msk.f32.gmra.mxu1 %vm705_vm3, %v8137_v23  ;;  %7232 = vmatprep.mubr.msk.f32.mxu0 %vm705_vm3, %v1540_v8  ;;  %v1384_v23 = vrot.slane %v8182_v45, 7 }
  0x65   :  { %7174 = vmatprep.mubr.msk.f32.mxu1 %vm705_vm3, %v8161_v34  ;;  %v1385_v34 = vrot.slane %v8203_v54, 7 }
  0x66   :  { %v1390_v27 = vsel %vm1387_vm7, %v1383_v5, %v1384_v23 }
  0x67   :  { %7233 = vmatmul.mubr.msk.f32.gmra.mxu0 %vm705_vm3, %v1394_v15 }
  0x68   :  { %7175 = vmatmul.mubr.msk.f32.gmra.mxu1 %vm705_vm3, %v8182_v45  ;;  %7235 = vmatprep.mubr.msk.f32.mxu0 %vm705_vm3, %v1393_v19  ;;  %v1389_v45 = vsel %vm1387_vm7, %v1384_v23, %v1385_v34 }
  0x69   :  { %7177 = vmatprep.mubr.msk.f32.mxu1 %vm705_vm3, %v8203_v54  ;;  %v1388_v54 = vsel %vm1387_vm7, %v1385_v34, %v1386_v57  ;;  %v2083_v57 = vld [vmem:[%s10917_s3] sm:$0xff] }
  0x6b   :  { %7236 = vmatmul.mubr.msk.f32.gmra.mxu0 %vm705_vm3, %v1392_v17 }
  0x6c   :  { %7178 = vmatmul.mubr.msk.f32.gmra.mxu1 %vm705_vm3, %v7931_v7  ;;  %7238 = vmatprep.mubr.msk.f32.mxu0 %vm705_vm3, %v1391_v14  ;;  %v2084_v7 = vld [vmem:[%s10917_s3 + $0x8] sm:$0xff] }
  0x6d   :  { %7244 = vmatprep.subr.mxu1 %v2084_v7 }
  0x6e   :  { %7245 = vmatpush3.msra.mxu1 %v2084_v7 }
  0x6f   :  { %7239 = vmatmul.mubr.msk.f32.gmra.mxu0 %vm705_vm3, %v1390_v27  ;;  %7246 = vmatprep.subr.mxu1 %v2083_v57 }
  0x70   :  { %7241 = vmatprep.mubr.msk.f32.mxu0 %vm705_vm3, %v1389_v45  ;;  %7247 = vmatpush3.msra.mxu1 %v2083_v57 }
  0x71   :  { %7348 = vmatprep.subr.mxu1 %v8532_v30 }
  0x73   :  { %7242 = vmatmul.mubr.msk.f32.gmra.mxu0 %vm705_vm3, %v1388_v54 }
  0xd3   :  { %v7070_v43 = vpop.f32.mrf.mxu0  ;;  %v8542_v26 = vpop.f32.mrf.mxu1 }
  0xd5   :  { %v872_v47 = vpop.f32.mrf.mxu0  ;;  %v8544_v31 = vpop.f32.mrf.mxu1 }
  0xd7   :  { %v7073_v60 = vpop.f32.mrf.mxu0  ;;  %v8546_v53 = vpop.f32.mrf.mxu1 }
  0xd9   :  { %v882_v35 = vpop.f32.mrf.mxu0  ;;  %v8548_v36 = vpop.f32.mrf.mxu1 }
  0xdb   :  { %v7076_v38 = vpop.f32.mrf.mxu0  ;;  %v8550_v22 = vpop.f32.mrf.mxu1 }
  0xdd   :  { %v892_v40 = vpop.f32.mrf.mxu0  ;;  %v8552_v29 = vpop.f32.mrf.mxu1 }
  0xdf   :  { %v7079_v41 = vpop.f32.mrf.mxu0  ;;  %v8554_v42 = vpop.f32.mrf.mxu1 }
  0xe1   :  { %v8556_v46 = vpop.f32.mrf.mxu0  ;;  %v8558_v49 = vpop.f32.mrf.mxu1 }
  0xe3   :  { %v8560_v48 = vpop.f32.mrf.mxu0  ;;  %v8562_v1 = vpop.f32.mrf.mxu1 }
  0xe5   :  { %v8564_v50 = vpop.f32.mrf.mxu0  ;;  %v8566_v3 = vpop.f32.mrf.mxu1 }
  0xe7   :  { %v8568_v11 = vpop.f32.mrf.mxu0  ;;  %v8570_v32 = vpop.f32.mrf.mxu1 }
  0xe9   :  { %v8572_v25 = vpop.f32.mrf.mxu0  ;;  %v8574_v52 = vpop.f32.mrf.mxu1 }
  0xeb   :  { %v8576_v55 = vpop.f32.mrf.mxu0  ;;  %v8578_v56 = vpop.f32.mrf.mxu1 }
  0xed   :  { %v8580_v12 = vpop.f32.mrf.mxu0  ;;  %v8582_v58 = vpop.f32.mrf.mxu1 }
  0xef   :  { %v8584_v13 = vpop.f32.mrf.mxu0 }
  0xf0   :  { %v7134_v59 = vpop.f32.mrf.mxu1 }
  0xf1   :  { %v8586_v16 = vpop.f32.mrf.mxu0  ;;  %v1202_v6 = vadd.f32 %v7134_v59, %v7070_v43 }
  0xf2   :  { %v1196_v62 = vpop.f32.mrf.mxu1 }
  0xf3   :  { %v8588_v21 = vpop.f32.mrf.mxu0  ;;  %v1197_v39 = vadd.f32 %v1196_v62, %v872_v47 }
  0xf4   :  { %v7137_v0 = vpop.f32.mrf.mxu1 }
  0xf5   :  { %v8590_v28 = vpop.f32.mrf.mxu0  ;;  %v1212_v61 = vadd.f32 %v7137_v0, %v7073_v60 }
  0xf6   :  { %v1206_v33 = vpop.f32.mrf.mxu1 }
  0xf7   :  { %v7198_v2 = vpop.f32.mrf.mxu0  ;;  %v1207_v45 = vadd.f32 %v1206_v33, %v882_v35  ;;  %v3257_v35 = vld [vmem:[%s10918_s5 + $0x30] sm:$0xff] }
  0xf8   :  { %v7140_v8 = vpop.f32.mrf.mxu1  ;;  %v1882_v10 = vadd.f32 %v7198_v2, %v1202_v6 }
  0xf9   :  { %v1722_v15 = vpop.f32.mrf.mxu0  ;;  %v1222_v20 = vadd.f32 %v7140_v8, %v7076_v38 }
  0xfa   :  { %v1921_v19 = vadd.f32 %v8595_v44, %v1882_v10  ;;  %v1216_v5 = vpop.f32.mrf.mxu1  ;;  %v1881_v17 = vadd.f32 %v1722_v15, %v1197_v39  ;;  %v3256_v10 = vld [vmem:[%s10918_s5 + $0x28] sm:$0xff] }
  0xfb   :  { %v7201_v23 = vpop.f32.mrf.mxu0  ;;  %v1217_v59 = vadd.f32 %v1216_v5, %v892_v40 }
  0xfc   :  { %v1920_v14 = vadd.f32 %v8595_v44, %v1881_v17  ;;  %v7143_v34 = vpop.f32.mrf.mxu1  ;;  %v1884_v27 = vadd.f32 %v7201_v23, %v1212_v61  ;;  %v8599_v54 = vmax.f32 %v1921_v19, 0.0 }
  0xfd   :  { %v1732_v18 = vpop.f32.mrf.mxu0  ;;  %v1232_v40 = vadd.f32 %v7143_v34, %v7079_v41 }
  0xfe   :  { %v8601_v7 = vmax.f32 %v1920_v14, 0.0  ;;  %v1226_v57 = vpop.f32.mrf.mxu1  ;;  %v1923_v43 = vadd.f32 %v8595_v44, %v1884_v27  ;;  %v1883_v47 = vadd.f32 %v1732_v18, %v1207_v45  ;;  %v2729_v38 = vrot.slane %v8599_v54, 7  ;;  %v3255_v27 = vld [vmem:[%s10918_s5 + $0x20] sm:$0xff] }
  0xff   :  { %v7204_v60 = vpop.f32.mrf.mxu0  ;;  %v1227_v14 = vadd.f32 %v1226_v57, %v8556_v46 }
 0x100   :  { %v10929_v62 = vrot.slane %v8601_v7, 7  ;;  %v7146_v0 = vpop.f32.mrf.mxu1  ;;  %v1886_v6 = vadd.f32 %v7204_v60, %v1222_v20  ;;  %7300 = vmatprep.mubr.msk.f32.mxu0 %vm2085_vm12, %v8601_v7  ;;  %v1922_v33 = vadd.f32 %v8595_v44, %v1883_v47  ;;  %v8619_v15 = vmax.f32 %v1923_v43, 0.0 }
 0x101   :  { %v1742_v2 = vpop.f32.mrf.mxu0  ;;  %7301 = vmatmul.mubr.msk.f32.vlgmr.msra.gmra.mxu0 %vm2085_vm12, %v8599_v54  ;;  %v1242_v18 = vadd.f32 %v7146_v0, %v8560_v48 }
 0x102   :  { %v1236_v39 = vpop.f32.mrf.mxu1  ;;  %v1885_v8 = vadd.f32 %v1742_v2, %v1217_v59  ;;  %7401 = vmatpush3.msk.msra.mxu0 %vm802_vm0, %v8538_v24  ;;  %v8621_v61 = vmax.f32 %v1922_v33, 0.0  ;;  %v1925_v19 = vadd.f32 %v8595_v44, %v1886_v6  ;;  %v8628_v41 = vsel %vm1387_vm7, %v10929_v62, %v2729_v38  ;;  %v3254_v6 = vld [vmem:[%s10918_s5 + $0x18] sm:$0xff] }
 0x103   :  { %v7207_v5 = vpop.f32.mrf.mxu0  ;;  %7402 = vmatprep.subr.mxu0 %v3257_v35  ;;  %v2731_v46 = vrot.slane %v8619_v15, 7  ;;  %v1237_v48 = vadd.f32 %v1236_v39, %v8564_v50 }
 0x104   :  { %v1924_v24 = vadd.f32 %v8595_v44, %v1885_v8  ;;  %v7149_v17 = vpop.f32.mrf.mxu1  ;;  %v1888_v23 = vadd.f32 %v7207_v5, %v1232_v40  ;;  %7403 = vmatpush3.msra.mxu0 %v3257_v35  ;;  %7303 = vmatprep.mubr.msk.f32.mxu0 %vm2085_vm12, %v8621_v61  ;;  %v2730_v45 = vrot.slane %v8621_v61, 7  ;;  %v8644_v57 = vmax.f32 %v1925_v19, 0.0  ;;  %v3253_v8 = vld [vmem:[%s10918_s5 + $0x10] sm:$0xff] }
 0x105   :  { %v1752_v34 = vpop.f32.mrf.mxu0  ;;  %7404 = vmatprep.subr.mxu0 %v3256_v10  ;;  %7304 = vmatmul.mubr.msk.f32.gmra.mxu0 %vm2085_vm12, %v8619_v15 }
 0x106   :  { %v8639_v20 = vmax.f32 %v1924_v24, 0.0  ;;  %v1246_v43 = vpop.f32.mrf.mxu1  ;;  %v1927_v47 = vadd.f32 %v8595_v44, %v1888_v23  ;;  %v1887_v60 = vadd.f32 %v1752_v34, %v1227_v14  ;;  %7405 = vmatpush3.msra.mxu0 %v3256_v10  ;;  %v8655_v33 = vsel %vm1387_vm7, %v2729_v38, %v2730_v45 }
 0x107   :  { %v7210_v59 = vpop.f32.mrf.mxu0  ;;  %7406 = vmatprep.subr.mxu0 %v3255_v27  ;;  %v8663_v50 = vsel %vm1387_vm7, %v2730_v45, %v2731_v46  ;;  %v1252_v10 = vadd.f32 %v7149_v17, %v8568_v11  ;;  %v2733_v38 = vrot.slane %v8644_v57, 7  ;;  %v3252_v11 = vld [vmem:[%s10918_s5 + $0x8] sm:$0xff] }
 0x108   :  { %v7152_v0 = vpop.f32.mrf.mxu1  ;;  %v1890_v35 = vadd.f32 %v7210_v59, %v1242_v18  ;;  %7306 = vmatprep.mubr.msk.f32.mxu0 %vm2085_vm12, %v8639_v20  ;;  %v1926_v2 = vadd.f32 %v8595_v44, %v1887_v60  ;;  %7407 = vmatpush3.msra.mxu0 %v3255_v27  ;;  %v2732_v39 = vrot.slane %v8639_v20, 7  ;;  %v8670_v24 = vmax.f32 %v1927_v47, 0.0  ;;  %v3251_v59 = vld [vmem:[%s10918_s5] sm:$0xff] }
 0x109   :  { %v1762_v40 = vpop.f32.mrf.mxu0  ;;  %7307 = vmatmul.mubr.msk.f32.gmra.mxu0 %vm2085_vm12, %v8644_v57  ;;  %7408 = vmatprep.subr.mxu0 %v3254_v6  ;;  %v1247_v47 = vadd.f32 %v1246_v43, %v8572_v25 }
 0x10a   :  { %v1256_v19 = vpop.f32.mrf.mxu1  ;;  %v1889_v5 = vadd.f32 %v1762_v40, %v1237_v48  ;;  %v8672_v23 = vmax.f32 %v1926_v2, 0.0  ;;  %v1929_v14 = vadd.f32 %v8595_v44, %v1890_v35  ;;  %7409 = vmatpush3.msra.mxu0 %v3254_v6  ;;  %v8681_v18 = vsel %vm1387_vm7, %v2731_v46, %v2732_v39 }
 0x10b   :  { %v7213_v34 = vpop.f32.mrf.mxu0  ;;  %7410 = vmatprep.subr.mxu0 %v3253_v8  ;;  %v8691_v6 = vsel %vm1387_vm7, %v2732_v39, %v2733_v38  ;;  %v1262_v46 = vadd.f32 %v7152_v0, %v8576_v55  ;;  %v2735_v43 = vrot.slane %v8670_v24, 7  ;;  %v1257_v39 = vadd.f32 %v1256_v19, %v8580_v12 }
 0x10c   :  { %v1928_v17 = vadd.f32 %v8595_v44, %v1889_v5  ;;  %v7155_v27 = vpop.f32.mrf.mxu1  ;;  %v1892_v45 = vadd.f32 %v7213_v34, %v1252_v10  ;;  %7309 = vmatprep.mubr.msk.f32.mxu0 %vm2085_vm12, %v8672_v23  ;;  %7411 = vmatpush3.msra.mxu0 %v3253_v8  ;;  %v2734_v48 = vrot.slane %v8672_v23, 7  ;;  %v8700_v2 = vmax.f32 %v1929_v14, 0.0 }
 0x10d   :  { %v1772_v60 = vpop.f32.mrf.mxu0  ;;  %7310 = vmatmul.mubr.msk.f32.gmra.mxu0 %vm2085_vm12, %v8670_v24  ;;  %7412 = vmatprep.subr.mxu0 %v3252_v11  ;;  %v1272_v19 = vadd.f32 %v7155_v27, %v8584_v13 }
 0x10e   :  { %v8695_v35 = vmax.f32 %v1928_v17, 0.0  ;;  %v1266_v25 = vpop.f32.mrf.mxu1  ;;  %v1891_v40 = vadd.f32 %v1772_v60, %v1247_v47  ;;  %7413 = vmatpush3.msra.mxu0 %v3252_v11  ;;  %v1931_v10 = vadd.f32 %v8595_v44, %v1892_v45  ;;  %v8710_v14 = vsel %vm1387_vm7, %v2733_v38, %v2734_v48 }
 0x10f   :  { %v7216_v8 = vpop.f32.mrf.mxu0  ;;  %7414 = vmatprep.subr.mxu0 %v3251_v59  ;;  %v8714_v12 = vsel %vm1387_vm7, %v2734_v48, %v2735_v43  ;;  %v2737_v47 = vrot.slane %v8700_v2, 7  ;;  %v1267_v13 = vadd.f32 %v1266_v25, %v8586_v16 }
 0x110   :  { %v7158_v5 = vpop.f32.mrf.mxu1  ;;  %v1894_v55 = vadd.f32 %v7216_v8, %v1262_v46  ;;  %7312 = vmatprep.mubr.msk.f32.mxu0 %vm2085_vm12, %v8695_v35  ;;  %v2736_v0 = vrot.slane %v8695_v35, 7  ;;  %v1930_v34 = vadd.f32 %v8595_v44, %v1891_v40  ;;  %7415 = vmatpush3.msra.mxu0 %v3251_v59  ;;  %v8722_v46 = vmax.f32 %v1931_v10, 0.0 }
 0x111   :  { %v1782_v17 = vpop.f32.mrf.mxu0  ;;  %7313 = vmatmul.mubr.msk.f32.gmra.mxu0 %vm2085_vm12, %v8700_v2 }
 0x112   :  { %v1276_v11 = vpop.f32.mrf.mxu1  ;;  %v1893_v45 = vadd.f32 %v1782_v17, %v1257_v39  ;;  %v8720_v60 = vmax.f32 %v1930_v34, 0.0  ;;  %v1933_v38 = vadd.f32 %v8595_v44, %v1894_v55  ;;  %v8731_v39 = vsel %vm1387_vm7, %v2735_v43, %v2736_v0 }
 0x113   :  { %v7219_v59 = vpop.f32.mrf.mxu0  ;;  %10961 = vst [vmem:[#allocation7_spill] sm:$0xff] %v8731_v39  ;;  %v8735_v10 = vsel %vm1387_vm7, %v2736_v0, %v2737_v47  ;;  %v1282_v55 = vadd.f32 %v7158_v5, %v8588_v21  ;;  %v1277_v43 = vadd.f32 %v1276_v11, %v8590_v28  ;;  %v2739_v28 = vrot.slane %v8722_v46, 7 }
 0x114   :  { %v1932_v40 = vadd.f32 %v8595_v44, %v1893_v45  ;;  %v7161_v48 = vpop.f32.mrf.mxu1  ;;  %v1896_v8 = vadd.f32 %v7219_v59, %v1272_v19  ;;  %7315 = vmatprep.mubr.msk.f32.mxu0 %vm2085_vm12, %v8720_v60  ;;  %10962 = vst [vmem:[#allocation8_spill] sm:$0xff] %v8735_v10  ;;  %v8743_v45 = vmax.f32 %v1933_v38, 0.0  ;;  %v2738_v0 = vrot.slane %v8720_v60, 7 }
 0x115   :  { %v1792_v27 = vpop.f32.mrf.mxu0  ;;  %7316 = vmatmul.mubr.msk.f32.gmra.mxu0 %vm2085_vm12, %v8722_v46 }
 0x116   :  { %v8738_v34 = vmax.f32 %v1932_v40, 0.0  ;;  %v1286_v17 = vpop.f32.mrf.mxu1  ;;  %v1935_v16 = vadd.f32 %v8595_v44, %v1896_v8  ;;  %v1895_v25 = vadd.f32 %v1792_v27, %v1267_v13  ;;  %v1292_v8 = vadd.f32 %v7161_v48, %v8542_v26 }
 0x117   :  { %v7222_v19 = vpop.f32.mrf.mxu0  ;;  %v8763_v26 = vsel %vm1387_vm7, %v2737_v47, %v2738_v0  ;;  %v1287_v48 = vadd.f32 %v1286_v17, %v8544_v31  ;;  %v2741_v31 = vrot.slane %v8743_v45, 7 }
 0x118   :  { %v7164_v59 = vpop.f32.mrf.mxu1  ;;  %v1898_v62 = vadd.f32 %v7222_v19, %v1282_v55  ;;  %7318 = vmatprep.mubr.msk.f32.mxu0 %vm2085_vm12, %v8738_v34  ;;  %v1934_v21 = vadd.f32 %v8595_v44, %v1895_v25  ;;  %v2740_v40 = vrot.slane %v8738_v34, 7  ;;  %v8755_v11 = vmax.f32 %v1935_v16, 0.0  ;;  %10963 = vst [vmem:[#allocation9_spill] sm:$0xff] %v8763_v26 }
 0x119   :  { %v1802_v5 = vpop.f32.mrf.mxu0  ;;  %7319 = vmatmul.mubr.msk.f32.gmra.mxu0 %vm2085_vm12, %v8743_v45 }
 0x11a   :  { %v1296_v13 = vpop.f32.mrf.mxu1  ;;  %v1897_v27 = vadd.f32 %v1802_v5, %v1277_v43  ;;  %v8757_v38 = vmax.f32 %v1934_v21, 0.0  ;;  %v1937_v25 = vadd.f32 %v8595_v44, %v1898_v62  ;;  %v8770_v43 = vsel %vm1387_vm7, %v2738_v0, %v2739_v28 }
 0x11b   :  { %v7225_v55 = vpop.f32.mrf.mxu0  ;;  %10964 = vst [vmem:[#allocation10_spill] sm:$0xff] %v8770_v43  ;;  %v8774_v62 = vsel %vm1387_vm7, %v2739_v28, %v2740_v40  ;;  %v1302_v21 = vadd.f32 %v7164_v59, %v8546_v53  ;;  %v1297_v0 = vadd.f32 %v1296_v13, %v8548_v36 }
 0x11c   :  { %v1936_v19 = vadd.f32 %v8595_v44, %v1897_v27  ;;  %v7167_v10 = vpop.f32.mrf.mxu1  ;;  %v1900_v39 = vadd.f32 %v7225_v55, %v1292_v8  ;;  %7321 = vmatprep.mubr.msk.f32.mxu0 %vm2085_vm12, %v8757_v38  ;;  %10965 = vst [vmem:[#allocation11_spill] sm:$0xff] %v8774_v62  ;;  %v8782_v27 = vmax.f32 %v1937_v25, 0.0 }
 0x11d   :  { %v1812_v16 = vpop.f32.mrf.mxu0  ;;  %7322 = vmatmul.mubr.msk.f32.gmra.mxu0 %vm2085_vm12, %v8755_v11  ;;  %v1312_v25 = vadd.f32 %v7167_v10, %v8550_v22 }
 0x11e   :  { %v8777_v5 = vmax.f32 %v1936_v19, 0.0  ;;  %v1306_v47 = vpop.f32.mrf.mxu1  ;;  %v1899_v17 = vadd.f32 %v1812_v16, %v1287_v48  ;;  %v1939_v55 = vadd.f32 %v8595_v44, %v1900_v39  ;;  %v8791_v19 = vsel %vm1387_vm7, %v2740_v40, %v2741_v31 }
 0x11f   :  { %v7228_v8 = vpop.f32.mrf.mxu0  ;;  %10966 = vst [vmem:[#allocation12_spill] sm:$0xff] %v8791_v19  ;;  %v2742_v48 = vrot.slane %v8757_v38, 7  ;;  %v2743_v39 = vrot.slane %v8755_v11, 7  ;;  %v1307_v10 = vadd.f32 %v1306_v47, %v8552_v29  ;;  %v2745_v29 = vrot.slane %v8782_v27, 7 }
 0x120   :  { %v7170_v28 = vpop.f32.mrf.mxu1  ;;  %v1902_v62 = vadd.f32 %v7228_v8, %v1302_v21  ;;  %7324 = vmatprep.mubr.msk.f32.mxu0 %vm2085_vm12, %v8777_v5  ;;  %v1938_v53 = vadd.f32 %v8595_v44, %v1899_v17  ;;  %v2744_v13 = vrot.slane %v8777_v5, 7  ;;  %v8801_v8 = vmax.f32 %v1939_v55, 0.0 }
 0x121   :  { %v1822_v59 = vpop.f32.mrf.mxu0  ;;  %7325 = vmatmul.mubr.msk.f32.gmra.mxu0 %vm2085_vm12, %v8782_v27  ;;  %v8814_v55 = vsel %vm1387_vm7, %v2742_v48, %v2743_v39 }
 0x122   :  { %v1316_v16 = vpop.f32.mrf.mxu1  ;;  %v1901_v36 = vadd.f32 %v1822_v59, %v1297_v0  ;;  %v8799_v21 = vmax.f32 %v1938_v53, 0.0  ;;  %v1941_v40 = vadd.f32 %v8595_v44, %v1902_v62  ;;  %v8810_v59 = vsel %vm1387_vm7, %v2741_v31, %v2742_v48  ;;  %10968 = vst [vmem:[#allocation14_spill] sm:$0xff] %v8814_v55 }
 0x123   :  { %v7231_v17 = vpop.f32.mrf.mxu0  ;;  %10967 = vst [vmem:[#allocation13_spill] sm:$0xff] %v8810_v59  ;;  %v1322_v62 = vadd.f32 %v7170_v28, %v8554_v42  ;;  %v1317_v47 = vadd.f32 %v1316_v16, %v8558_v49  ;;  %v8830_v42 = vsel %vm1387_vm7, %v2743_v39, %v2744_v13  ;;  %v8835_v49 = vsel %vm1387_vm7, %v2744_v13, %v2745_v29 }
 0x124   :  { %v1940_v19 = vadd.f32 %v8595_v44, %v1901_v36  ;;  %v7173_v43 = vpop.f32.mrf.mxu1  ;;  %v1904_v22 = vadd.f32 %v7231_v17, %v1312_v25  ;;  %7327 = vmatprep.mubr.msk.f32.mxu0 %vm2085_vm12, %v8799_v21  ;;  %v8823_v31 = vmax.f32 %v1941_v40, 0.0  ;;  %10969 = vst [vmem:[#allocation15_spill] sm:$0xff] %v8830_v42  ;;  %10970 = vst [vmem:[#allocation16_spill] sm:$0xff] %v8835_v49 }
 0x125   :  { %v1832_v0 = vpop.f32.mrf.mxu0  ;;  %7328 = vmatmul.mubr.msk.f32.gmra.mxu0 %vm2085_vm12, %v8801_v8  ;;  %v1332_v16 = vadd.f32 %v7173_v43, %v8562_v1  ;;  %v2746_v43 = vrot.slane %v8799_v21, 7 }
 0x126   :  { %v8817_v53 = vmax.f32 %v1940_v19, 0.0  ;;  %v1326_v36 = vpop.f32.mrf.mxu1  ;;  %v1903_v25 = vadd.f32 %v1832_v0, %v1307_v10  ;;  %v1943_v59 = vadd.f32 %v8595_v44, %v1904_v22 }
 0x127   :  { %v7234_v17 = vpop.f32.mrf.mxu0  ;;  %v1327_v13 = vadd.f32 %v1326_v36, %v8566_v3  ;;  %v2749_v3 = vrot.slane %v8823_v31, 7 }
 0x128   :  { %v7176_v48 = vpop.f32.mrf.mxu1  ;;  %v1906_v55 = vadd.f32 %v7234_v17, %v1322_v62  ;;  %7330 = vmatprep.mubr.msk.f32.mxu0 %vm2085_vm12, %v8817_v53  ;;  %v1942_v28 = vadd.f32 %v8595_v44, %v1903_v25  ;;  %v8843_v62 = vmax.f32 %v1943_v59, 0.0 }
 0x129   :  { %v1842_v19 = vpop.f32.mrf.mxu0  ;;  %7331 = vmatmul.mubr.msk.f32.gmra.mxu0 %vm2085_vm12, %v8823_v31 }
 0x12a   :  { %v1336_v40 = vpop.f32.mrf.mxu1  ;;  %v1905_v22 = vadd.f32 %v1842_v19, %v1317_v47  ;;  %v8840_v10 = vmax.f32 %v1942_v28, 0.0  ;;  %v1945_v0 = vadd.f32 %v8595_v44, %v1906_v55  ;;  %v2748_v47 = vrot.slane %v8817_v53, 7 }
 0x12b   :  { %v7237_v39 = vpop.f32.mrf.mxu0  ;;  %v2747_v28 = vrot.slane %v8801_v8, 7  ;;  %v1342_v55 = vadd.f32 %v7176_v48, %v8570_v32 }
 0x12c   :  { %v1944_v25 = vadd.f32 %v8595_v44, %v1905_v22  ;;  %v1908_v17 = vadd.f32 %v7237_v39, %v1332_v16  ;;  %7333 = vmatprep.mubr.msk.f32.mxu0 %vm2085_vm12, %v8840_v10  ;;  %v7179_v59 = vpop.f32.mrf.mxu1  ;;  %v8858_v36 = vmax.f32 %v1945_v0, 0.0  ;;  %v1337_v16 = vadd.f32 %v1336_v40, %v8574_v52 }
 0x12d   :  { %v1852_v1 = vpop.f32.mrf.mxu0  ;;  %7334 = vmatmul.mubr.msk.f32.gmra.mxu0 %vm2085_vm12, %v8843_v62  ;;  %v2750_v32 = vrot.slane %v8840_v10, 7  ;;  %v8869_v0 = vsel %vm1387_vm7, %v2745_v29, %v2746_v43  ;;  %v8873_v52 = vsel %vm1387_vm7, %v2746_v43, %v2747_v28  ;;  %v8877_v40 = vsel %vm1387_vm7, %v2747_v28, %v2748_v47 }
 0x12e   :  { %v8853_v19 = vmax.f32 %v1944_v25, 0.0  ;;  %v1907_v22 = vadd.f32 %v1852_v1, %v1327_v13  ;;  %v1947_v42 = vadd.f32 %v8595_v44, %v1908_v17  ;;  %v1352_v17 = vadd.f32 %v7179_v59, %v8578_v56  ;;  %v1346_v13 = vpop.f32.mrf.mxu1 }
 0x12f   :  { %v7240_v39 = vpop.f32.mrf.mxu0  ;;  %v2751_v29 = vrot.slane %v8843_v62, 7  ;;  %v8888_v43 = vsel %vm1387_vm7, %v2748_v47, %v2749_v3  ;;  %v2753_v47 = vrot.slane %v8858_v36, 7 }
 0x130   :  { %v2752_v49 = vrot.slane %v8853_v19, 7  ;;  %v1910_v26 = vadd.f32 %v7240_v39, %v1342_v55  ;;  %7336 = vmatprep.mubr.msk.f32.mxu0 %vm2085_vm12, %v8853_v19  ;;  %v1946_v48 = vadd.f32 %v8595_v44, %v1907_v22  ;;  %v8890_v28 = vmax.f32 %v1947_v42, 0.0 }
 0x131   :  { %v1862_v25 = vpop.f32.mrf.mxu0  ;;  %7337 = vmatmul.mubr.msk.f32.gmra.mxu0 %vm2085_vm12, %v8858_v36 }
 0x132   :  { %v1949_v1 = vadd.f32 %v8595_v44, %v1910_v26  ;;  %v1909_v55 = vadd.f32 %v1862_v25, %v1337_v16  ;;  %v8884_v22 = vmax.f32 %v1946_v48, 0.0  ;;  %v1347_v26 = vadd.f32 %v1346_v13, %v8582_v58 }
 0x133   :  { %v7243_v39 = vpop.f32.mrf.mxu0  ;;  %v8898_v48 = vsel %vm1387_vm7, %v2749_v3, %v2750_v32  ;;  %v8902_v25 = vsel %vm1387_vm7, %v2750_v32, %v2751_v29  ;;  %v8906_v42 = vsel %vm1387_vm7, %v2751_v29, %v2752_v49  ;;  %v8922_v32 = vsel %vm1387_vm7, %v2752_v49, %v2753_v47 }
 0x134   :  { %v1948_v56 = vadd.f32 %v8595_v44, %v1909_v55  ;;  %v1912_v59 = vadd.f32 %v7243_v39, %v1352_v17  ;;  %7339 = vmatprep.mubr.msk.f32.mxu0 %vm2085_vm12, %v8884_v22  ;;  %10971 = vst [vmem:[#allocation17_spill] sm:$0xff] %v8902_v25  ;;  %10972 = vst [vmem:[#allocation18_spill] sm:$0xff] %v8906_v42  ;;  %v8909_v17 = vmax.f32 %v1949_v1, 0.0  ;;  %v2754_v1 = vrot.slane %v8884_v22, 7 }
 0x135   :  { %v1872_v16 = vpop.f32.mrf.mxu0  ;;  %7340 = vmatmul.mubr.msk.f32.gmra.mxu0 %vm2085_vm12, %v8890_v28  ;;  %10973 = vst [vmem:[#allocation19_spill] sm:$0xff] %v8922_v32  ;;  %v1987_v29 = vrot.slane %v8601_v7, 6  ;;  %v2755_v39 = vrot.slane %v8890_v28, 7  ;;  %v1989_v49 = vrot.slane %v8621_v61, 6 }
 0x136   :  { %v8911_v58 = vmax.f32 %v1948_v56, 0.0  ;;  %v1951_v13 = vadd.f32 %v8595_v44, %v1912_v59  ;;  %v1911_v3 = vadd.f32 %v1872_v16, %v1347_v26  ;;  %v2757_v26 = vrot.slane %v8909_v17, 7 }
 0x137   :  { %v8939_v42 = vsel %vm1387_vm7, %v2753_v47, %v2754_v1  ;;  %v1988_v16 = vrot.slane %v8599_v54, 6 }
 0x138   :  { %v8916_v55 = vmax.f32 %v1951_v13, 0.0  ;;  %7342 = vmatprep.mubr.msk.f32.mxu0 %vm2085_vm12, %v8911_v58  ;;  %v1950_v56 = vadd.f32 %v8595_v44, %v1911_v3  ;;  %v2756_v59 = vrot.slane %v8911_v58, 7  ;;  %v8943_v44 = vsel %vm1387_vm7, %v2754_v1, %v2755_v39 }
 0x139   :  { %7343 = vmatmul.mubr.msk.f32.gmra.mxu0 %vm2085_vm12, %v8909_v17 }
 0x13a   :  { %v2759_v13 = vrot.slane %v8916_v55, 7  ;;  %v8935_v32 = vmax.f32 %v1950_v56, 0.0  ;;  %v8947_v3 = vsel %vm1387_vm7, %v2755_v39, %v2756_v59  ;;  %v10974_v25 = vrot.slane %v8916_v55, 6 }
 0x13b   :  { %v10975_v56 = vrot.slane %v8601_v7, 7  ;;  %v8962_v1 = vsel %vm1387_vm7, %v2756_v59, %v2757_v26  ;;  %v2049_v7 = vsel %vm536_vm1, %v1987_v29, %v1988_v16  ;;  %v2048_v59 = vsel %vm536_vm1, %v1988_v16, %v1989_v49 }
 0x13c   :  { %v2050_v61 = vsel %vm536_vm1, %v10974_v25, %v1987_v29  ;;  %7345 = vmatprep.mubr.msk.f32.mxu0 %vm2085_vm12, %v8935_v32  ;;  %v2758_v39 = vrot.slane %v8935_v32, 7  ;;  %v6310_v25 = vld [vmem:[%s10917_s3 + $0x10] sm:$0xff] }
 0x13d   :  { %v8958_v47 = vsel %vm1387_vm7, %v2759_v13, %v10975_v56  ;;  %v2051_v54 = vsel %vm569_vm2, %v2050_v61, 0.0  ;;  %7346 = vmatmul.mubr.msk.f32.gmra.mxu0 %vm2085_vm12, %v8916_v55  ;;  %v1991_v61 = vrot.slane %v8639_v20, 6  ;;  %v7801_v56 = vld [vmem:[%s10916_s0] sm:$0xff] }
 0x13e   :  { %7248 = vmatprep.mubr.msk.f32.mxu1 %vm2085_vm12, %v2051_v54  ;;  %7416 = vmatprep.mubr.msk.f32.mxu0 %vm705_vm3, %v7801_v56  ;;  %v8987_v29 = vsel %vm1387_vm7, %v2757_v26, %v2758_v39  ;;  %v1990_v54 = vrot.slane %v8619_v15, 6  ;;  %v8994_v16 = vsel %vm1387_vm7, %v2758_v39, %v2759_v13  ;;  %v7802_v26 = vld [vmem:[%s10916_s0 + $0x8] sm:$0xff]  ;;  %v1993_v15 = vrot.slane %v8672_v23, 6  ;;  %v7803_v13 = vld [vmem:[%s10916_s0 + $0x10] sm:$0xff]  ;;  %v7804_v23 = vld [vmem:[%s10916_s0 + $0x18] sm:$0xff] }
 0x13f   :  { %7249 = vmatmul.mubr.msk.f32.vlgmr.msra.gmra.mxu1 %vm2085_vm12, %v2049_v7  ;;  %v1995_v39 = vrot.slane %v8695_v35, 6  ;;  %v1994_v7 = vrot.slane %v8670_v24, 6  ;;  %v7805_v35 = vld [vmem:[%s10916_s0 + $0x20] sm:$0xff] }
 0x140   :  { %7251 = vmatprep.mubr.msk.f32.mxu1 %vm2085_vm12, %v2048_v59  ;;  %7349 = vmatpush3.msra.mxu1 %v8532_v30  ;;  %v2047_v20 = vsel %vm536_vm1, %v1989_v49, %v1990_v54  ;;  %v2046_v30 = vsel %vm536_vm1, %v1990_v54, %v1991_v61  ;;  %v1992_v49 = vrot.slane %v8644_v57, 6  ;;  %v1997_v54 = vrot.slane %v8720_v60, 6 }
 0x141   :  { %7350 = vmatprep.subr.mxu1 %v6310_v25  ;;  %7417 = vmatmul.mubr.msk.f32.vlgmr.msra.gmra.mxu0 %vm705_vm3, %v7802_v26  ;;  %v2042_v24 = vsel %vm536_vm1, %v1994_v7, %v1995_v39  ;;  %v2043_v59 = vsel %vm536_vm1, %v1993_v15, %v1994_v7  ;;  %v1996_v26 = vrot.slane %v8700_v2, 6  ;;  %v7809_v2 = vld [vmem:[%s10916_s0 + $0x40] sm:$0xff]  ;;  %v7810_v7 = vld [vmem:[%s10916_s0 + $0x48] sm:$0xff] }
 0x142   :  { %7351 = vmatpush3.msra.mxu1 %v6310_v25  ;;  %7419 = vmatprep.mubr.msk.f32.mxu0 %vm705_vm3, %v7803_v13  ;;  %v2045_v25 = vsel %vm536_vm1, %v1991_v61, %v1992_v49  ;;  %v2044_v57 = vsel %vm536_vm1, %v1992_v49, %v1993_v15  ;;  %v7806_v61 = vld [vmem:[%s10916_s0 + $0x28] sm:$0xff]  ;;  %v2059_v56 = vsel %vm577_vm5, %v2042_v24, 0.0  ;;  %v7808_v15 = vld [vmem:[%s10916_s0 + $0x38] sm:$0xff]  ;;  %v1999_v13 = vrot.slane %v8738_v34, 6 }
 0x143   :  { %7252 = vmatmul.mubr.msk.f32.gmra.mxu1 %vm2085_vm12, %v2047_v20  ;;  %v7807_v20 = vld [vmem:[%s10916_s0 + $0x30] sm:$0xff]  ;;  %v2040_v60 = vsel %vm536_vm1, %v1996_v26, %v1997_v54  ;;  %v1998_v49 = vrot.slane %v8722_v46, 6 }
 0x144   :  { %7254 = vmatprep.mubr.msk.f32.mxu1 %vm2085_vm12, %v2046_v30  ;;  %v2041_v30 = vsel %vm536_vm1, %v1995_v39, %v1996_v26  ;;  %v7811_v46 = vld [vmem:[%s10916_s0 + $0x50] sm:$0xff]  ;;  %v2004_v26 = vrot.slane %v8782_v27, 6  ;;  %v7817_v27 = vld [vmem:[%s10916_s0 + $0x80] sm:$0xff] }
 0x145   :  { %7420 = vmatmul.mubr.msk.f32.gmra.mxu0 %vm705_vm3, %v7804_v23  ;;  %v2039_v39 = vsel %vm536_vm1, %v1997_v54, %v1998_v49  ;;  %v2038_v34 = vsel %vm536_vm1, %v1998_v49, %v1999_v13  ;;  %v2000_v23 = vrot.slane %v8743_v45, 6  ;;  %v2005_v54 = vrot.slane %v8799_v21, 6  ;;  %v7818_v49 = vld [vmem:[%s10916_s0 + $0x88] sm:$0xff] }
 0x146   :  { %7422 = vmatprep.mubr.msk.f32.mxu0 %vm705_vm3, %v7805_v35  ;;  %v2002_v35 = vrot.slane %v8755_v11, 6 }
 0x147   :  { %7255 = vmatmul.mubr.msk.f32.gmra.mxu1 %vm2085_vm12, %v2045_v25  ;;  %v2001_v25 = vrot.slane %v8757_v38, 6  ;;  %v2037_v24 = vsel %vm536_vm1, %v1999_v13, %v2000_v23  ;;  %v7812_v38 = vld [vmem:[%s10916_s0 + $0x58] sm:$0xff]  ;;  %v2032_v21 = vsel %vm536_vm1, %v2004_v26, %v2005_v54  ;;  %v2006_v13 = vrot.slane %v8801_v8, 6  ;;  %v7819_v8 = vld [vmem:[%s10916_s0 + $0x90] sm:$0xff] }
 0x148   :  { %7257 = vmatprep.mubr.msk.f32.mxu1 %vm2085_vm12, %v2044_v57  ;;  %v2003_v57 = vrot.slane %v8777_v5, 6  ;;  %v7813_v5 = vld [vmem:[%s10916_s0 + $0x60] sm:$0xff] }
 0x149   :  { %7423 = vmatmul.mubr.msk.f32.gmra.mxu0 %vm705_vm3, %v7806_v61  ;;  %v2036_v45 = vsel %vm536_vm1, %v2000_v23, %v2001_v25  ;;  %v7814_v61 = vld [vmem:[%s10916_s0 + $0x68] sm:$0xff] }
 0x14a   :  { %7425 = vmatprep.mubr.msk.f32.mxu0 %vm705_vm3, %v7807_v20  ;;  %v2034_v11 = vsel %vm536_vm1, %v2002_v35, %v2003_v57  ;;  %v7815_v20 = vld [vmem:[%s10916_s0 + $0x70] sm:$0xff] }
 0x14b   :  { %7258 = vmatmul.mubr.msk.f32.gmra.mxu1 %vm2085_vm12, %v2043_v59  ;;  %v2035_v59 = vsel %vm536_vm1, %v2001_v25, %v2002_v35  ;;  %v2010_v25 = vrot.slane %v8843_v62, 6 }
 0x14c   :  { %7260 = vmatprep.mubr.msk.f32.mxu1 %vm2085_vm12, %v2059_v56  ;;  %v2067_v56 = vsel %vm585_vm6, %v2034_v11, 0.0  ;;  %v7824_v11 = vld [vmem:[%s10916_s0 + $0xb8] sm:$0xff] }
 0x14d   :  { %7426 = vmatmul.mubr.msk.f32.gmra.mxu0 %vm705_vm3, %v7808_v15  ;;  %v7816_v15 = vld [vmem:[%s10916_s0 + $0x78] sm:$0xff] }
 0x14e   :  { %7428 = vmatprep.mubr.msk.f32.mxu0 %vm705_vm3, %v7809_v2  ;;  %v2031_v2 = vsel %vm536_vm1, %v2005_v54, %v2006_v13  ;;  %v7826_v54 = vld [vmem:[%s10916_s0 + $0xc8] sm:$0xff] }
 0x14f   :  { %7261 = vmatmul.mubr.msk.f32.gmra.mxu1 %vm2085_vm12, %v2041_v30  ;;  %v2033_v30 = vsel %vm536_vm1, %v2003_v57, %v2004_v26  ;;  %v7822_v57 = vld [vmem:[%s10916_s0 + $0xa8] sm:$0xff]  ;;  %v2016_v26 = vrot.slane %v8909_v17, 6  ;;  %v7829_v17 = vld [vmem:[%s10916_s0 + $0xe0] sm:$0xff] }
 0x150   :  { %7263 = vmatprep.mubr.msk.f32.mxu1 %vm2085_vm12, %v2040_v60  ;;  %v2007_v60 = vrot.slane %v8817_v53, 6 }
 0x151   :  { %7429 = vmatmul.mubr.msk.f32.gmra.mxu0 %vm705_vm3, %v7810_v7  ;;  %v2008_v7 = vrot.slane %v8823_v31, 6 }
 0x152   :  { %7431 = vmatprep.mubr.msk.f32.mxu0 %vm705_vm3, %v7811_v46  ;;  %v2030_v53 = vsel %vm536_vm1, %v2006_v13, %v2007_v60  ;;  %v2792_v13 = vsel %vm1420_vm8, %v8958_v47, 0.0  ;;  %v10977_v47 = vld [vmem:[#allocation7_spill] sm:$0xff] }
 0x153   :  { %7264 = vmatmul.mubr.msk.f32.gmra.mxu1 %vm2085_vm12, %v2039_v39  ;;  %v2009_v39 = vrot.slane %v8840_v10, 6  ;;  %v2029_v46 = vsel %vm536_vm1, %v2007_v60, %v2008_v7  ;;  %v7820_v10 = vld [vmem:[%s10916_s0 + $0x98] sm:$0xff] }
 0x154   :  { %7266 = vmatprep.mubr.msk.f32.mxu1 %vm2085_vm12, %v2038_v34  ;;  %v2011_v34 = vrot.slane %v8853_v19, 6  ;;  %v7821_v19 = vld [vmem:[%s10916_s0 + $0xa0] sm:$0xff] }
 0x155   :  { %7432 = vmatmul.mubr.msk.f32.gmra.mxu0 %vm705_vm3, %v7812_v38  ;;  %v2028_v31 = vsel %vm536_vm1, %v2008_v7, %v2009_v39  ;;  %v2027_v23 = vsel %vm536_vm1, %v2009_v39, %v2010_v25  ;;  %v7823_v38 = vld [vmem:[%s10916_s0 + $0xb0] sm:$0xff] }
 0x156   :  { %7434 = vmatprep.mubr.msk.f32.mxu0 %vm705_vm3, %v7813_v5  ;;  %v2026_v62 = vsel %vm536_vm1, %v2010_v25, %v2011_v34  ;;  %v10987_v7 = vld [vmem:[#allocation17_spill] sm:$0xff] }
 0x157   :  { %7267 = vmatmul.mubr.msk.f32.gmra.mxu1 %vm2085_vm12, %v2037_v24  ;;  %v2075_v35 = vsel %vm593_vm4, %v2026_v62, 0.0  ;;  %v2013_v24 = vrot.slane %v8884_v22, 6 }
 0x158   :  { %7269 = vmatprep.mubr.msk.f32.mxu1 %vm2085_vm12, %v2036_v45  ;;  %v2012_v45 = vrot.slane %v8858_v36, 6  ;;  %v7825_v36 = vld [vmem:[%s10916_s0 + $0xc0] sm:$0xff] }
 0x159   :  { %7435 = vmatmul.mubr.msk.f32.gmra.mxu0 %vm705_vm3, %v7814_v61  ;;  %v2014_v61 = vrot.slane %v8890_v28, 6  ;;  %v7827_v28 = vld [vmem:[%s10916_s0 + $0xd0] sm:$0xff] }
 0x15a   :  { %7437 = vmatprep.mubr.msk.f32.mxu0 %vm705_vm3, %v7815_v20  ;;  %v2025_v5 = vsel %vm536_vm1, %v2011_v34, %v2012_v45  ;;  %v2024_v22 = vsel %vm536_vm1, %v2012_v45, %v2013_v24  ;;  %v2017_v20 = vrot.slane %v8935_v32, 6  ;;  %v10988_v34 = vld [vmem:[#allocation18_spill] sm:$0xff] }
 0x15b   :  { %7270 = vmatmul.mubr.msk.f32.gmra.mxu1 %vm2085_vm12, %v2035_v59  ;;  %v2015_v59 = vrot.slane %v8911_v58, 6  ;;  %v2816_v25 = vsel %vm1444_vm11, %v10988_v34, 0.0 }
 0x15c   :  { %7272 = vmatprep.mubr.msk.f32.mxu1 %vm2085_vm12, %v2067_v56  ;;  %v2023_v56 = vsel %vm536_vm1, %v2013_v24, %v2014_v61  ;;  %v2020_v32 = vsel %vm536_vm1, %v2016_v26, %v2017_v20 }
 0x15d   :  { %7438 = vmatmul.mubr.msk.f32.gmra.mxu0 %vm705_vm3, %v7816_v15  ;;  %v2022_v58 = vsel %vm536_vm1, %v2014_v61, %v2015_v59  ;;  %v7828_v15 = vld [vmem:[%s10916_s0 + $0xd8] sm:$0xff] }
 0x15e   :  { %7440 = vmatprep.mubr.msk.f32.mxu0 %vm705_vm3, %v7817_v27  ;;  %v7830_v27 = vld [vmem:[%s10916_s0 + $0xe8] sm:$0xff] }
 0x15f   :  { %7273 = vmatmul.mubr.msk.f32.gmra.mxu1 %vm2085_vm12, %v2033_v30  ;;  %v2021_v30 = vsel %vm536_vm1, %v2015_v59, %v2016_v26 }
 0x160   :  { %7275 = vmatprep.mubr.msk.f32.mxu1 %vm2085_vm12, %v2032_v21  ;;  %v10976_v21 = vrot.slane %v8916_v55, 6  ;;  %v7832_v55 = vld [vmem:[%s10916_s0 + $0xf8] sm:$0xff] }
 0x161   :  { %7441 = vmatmul.mubr.msk.f32.gmra.mxu0 %vm705_vm3, %v7818_v49  ;;  %v10984_v49 = vld [vmem:[#allocation14_spill] sm:$0xff] }
 0x162   :  { %7443 = vmatprep.mubr.msk.f32.mxu0 %vm705_vm3, %v7819_v8  ;;  %v2019_v60 = vsel %vm536_vm1, %v2017_v20, %v10976_v21  ;;  %v10986_v8 = vld [vmem:[#allocation16_spill] sm:$0xff] }
 0x163   :  { %7276 = vmatmul.mubr.msk.f32.gmra.mxu1 %vm2085_vm12, %v2031_v2  ;;  %v7831_v2 = vld [vmem:[%s10916_s0 + $0xf0] sm:$0xff] }
 0x164   :  { %7278 = vmatprep.mubr.msk.f32.mxu1 %vm2085_vm12, %v2030_v53  ;;  %v10985_v53 = vld [vmem:[#allocation15_spill] sm:$0xff] }
 0x165   :  { %7444 = vmatmul.mubr.msk.f32.gmra.mxu0 %vm705_vm3, %v7820_v10  ;;  %v2808_v39 = vsel %vm1436_vm10, %v10985_v53, 0.0  ;;  %v6379_v10 = vld [vmem:[%s10920_s7 + $0x20] sm:$0xff] }
 0x166   :  { %7446 = vmatprep.mubr.msk.f32.mxu0 %vm705_vm3, %v7821_v19 }
 0x167   :  { %7279 = vmatmul.mubr.msk.f32.gmra.mxu1 %vm2085_vm12, %v2029_v46  ;;  %v3755_v46 = vld [vmem:[%s10920_s7 + $0x8] sm:$0xff] }
 0x168   :  { %7281 = vmatprep.mubr.msk.f32.mxu1 %vm2085_vm12, %v2028_v31  ;;  %7464 = vmatprep.subr.mxu1 %v3755_v46 }
 0x169   :  { %7447 = vmatmul.mubr.msk.f32.gmra.mxu0 %vm705_vm3, %v7822_v57 }
 0x16a   :  { %7449 = vmatprep.mubr.msk.f32.mxu0 %vm705_vm3, %v7823_v38 }
 0x16b   :  { %7282 = vmatmul.mubr.msk.f32.gmra.mxu1 %vm2085_vm12, %v2027_v23 }
 0x16c   :  { %7284 = vmatprep.mubr.msk.f32.mxu1 %vm2085_vm12, %v2075_v35 }
 0x16d   :  { %7450 = vmatmul.mubr.msk.f32.gmra.mxu0 %vm705_vm3, %v7824_v11 }
 0x16e   :  { %7452 = vmatprep.mubr.msk.f32.mxu0 %vm705_vm3, %v7825_v36 }
 0x16f   :  { %7285 = vmatmul.mubr.msk.f32.gmra.mxu1 %vm2085_vm12, %v2025_v5 }
 0x170   :  { %7287 = vmatprep.mubr.msk.f32.mxu1 %vm2085_vm12, %v2024_v22 }
 0x171   :  { %7453 = vmatmul.mubr.msk.f32.gmra.mxu0 %vm705_vm3, %v7826_v54  ;;  %v3754_v54 = vld [vmem:[%s10920_s7] sm:$0xff] }
 0x172   :  { %7455 = vmatprep.mubr.msk.f32.mxu0 %vm705_vm3, %v7827_v28 }
 0x173   :  { %7288 = vmatmul.mubr.msk.f32.gmra.mxu1 %vm2085_vm12, %v2023_v56 }
 0x174   :  { %7290 = vmatprep.mubr.msk.f32.mxu1 %vm2085_vm12, %v2022_v58 }
 0x175   :  { %7456 = vmatmul.mubr.msk.f32.gmra.mxu0 %vm705_vm3, %v7828_v15 }
 0x176   :  { %7458 = vmatprep.mubr.msk.f32.mxu0 %vm705_vm3, %v7829_v17 }
 0x177   :  { %7291 = vmatmul.mubr.msk.f32.gmra.mxu1 %vm2085_vm12, %v2021_v30 }
 0x178   :  { %7293 = vmatprep.mubr.msk.f32.mxu1 %vm2085_vm12, %v2020_v32 }
 0x179   :  { %7459 = vmatmul.mubr.msk.f32.gmra.mxu0 %vm705_vm3, %v7830_v27 }
 0x17a   :  { %7461 = vmatprep.mubr.msk.f32.mxu0 %vm705_vm3, %v7831_v2 }
 0x17b   :  { %7294 = vmatmul.mubr.msk.f32.gmra.mxu1 %vm2085_vm12, %v2019_v60 }
 0x17c   :  { %7352 = vmatprep.mubr.msk.f32.mxu1 %vm2085_vm12, %v2792_v13 }
 0x17d   :  { %7462 = vmatmul.mubr.msk.f32.gmra.mxu0 %vm705_vm3, %v7832_v55 }
 0x17f   :  { %7353 = vmatmul.mubr.msk.f32.vlgmr.msra.gmra.mxu1 %vm2085_vm12, %v8628_v41  ;;  %v2800_v41 = vsel %vm1428_vm9, %v10977_v47, 0.0 }
 0x180   :  { %7355 = vmatprep.mubr.msk.f32.mxu1 %vm2085_vm12, %v8655_v33  ;;  %v10978_v33 = vld [vmem:[#allocation8_spill] sm:$0xff]  ;;  %7465 = vmatpush3.msra.mxu1 %v3755_v46 }
 0x181   :  { %7466 = vmatprep.subr.mxu1 %v3754_v54 }
 0x182   :  { %7467 = vmatpush3.msra.mxu1 %v3754_v54 }
 0x183   :  { %7356 = vmatmul.mubr.msk.f32.gmra.mxu1 %vm2085_vm12, %v8663_v50  ;;  %v10979_v50 = vld [vmem:[#allocation9_spill] sm:$0xff] }
 0x184   :  { %7358 = vmatprep.mubr.msk.f32.mxu1 %vm2085_vm12, %v8681_v18  ;;  %v10980_v18 = vld [vmem:[#allocation10_spill] sm:$0xff] }
 0x187   :  { %7359 = vmatmul.mubr.msk.f32.gmra.mxu1 %vm2085_vm12, %v8691_v6  ;;  %v10981_v6 = vld [vmem:[#allocation11_spill] sm:$0xff] }
 0x188   :  { %7361 = vmatprep.mubr.msk.f32.mxu1 %vm2085_vm12, %v8710_v14  ;;  %v10982_v14 = vld [vmem:[#allocation12_spill] sm:$0xff] }
 0x18b   :  { %7362 = vmatmul.mubr.msk.f32.gmra.mxu1 %vm2085_vm12, %v8714_v12  ;;  %v10983_v12 = vld [vmem:[#allocation13_spill] sm:$0xff] }
 0x18c   :  { %7364 = vmatprep.mubr.msk.f32.mxu1 %vm2085_vm12, %v2800_v41 }
 0x18f   :  { %7365 = vmatmul.mubr.msk.f32.gmra.mxu1 %vm2085_vm12, %v10978_v33 }
 0x190   :  { %7367 = vmatprep.mubr.msk.f32.mxu1 %vm2085_vm12, %v10979_v50  ;;  %v9402_v50 = vld [vmem:[%s10920_s7 + $0x18] sm:$0xff] }
 0x191   :  { %11005 = vst [vmem:[#allocation22_spill] sm:$0xff] %v9402_v50  ;;  %7568 = vmatprep.subr.mxu1 %v9402_v50 }
 0x193   :  { %7368 = vmatmul.mubr.msk.f32.gmra.mxu1 %vm2085_vm12, %v10980_v18 }
 0x194   :  { %7370 = vmatprep.mubr.msk.f32.mxu1 %vm2085_vm12, %v10981_v6 }
 0x197   :  { %7371 = vmatmul.mubr.msk.f32.gmra.mxu1 %vm2085_vm12, %v10982_v14 }
 0x198   :  { %7373 = vmatprep.mubr.msk.f32.mxu1 %vm2085_vm12, %v10983_v12 }
 0x19b   :  { %7374 = vmatmul.mubr.msk.f32.gmra.mxu1 %vm2085_vm12, %v10984_v49 }
 0x19c   :  { %7376 = vmatprep.mubr.msk.f32.mxu1 %vm2085_vm12, %v2808_v39 }
 0x19f   :  { %7377 = vmatmul.mubr.msk.f32.gmra.mxu1 %vm2085_vm12, %v10986_v8 }
 0x1a0   :  { %7379 = vmatprep.mubr.msk.f32.mxu1 %vm2085_vm12, %v8869_v0  ;;  %v10989_v0 = vld [vmem:[#allocation19_spill] sm:$0xff] }
 0x1a3   :  { %7380 = vmatmul.mubr.msk.f32.gmra.mxu1 %vm2085_vm12, %v8873_v52 }
 0x1a4   :  { %7382 = vmatprep.mubr.msk.f32.mxu1 %vm2085_vm12, %v8877_v40 }
 0x1a7   :  { %7383 = vmatmul.mubr.msk.f32.gmra.mxu1 %vm2085_vm12, %v8888_v43 }
 0x1a8   :  { %7385 = vmatprep.mubr.msk.f32.mxu1 %vm2085_vm12, %v8898_v48 }
 0x1ab   :  { %7386 = vmatmul.mubr.msk.f32.gmra.mxu1 %vm2085_vm12, %v10987_v7 }
 0x1ac   :  { %7388 = vmatprep.mubr.msk.f32.mxu1 %vm2085_vm12, %v2816_v25 }
 0x1af   :  { %7389 = vmatmul.mubr.msk.f32.gmra.mxu1 %vm2085_vm12, %v10989_v0 }
 0x1b0   :  { %7391 = vmatprep.mubr.msk.f32.mxu1 %vm2085_vm12, %v8939_v42 }
 0x1b3   :  { %7392 = vmatmul.mubr.msk.f32.gmra.mxu1 %vm2085_vm12, %v8943_v44 }
 0x1b4   :  { %7394 = vmatprep.mubr.msk.f32.mxu1 %vm2085_vm12, %v8947_v3 }
 0x1b7   :  { %7395 = vmatmul.mubr.msk.f32.gmra.mxu1 %vm2085_vm12, %v8962_v1 }
 0x1b8   :  { %7397 = vmatprep.mubr.msk.f32.mxu1 %vm2085_vm12, %v8987_v29  ;;  %v6380_v29 = vld [vmem:[%s10920_s7 + $0x28] sm:$0xff] }
 0x1b9   :  { %7516 = vmatprep.subr.mxu0 %v6380_v29 }
 0x1ba   :  { %7517 = vmatpush3.msra.mxu0 %v6380_v29 }
 0x1bb   :  { %7398 = vmatmul.mubr.msk.f32.gmra.mxu1 %vm2085_vm12, %v8994_v16  ;;  %7518 = vmatprep.subr.mxu0 %v6379_v10 }
 0x1bc   :  { %7519 = vmatpush3.msra.mxu0 %v6379_v10 }
 0x1c1   :  { %v9313_v52 = vpop.f32.mrf.mxu0 }
 0x1c3   :  { %v9315_v40 = vpop.f32.mrf.mxu0 }
 0x1c5   :  { %v9317_v43 = vpop.f32.mrf.mxu0 }
 0x1c7   :  { %v9319_v48 = vpop.f32.mrf.mxu0 }
 0x1c9   :  { %v9321_v42 = vpop.f32.mrf.mxu0 }
 0x1cb   :  { %v9323_v44 = vpop.f32.mrf.mxu0 }
 0x1cd   :  { %v9325_v3 = vpop.f32.mrf.mxu0 }
 0x1cf   :  { %v9327_v1 = vpop.f32.mrf.mxu0 }
 0x1d1   :  { %v9332_v16 = vpop.f32.mrf.mxu0 }
 0x1d3   :  { %v9340_v31 = vpop.f32.mrf.mxu0 }
 0x1d5   :  { %v9342_v19 = vpop.f32.mrf.mxu0 }
 0x1d7   :  { %v9344_v62 = vpop.f32.mrf.mxu0 }
 0x1d9   :  { %v9346_v23 = vpop.f32.mrf.mxu0 }
 0x1db   :  { %v9348_v57 = vpop.f32.mrf.mxu0 }
 0x1dd   :  { %v9350_v35 = vpop.f32.mrf.mxu0 }
 0x1df   :  { %v9352_v24 = vpop.f32.mrf.mxu0 }
 0x1e1   :  { %v9354_v38 = vpop.f32.mrf.mxu0 }
 0x1e3   :  { %v9356_v45 = vpop.f32.mrf.mxu0 }
 0x1e4   :  { %10990 = vst [vmem:[#allocation7_spill] sm:$0xff] %v9356_v45 }
 0x1e5   :  { %v9358_v5 = vpop.f32.mrf.mxu0 }
 0x1e6   :  { %10991 = vst [vmem:[#allocation8_spill] sm:$0xff] %v9358_v5 }
 0x1e7   :  { %v9360_v11 = vpop.f32.mrf.mxu0 }
 0x1e8   :  { %10992 = vst [vmem:[#allocation9_spill] sm:$0xff] %v9360_v11 }
 0x1e9   :  { %v9362_v22 = vpop.f32.mrf.mxu0 }
 0x1ea   :  { %10993 = vst [vmem:[#allocation10_spill] sm:$0xff] %v9362_v22 }
 0x1eb   :  { %v9364_v59 = vpop.f32.mrf.mxu0 }
 0x1ec   :  { %10994 = vst [vmem:[#allocation11_spill] sm:$0xff] %v9364_v59 }
 0x1ed   :  { %v9366_v36 = vpop.f32.mrf.mxu0 }
 0x1ee   :  { %10995 = vst [vmem:[#allocation12_spill] sm:$0xff] %v9366_v36 }
 0x1ef   :  { %v9368_v61 = vpop.f32.mrf.mxu0 }
 0x1f0   :  { %10996 = vst [vmem:[#allocation13_spill] sm:$0xff] %v9368_v61 }
 0x1f1   :  { %v9370_v56 = vpop.f32.mrf.mxu0 }
 0x1f2   :  { %10997 = vst [vmem:[#allocation14_spill] sm:$0xff] %v9370_v56 }
 0x1f3   :  { %v9375_v58 = vpop.f32.mrf.mxu0 }
 0x1f4   :  { %10998 = vst [vmem:[#allocation15_spill] sm:$0xff] %v9375_v58 }
 0x1f5   :  { %v9377_v20 = vpop.f32.mrf.mxu0 }
 0x1f6   :  { %10999 = vst [vmem:[#allocation16_spill] sm:$0xff] %v9377_v20 }
 0x1f7   :  { %v9379_v28 = vpop.f32.mrf.mxu0 }
 0x1f8   :  { %11000 = vst [vmem:[#allocation17_spill] sm:$0xff] %v9379_v28 }
 0x1f9   :  { %v9381_v26 = vpop.f32.mrf.mxu0 }
 0x1fa   :  { %11001 = vst [vmem:[#allocation18_spill] sm:$0xff] %v9381_v26 }
 0x1fb   :  { %v9383_v30 = vpop.f32.mrf.mxu0 }
 0x1fc   :  { %11002 = vst [vmem:[#allocation19_spill] sm:$0xff] %v9383_v30 }
 0x1fd   :  { %v9385_v15 = vpop.f32.mrf.mxu0 }
 0x1fe   :  { %11003 = vst [vmem:[#allocation20_spill] sm:$0xff] %v9385_v15 }
 0x1ff   :  { %v7250_v32 = vpop.f32.mrf.mxu1  ;;  %v9387_v17 = vpop.f32.mrf.mxu0 }
 0x200   :  { %11004 = vst [vmem:[#allocation21_spill] sm:$0xff] %v9387_v17 }
 0x201   :  { %v2248_v21 = vpop.f32.mrf.mxu1  ;;  %v7418_v60 = vpop.f32.mrf.mxu0 }
 0x203   :  { %v7253_v27 = vpop.f32.mrf.mxu1  ;;  %v9389_v2 = vpop.f32.mrf.mxu0 }
 0x205   :  { %v2258_v13 = vpop.f32.mrf.mxu1  ;;  %v9395_v41 = vpop.f32.mrf.mxu0 }
 0x207   :  { %v9391_v55 = vpop.f32.mrf.mxu1  ;;  %v9407_v6 = vpop.f32.mrf.mxu0 }
 0x209   :  { %v9393_v47 = vpop.f32.mrf.mxu1  ;;  %v9413_v49 = vpop.f32.mrf.mxu0 }
 0x20b   :  { %v9397_v33 = vpop.f32.mrf.mxu1  ;;  %v9419_v8 = vpop.f32.mrf.mxu0 }
 0x20d   :  { %v9404_v18 = vpop.f32.mrf.mxu1  ;;  %v9425_v25 = vpop.f32.mrf.mxu0 }
 0x20f   :  { %v9409_v14 = vpop.f32.mrf.mxu1  ;;  %v9431_v46 = vpop.f32.mrf.mxu0 }
 0x211   :  { %v9411_v12 = vpop.f32.mrf.mxu1  ;;  %v9437_v51 = vpop.f32.mrf.mxu0 }
 0x213   :  { %v9415_v53 = vpop.f32.mrf.mxu1  ;;  %v9443_v50 = vpop.f32.mrf.mxu0 }
 0x215   :  { %v9417_v39 = vpop.f32.mrf.mxu1  ;;  %v9449_v15 = vpop.f32.mrf.mxu0 }
 0x217   :  { %v9421_v7 = vpop.f32.mrf.mxu1  ;;  %v9455_v28 = vpop.f32.mrf.mxu0 }
 0x219   :  { %v9423_v34 = vpop.f32.mrf.mxu1  ;;  %v9461_v56 = vpop.f32.mrf.mxu0 }
 0x21b   :  { %v9427_v0 = vpop.f32.mrf.mxu1  ;;  %v9467_v59 = vpop.f32.mrf.mxu0 }
 0x21d   :  { %v9429_v29 = vpop.f32.mrf.mxu1 }
 0x21f   :  { %v9433_v10 = vpop.f32.mrf.mxu1 }
 0x221   :  { %v9435_v54 = vpop.f32.mrf.mxu1 }
 0x223   :  { %v9439_v37 = vpop.f32.mrf.mxu1 }
 0x224   :  { %11006 = vst [vmem:[#allocation23_spill] sm:$0xff] %v9439_v37 }
 0x225   :  { %v9441_v63 = vpop.f32.mrf.mxu1 }
 0x226   :  { %11007 = vst [vmem:[#allocation24_spill] sm:$0xff] %v9441_v63 }
 0x227   :  { %v9445_v9 = vpop.f32.mrf.mxu1 }
 0x228   :  { %11008 = vst [vmem:[#allocation25_spill] sm:$0xff] %v9445_v9 }
 0x229   :  { %v9447_v17 = vpop.f32.mrf.mxu1 }
 0x22a   :  { %11009 = vst [vmem:[#allocation26_spill] sm:$0xff] %v9447_v17 }
 0x22b   :  { %v9451_v30 = vpop.f32.mrf.mxu1 }
 0x22c   :  { %11010 = vst [vmem:[#allocation27_spill] sm:$0xff] %v9451_v30  ;;  %v9473_v30 = vpop.f32.mrf.mxu0 }
 0x22d   :  { %v9453_v26 = vpop.f32.mrf.mxu1  ;;  %11018 = vst [vmem:[#allocation35_spill] sm:$0xff] %v9473_v30 }
 0x22e   :  { %11011 = vst [vmem:[#allocation28_spill] sm:$0xff] %v9453_v26 }
 0x22f   :  { %v9457_v20 = vpop.f32.mrf.mxu1 }
 0x230   :  { %11012 = vst [vmem:[#allocation29_spill] sm:$0xff] %v9457_v20  ;;  %v9480_v20 = vpop.f32.mrf.mxu0 }
 0x231   :  { %v9459_v58 = vpop.f32.mrf.mxu1  ;;  %11021 = vst [vmem:[#allocation38_spill] sm:$0xff] %v9480_v20  ;;  %v2580_v20 = vadd.f32 %v9319_v48, %v2258_v13 }
 0x232   :  { %11013 = vst [vmem:[#allocation30_spill] sm:$0xff] %v9459_v58  ;;  %v2575_v58 = vadd.f32 %v9313_v52, %v7250_v32  ;;  %v9495_v63 = vpop.f32.mrf.mxu0 }
 0x233   :  { %v9463_v61 = vpop.f32.mrf.mxu1 }
 0x234   :  { %11014 = vst [vmem:[#allocation31_spill] sm:$0xff] %v9463_v61 }
 0x235   :  { %v9465_v36 = vpop.f32.mrf.mxu1 }
 0x236   :  { %11015 = vst [vmem:[#allocation32_spill] sm:$0xff] %v9465_v36  ;;  %v9485_v36 = vld [vmem:[%s10921_s4] ss:$0 sm:$0xff] }
 0x237   :  { %v9469_v17 = vpop.f32.mrf.mxu1 }
 0x238   :  { %11016 = vst [vmem:[#allocation33_spill] sm:$0xff] %v9469_v17  ;;  %v2570_v17 = vadd.f32 %v9315_v40, %v2248_v21 }
 0x239   :  { %v9471_v22 = vpop.f32.mrf.mxu1 }
 0x23a   :  { %11017 = vst [vmem:[#allocation34_spill] sm:$0xff] %v9471_v22  ;;  %v9491_v22 = vld [vmem:[%s10922_s6] ss:$0 sm:$0xff] }
 0x23b   :  { %v9475_v26 = vpop.f32.mrf.mxu1  ;;  %v3341_v5 = vadd.f32 %v7418_v60, %v9491_v22  ;;  %v3351_v48 = vadd.f32 %v9395_v41, %v9491_v22 }
 0x23c   :  { %11019 = vst [vmem:[#allocation36_spill] sm:$0xff] %v9475_v26 }
 0x23d   :  { %v9477_v9 = vpop.f32.mrf.mxu1 }
 0x23e   :  { %11020 = vst [vmem:[#allocation37_spill] sm:$0xff] %v9477_v9  ;;  %v2585_v9 = vadd.f32 %v9317_v43, %v7253_v27  ;;  %v3336_v43 = vadd.f32 %v9491_v22, %v9389_v2 }
 0x23f   :  { %v7354_v11 = vpop.f32.mrf.mxu1 }
 0x240   :  { %v3149_v61 = vadd.f32 %v7354_v11, %v2575_v58 }
 0x241   :  { %v2989_v26 = vpop.f32.mrf.mxu1 }
 0x242   :  { %v3188_v52 = vadd.f32 %v9485_v36, %v3149_v61  ;;  %v3148_v32 = vadd.f32 %v2989_v26, %v2570_v17  ;;  %v9503_v26 = vpop.f32.mrf.mxu0  ;;  %v2595_v17 = vadd.f32 %v9321_v42, %v9391_v55  ;;  %v2605_v42 = vadd.f32 %v9325_v3, %v9397_v33 }
 0x243   :  { %v7357_v37 = vpop.f32.mrf.mxu1  ;;  %v3356_v33 = vadd.f32 %v9491_v22, %v9419_v8 }
 0x244   :  { %v3220_v40 = vmax.f32 %v3188_v52, 0.0  ;;  %v3187_v11 = vadd.f32 %v9485_v36, %v3148_v32  ;;  %v3151_v58 = vadd.f32 %v7357_v37, %v2585_v9  ;;  %v2590_v52 = vadd.f32 %v9323_v44, %v9393_v47 }
 0x245   :  { %v2999_v21 = vpop.f32.mrf.mxu1 }
 0x246   :  { %v3219_v30 = vmax.f32 %v3187_v11, 0.0  ;;  %v3190_v45 = vadd.f32 %v9485_v36, %v3151_v58  ;;  %v3150_v61 = vadd.f32 %v2999_v21, %v2580_v20  ;;  %v3495_v60 = vadd.f32 %v3341_v5, %v3220_v40 }
 0x247   :  { %v7360_v27 = vpop.f32.mrf.mxu1  ;;  %v3346_v20 = vadd.f32 %v9491_v22, %v9407_v6  ;;  %v2600_v6 = vadd.f32 %v9327_v1, %v9404_v18  ;;  %v3371_v1 = vadd.f32 %v9425_v25, %v9491_v22  ;;  %v2615_v18 = vadd.f32 %v9332_v16, %v9409_v14 }
 0x248   :  { %v3222_v13 = vmax.f32 %v3190_v45, 0.0  ;;  %v3494_v9 = vadd.f32 %v3336_v43, %v3219_v30  ;;  %v3189_v37 = vadd.f32 %v9485_v36, %v3150_v61  ;;  %v3153_v32 = vadd.f32 %v7360_v27, %v2595_v17  ;;  %v9520_v30 = vpop.f32.mrf.mxu0 }
 0x249   :  { %v3009_v2 = vpop.f32.mrf.mxu1  ;;  %v3361_v45 = vadd.f32 %v9413_v49, %v9491_v22  ;;  %v9522_v41 = vmax.f32 %v3495_v60, 0.0  ;;  %v2610_v27 = vadd.f32 %v9340_v31, %v9411_v12 }
 0x24a   :  { %v9516_v5 = vmax.f32 %v3494_v9, 0.0  ;;  %v3221_v55 = vmax.f32 %v3189_v37, 0.0  ;;  %v3497_v40 = vadd.f32 %v3351_v48, %v3222_v13  ;;  %v3192_v44 = vadd.f32 %v9485_v36, %v3153_v32  ;;  %v9542_v48 = vpop.f32.mrf.mxu0 }
 0x24b   :  { %v3152_v47 = vadd.f32 %v3009_v2, %v2590_v52  ;;  %v7363_v11 = vpop.f32.mrf.mxu1  ;;  %v4399_v13 = vrot.slane %v9522_v41, 6  ;;  %v3366_v2 = vadd.f32 %v9491_v22, %v9431_v46 }
 0x24c   :  { %v3496_v58 = vadd.f32 %v3346_v20, %v3221_v55  ;;  %v3155_v3 = vadd.f32 %v7363_v11, %v2605_v42  ;;  %7520 = vmatprep.mubr.msk.f32.mxu0 %vm2085_vm12, %v9516_v5  ;;  %v10941_v49 = vrot.slane %v9516_v5, 6  ;;  %v3224_v21 = vmax.f32 %v3192_v44, 0.0  ;;  %v9566_v46 = vpop.f32.mrf.mxu0 }
 0x24d   :  { %v3191_v43 = vadd.f32 %v9485_v36, %v3152_v47  ;;  %v3019_v61 = vpop.f32.mrf.mxu1  ;;  %7521 = vmatmul.mubr.msk.f32.vlgmr.msra.gmra.mxu0 %vm2085_vm12, %v9522_v41  ;;  %v9547_v9 = vmax.f32 %v3497_v40, 0.0  ;;  %v3381_v44 = vadd.f32 %v9437_v51, %v9491_v22  ;;  %v2625_v47 = vadd.f32 %v9342_v19, %v9415_v53 }
 0x24e   :  { %v9539_v17 = vmax.f32 %v3496_v58, 0.0  ;;  %v3194_v8 = vadd.f32 %v9485_v36, %v3155_v3  ;;  %v3154_v60 = vadd.f32 %v3019_v61, %v2600_v6  ;;  %v3499_v25 = vadd.f32 %v3361_v45, %v3224_v21 }
 0x24f   :  { %v3223_v37 = vmax.f32 %v3191_v43, 0.0  ;;  %v7366_v52 = vpop.f32.mrf.mxu1  ;;  %v9560_v31 = vsel %vm536_vm1, %v10941_v49, %v4399_v13  ;;  %v2620_v11 = vadd.f32 %v9344_v62, %v9417_v39  ;;  %v3376_v51 = vadd.f32 %v9491_v22, %v9443_v50 }
 0x250   :  { %v3226_v32 = vmax.f32 %v3194_v8, 0.0  ;;  %v3193_v16 = vadd.f32 %v9485_v36, %v3154_v60  ;;  %v3157_v14 = vadd.f32 %v7366_v52, %v2615_v18  ;;  %7523 = vmatprep.mubr.msk.f32.mxu0 %vm2085_vm12, %v9539_v17  ;;  %v4400_v12 = vrot.slane %v9539_v17, 6  ;;  %v9591_v60 = vpop.f32.mrf.mxu0 }
 0x251   :  { %v3498_v20 = vadd.f32 %v3356_v33, %v3223_v37  ;;  %v3029_v42 = vpop.f32.mrf.mxu1  ;;  %7524 = vmatmul.mubr.msk.f32.gmra.mxu0 %vm2085_vm12, %v9547_v9  ;;  %v9574_v33 = vmax.f32 %v3499_v25, 0.0  ;;  %v2635_v53 = vadd.f32 %v9346_v23, %v9421_v7  ;;  %v4401_v50 = vrot.slane %v9547_v9, 6 }
 0x252   :  { %v3225_v55 = vmax.f32 %v3193_v16, 0.0  ;;  %v3196_v45 = vadd.f32 %v9485_v36, %v3157_v14  ;;  %v3156_v40 = vadd.f32 %v3029_v42, %v2610_v27  ;;  %v3501_v58 = vadd.f32 %v3371_v1, %v3226_v32 }
 0x253   :  { %v9572_v6 = vmax.f32 %v3498_v20, 0.0  ;;  %v7369_v3 = vpop.f32.mrf.mxu1  ;;  %v9583_v62 = vsel %vm536_vm1, %v4399_v13, %v4400_v12  ;;  %v3391_v13 = vadd.f32 %v9449_v15, %v9491_v22  ;;  %v2630_v16 = vadd.f32 %v9348_v57, %v9423_v34  ;;  %v9618_v57 = vpop.f32.mrf.mxu0 }
 0x254   :  { %v3228_v21 = vmax.f32 %v3196_v45, 0.0  ;;  %v3500_v43 = vadd.f32 %v3366_v2, %v3225_v55  ;;  %v3195_v61 = vadd.f32 %v9485_v36, %v3156_v40  ;;  %v3159_v18 = vadd.f32 %v7369_v3, %v2625_v47 }
 0x255   :  { %7526 = vmatprep.mubr.msk.f32.mxu0 %vm2085_vm12, %v9572_v6  ;;  %v3039_v19 = vpop.f32.mrf.mxu1  ;;  %v9594_v27 = vmax.f32 %v3501_v58, 0.0  ;;  %v9608_v2 = vsel %vm536_vm1, %v4400_v12, %v4401_v50  ;;  %v2645_v15 = vadd.f32 %v9350_v35, %v9427_v0  ;;  %v3386_v45 = vadd.f32 %v9491_v22, %v9455_v28 }
 0x256   :  { %v9587_v39 = vmax.f32 %v3500_v43, 0.0  ;;  %v3227_v1 = vmax.f32 %v3195_v61, 0.0  ;;  %v3158_v8 = vadd.f32 %v3039_v19, %v2620_v11  ;;  %7527 = vmatmul.mubr.msk.f32.gmra.mxu0 %vm2085_vm12, %v9574_v33  ;;  %v3198_v37 = vadd.f32 %v9485_v36, %v3159_v18  ;;  %v9639_v18 = vpop.f32.mrf.mxu0 }
 0x257   :  { %11022 = vst [vmem:[#allocation39_spill] sm:$0xff] %v9594_v27  ;;  %v7372_v52 = vpop.f32.mrf.mxu1  ;;  %v3503_v23 = vadd.f32 %v3381_v44, %v3228_v21  ;;  %v3401_v12 = vadd.f32 %v9461_v56, %v9491_v22  ;;  %v2640_v35 = vadd.f32 %v9352_v24, %v9429_v29  ;;  %v3396_v21 = vadd.f32 %v9491_v22, %v9467_v59 }
 0x258   :  { %v3502_v7 = vadd.f32 %v3376_v51, %v3227_v1  ;;  %v3197_v25 = vadd.f32 %v9485_v36, %v3158_v8  ;;  %v3161_v32 = vadd.f32 %v7372_v52, %v2635_v53  ;;  %7529 = vmatprep.mubr.msk.f32.mxu0 %vm2085_vm12, %v9587_v39  ;;  %v3230_v14 = vmax.f32 %v3198_v37, 0.0  ;;  %v11023_v51 = vld [vmem:[#allocation7_spill] sm:$0xff] }
 0x259   :  { %v3049_v20 = vpop.f32.mrf.mxu1  ;;  %v9625_v0 = vmax.f32 %v3503_v23, 0.0  ;;  %v2655_v56 = vadd.f32 %v9354_v38, %v9433_v10  ;;  %v2650_v19 = vadd.f32 %v11023_v51, %v9435_v54  ;;  %v11024_v1 = vld [vmem:[#allocation35_spill] sm:$0xff]  ;;  %v11030_v51 = vld [vmem:[#allocation25_spill] sm:$0xff] }
 0x25a   :  { %v9612_v42 = vmax.f32 %v3502_v7, 0.0  ;;  %v3229_v55 = vmax.f32 %v3197_v25, 0.0  ;;  %7530 = vmatmul.mubr.msk.f32.gmra.mxu0 %vm2085_vm12, %v9594_v27  ;;  %v3505_v34 = vadd.f32 %v3391_v13, %v3230_v14  ;;  %v3200_v40 = vadd.f32 %v9485_v36, %v3161_v32  ;;  %v11025_v7 = vld [vmem:[#allocation38_spill] sm:$0xff] }
 0x25b   :  { %v3160_v44 = vadd.f32 %v3049_v20, %v2630_v16  ;;  %v7375_v47 = vpop.f32.mrf.mxu1  ;;  %v3411_v8 = vadd.f32 %v11024_v1, %v9491_v22  ;;  %v3406_v25 = vadd.f32 %v9491_v22, %v11025_v7  ;;  %v4402_v32 = vrot.slane %v9572_v6, 6 }
 0x25c   :  { %v3504_v11 = vadd.f32 %v3386_v45, %v3229_v55  ;;  %v3163_v28 = vadd.f32 %v7375_v47, %v2645_v15  ;;  %7532 = vmatprep.mubr.msk.f32.mxu0 %vm2085_vm12, %v9612_v42  ;;  %v3232_v58 = vmax.f32 %v3200_v40, 0.0  ;;  %v9643_v53 = vmax.f32 %v3505_v34, 0.0  ;;  %v9658_v55 = vpop.f32.mrf.mxu0  ;;  %v11026_v45 = vld [vmem:[#allocation23_spill] sm:$0xff]  ;;  %v11027_v34 = vld [vmem:[#allocation8_spill] sm:$0xff] }
 0x25d   :  { %v3199_v3 = vadd.f32 %v9485_v36, %v3160_v44  ;;  %v3059_v43 = vpop.f32.mrf.mxu1  ;;  %v3421_v15 = vadd.f32 %v9495_v63, %v9491_v22  ;;  %v2665_v40 = vadd.f32 %v11027_v34, %v11026_v45  ;;  %v11028_v44 = vld [vmem:[#allocation24_spill] sm:$0xff]  ;;  %v3416_v63 = vadd.f32 %v9491_v22, %v9503_v26 }
 0x25e   :  { %v9634_v61 = vmax.f32 %v3504_v11, 0.0  ;;  %v3202_v24 = vadd.f32 %v9485_v36, %v3163_v28  ;;  %v3162_v29 = vadd.f32 %v3059_v43, %v2640_v35  ;;  %7533 = vmatmul.mubr.msk.f32.gmra.mxu0 %vm2085_vm12, %v9625_v0  ;;  %v3507_v10 = vadd.f32 %v3401_v12, %v3232_v58  ;;  %v11029_v12 = vld [vmem:[#allocation9_spill] sm:$0xff]  ;;  %v9685_v26 = vpop.f32.mrf.mxu0 }
 0x25f   :  { %v3231_v59 = vmax.f32 %v3199_v3, 0.0  ;;  %v7378_v38 = vpop.f32.mrf.mxu1  ;;  %v2660_v47 = vadd.f32 %v11029_v12, %v11028_v44 }
 0x260   :  { %v3234_v37 = vmax.f32 %v3202_v24, 0.0  ;;  %v3201_v13 = vadd.f32 %v9485_v36, %v3162_v29  ;;  %v3165_v52 = vadd.f32 %v7378_v38, %v2655_v56  ;;  %7535 = vmatprep.mubr.msk.f32.mxu0 %vm2085_vm12, %v9634_v61  ;;  %v9666_v58 = vmax.f32 %v3507_v10, 0.0 }
 0x261   :  { %v3506_v23 = vadd.f32 %v3396_v21, %v3231_v59  ;;  %v3069_v54 = vpop.f32.mrf.mxu1  ;;  %v9677_v29 = vsel %vm536_vm1, %v4401_v50, %v4402_v32  ;;  %v4403_v10 = vrot.slane %v9574_v33, 6  ;;  %v3431_v50 = vadd.f32 %v9520_v30, %v9491_v22  ;;  %v11035_v30 = vld [vmem:[#allocation27_spill] sm:$0xff] }
 0x262   :  { %v3233_v16 = vmax.f32 %v3201_v13, 0.0  ;;  %v3204_v14 = vadd.f32 %v9485_v36, %v3165_v52  ;;  %v3164_v20 = vadd.f32 %v3069_v54, %v2650_v19  ;;  %7536 = vmatmul.mubr.msk.f32.gmra.mxu0 %vm2085_vm12, %v9643_v53  ;;  %v3509_v11 = vadd.f32 %v3411_v8, %v3234_v37  ;;  %v11031_v19 = vld [vmem:[#allocation10_spill] sm:$0xff] }
 0x263   :  { %v9664_v35 = vmax.f32 %v3506_v23, 0.0  ;;  %v7381_v28 = vpop.f32.mrf.mxu1  ;;  %v2675_v59 = vadd.f32 %v11031_v19, %v11030_v51 }
 0x264   :  { %v3236_v3 = vmax.f32 %v3204_v14, 0.0  ;;  %v3508_v21 = vadd.f32 %v3406_v25, %v3233_v16  ;;  %v3203_v43 = vadd.f32 %v9485_v36, %v3164_v20  ;;  %v3167_v56 = vadd.f32 %v7381_v28, %v2665_v40  ;;  %v11033_v16 = vld [vmem:[#allocation26_spill] sm:$0xff]  ;;  %v11034_v14 = vld [vmem:[#allocation11_spill] sm:$0xff]  ;;  %v7457_v28 = vpop.f32.mrf.mxu0 }
 0x265   :  { %7538 = vmatprep.mubr.msk.f32.mxu0 %vm2085_vm12, %v9664_v35  ;;  %v3079_v24 = vpop.f32.mrf.mxu1  ;;  %v9688_v37 = vmax.f32 %v3509_v11, 0.0  ;;  %v2670_v20 = vadd.f32 %v11034_v14, %v11033_v16  ;;  %v9702_v40 = vsel %vm536_vm1, %v4402_v32, %v4403_v10  ;;  %v3426_v11 = vadd.f32 %v9491_v22, %v9542_v48 }
 0x266   :  { %v9681_v1 = vmax.f32 %v3508_v21, 0.0  ;;  %v3235_v8 = vmax.f32 %v3203_v43, 0.0  ;;  %v3166_v38 = vadd.f32 %v3079_v24, %v2660_v47  ;;  %7539 = vmatmul.mubr.msk.f32.gmra.mxu0 %vm2085_vm12, %v9666_v58  ;;  %v3206_v13 = vadd.f32 %v9485_v36, %v3167_v56  ;;  %v11038_v21 = vld [vmem:[#allocation13_spill] sm:$0xff] }
 0x267   :  { %11032 = vst [vmem:[#allocation7_spill] sm:$0xff] %v9688_v37  ;;  %v7384_v52 = vpop.f32.mrf.mxu1  ;;  %v3511_v23 = vadd.f32 %v3421_v15, %v3236_v3  ;;  %v11036_v15 = vld [vmem:[#allocation12_spill] sm:$0xff] }
 0x268   :  { %v3510_v7 = vadd.f32 %v3416_v63, %v3235_v8  ;;  %v3205_v25 = vadd.f32 %v9485_v36, %v3166_v38  ;;  %v3169_v54 = vadd.f32 %v7384_v52, %v2675_v59  ;;  %7541 = vmatprep.mubr.msk.f32.mxu0 %vm2085_vm12, %v9681_v1  ;;  %v3238_v45 = vmax.f32 %v3206_v13, 0.0  ;;  %v11037_v3 = vld [vmem:[#allocation28_spill] sm:$0xff] }
 0x269   :  { %v3089_v34 = vpop.f32.mrf.mxu1  ;;  %v2685_v44 = vadd.f32 %v11036_v15, %v11035_v30  ;;  %v2680_v43 = vadd.f32 %v11038_v21, %v11037_v3  ;;  %v3441_v63 = vadd.f32 %v9566_v46, %v9491_v22  ;;  %v9717_v51 = vmax.f32 %v3511_v23, 0.0  ;;  %v11039_v23 = vld [vmem:[#allocation29_spill] sm:$0xff]  ;;  %v11041_v30 = vld [vmem:[#allocation30_spill] sm:$0xff]  ;;  %v11042_v15 = vld [vmem:[#allocation15_spill] sm:$0xff] }
 0x26a   :  { %v9706_v12 = vmax.f32 %v3510_v7, 0.0  ;;  %v3237_v47 = vmax.f32 %v3205_v25, 0.0  ;;  %7542 = vmatmul.mubr.msk.f32.gmra.mxu0 %vm2085_vm12, %v9688_v37  ;;  %v3208_v56 = vadd.f32 %v9485_v36, %v3169_v54  ;;  %v3168_v32 = vadd.f32 %v3089_v34, %v2670_v20  ;;  %v11040_v54 = vld [vmem:[#allocation14_spill] sm:$0xff] }
 0x26b   :  { %v7387_v24 = vpop.f32.mrf.mxu1  ;;  %v3513_v19 = vadd.f32 %v3431_v50, %v3238_v45  ;;  %v3436_v46 = vadd.f32 %v9491_v22, %v9591_v60  ;;  %v3465_v50 = vpop.f32.mrf.mxu0  ;;  %v2695_v16 = vadd.f32 %v11040_v54, %v11039_v23  ;;  %v3451_v45 = vadd.f32 %v9618_v57, %v9491_v22  ;;  %v11044_v57 = vld [vmem:[#allocation16_spill] sm:$0xff] }
 0x26c   :  { %v3512_v59 = vadd.f32 %v3426_v11, %v3237_v47  ;;  %v3171_v8 = vadd.f32 %v7387_v24, %v2685_v44  ;;  %7544 = vmatprep.mubr.msk.f32.mxu0 %vm2085_vm12, %v9706_v12  ;;  %v3240_v48 = vmax.f32 %v3208_v56, 0.0  ;;  %v3207_v38 = vadd.f32 %v9485_v36, %v3168_v32  ;;  %v11043_v32 = vld [vmem:[#allocation31_spill] sm:$0xff] }
 0x26d   :  { %v3099_v13 = vpop.f32.mrf.mxu1  ;;  %v2690_v44 = vadd.f32 %v11042_v15, %v11041_v30  ;;  %v9735_v47 = vmax.f32 %v3513_v19, 0.0  ;;  %v3461_v19 = vadd.f32 %v9658_v55, %v9491_v22  ;;  %v3456_v55 = vadd.f32 %v9491_v22, %v9685_v26 }
 0x26e   :  { %v9722_v52 = vmax.f32 %v3512_v59, 0.0  ;;  %v3210_v7 = vadd.f32 %v9485_v36, %v3171_v8  ;;  %v3170_v25 = vadd.f32 %v3099_v13, %v2680_v43  ;;  %7545 = vmatmul.mubr.msk.f32.gmra.mxu0 %vm2085_vm12, %v9717_v51  ;;  %v3239_v14 = vmax.f32 %v3207_v38, 0.0  ;;  %v7460_v8 = vpop.f32.mrf.mxu0  ;;  %v11046_v38 = vld [vmem:[#allocation17_spill] sm:$0xff] }
 0x26f   :  { %v3515_v20 = vadd.f32 %v3441_v63, %v3240_v48  ;;  %v7390_v34 = vpop.f32.mrf.mxu1  ;;  %v3446_v43 = vadd.f32 %v9491_v22, %v9639_v18  ;;  %v2705_v63 = vadd.f32 %v11044_v57, %v11043_v32  ;;  %v11045_v48 = vld [vmem:[#allocation32_spill] sm:$0xff]  ;;  %v3471_v32 = vadd.f32 %v7457_v28, %v9491_v22 }
 0x270   :  { %v3242_v60 = vmax.f32 %v3210_v7, 0.0  ;;  %v3209_v11 = vadd.f32 %v9485_v36, %v3170_v25  ;;  %7547 = vmatprep.mubr.msk.f32.mxu0 %vm2085_vm12, %v9722_v52  ;;  %v3514_v3 = vadd.f32 %v3436_v46, %v3239_v14  ;;  %v3173_v21 = vadd.f32 %v7390_v34, %v2695_v16 }
 0x271   :  { %v3109_v56 = vpop.f32.mrf.mxu1  ;;  %v2700_v13 = vadd.f32 %v11046_v38, %v11045_v48  ;;  %v9750_v7 = vmax.f32 %v3515_v20, 0.0 }
 0x272   :  { %v3241_v24 = vmax.f32 %v3209_v11, 0.0  ;;  %v3172_v59 = vadd.f32 %v3109_v56, %v2690_v44  ;;  %7548 = vmatmul.mubr.msk.f32.gmra.mxu0 %vm2085_vm12, %v9735_v47  ;;  %v9752_v46 = vmax.f32 %v3514_v3, 0.0  ;;  %v3212_v18 = vadd.f32 %v9485_v36, %v3173_v21  ;;  %v11048_v3 = vld [vmem:[#allocation18_spill] sm:$0xff]  ;;  %v11050_v56 = vld [vmem:[#allocation19_spill] sm:$0xff] }
 0x273   :  { %v7393_v25 = vpop.f32.mrf.mxu1  ;;  %v3517_v23 = vadd.f32 %v3451_v45, %v3242_v60  ;;  %v3475_v45 = vpop.f32.mrf.mxu0  ;;  %v11047_v60 = vld [vmem:[#allocation33_spill] sm:$0xff] }
 0x274   :  { %v3516_v54 = vadd.f32 %v3446_v43, %v3241_v24  ;;  %v3211_v16 = vadd.f32 %v9485_v36, %v3172_v59  ;;  %v3175_v14 = vadd.f32 %v7393_v25, %v2705_v63  ;;  %v3244_v34 = vmax.f32 %v3212_v18, 0.0  ;;  %7550 = vmatprep.mubr.msk.f32.mxu0 %vm2085_vm12, %v9752_v46  ;;  %v11049_v43 = vld [vmem:[#allocation34_spill] sm:$0xff] }
 0x275   :  { %v3119_v30 = vpop.f32.mrf.mxu1  ;;  %v2715_v21 = vadd.f32 %v11048_v3, %v11047_v60  ;;  %v2710_v26 = vadd.f32 %v11050_v56, %v11049_v43  ;;  %v9770_v63 = vmax.f32 %v3517_v23, 0.0  ;;  %v7463_v23 = vpop.f32.mrf.mxu0  ;;  %v11055_v60 = vld [vmem:[#allocation21_spill] sm:$0xff] }
 0x276   :  { %v9760_v20 = vmax.f32 %v3516_v54, 0.0  ;;  %v3243_v15 = vmax.f32 %v3211_v16, 0.0  ;;  %v3214_v44 = vadd.f32 %v9485_v36, %v3175_v14  ;;  %v3174_v11 = vadd.f32 %v3119_v30, %v2700_v13  ;;  %7551 = vmatmul.mubr.msk.f32.gmra.mxu0 %vm2085_vm12, %v9750_v7  ;;  %v11052_v16 = vld [vmem:[#allocation36_spill] sm:$0xff] }
 0x277   :  { %v7396_v57 = vpop.f32.mrf.mxu1  ;;  %11051 = vst [vmem:[#allocation35_spill] sm:$0xff] %v9770_v63  ;;  %v3519_v24 = vadd.f32 %v3461_v19, %v3244_v34  ;;  %v3466_v54 = vadd.f32 %v9491_v22, %v3465_v50  ;;  %v3481_v19 = vadd.f32 %v7460_v8, %v9491_v22  ;;  %v11053_v14 = vld [vmem:[#allocation20_spill] sm:$0xff] }
 0x278   :  { %v3246_v59 = vmax.f32 %v3214_v44, 0.0  ;;  %v3518_v48 = vadd.f32 %v3456_v55, %v3243_v15  ;;  %7553 = vmatprep.mubr.msk.f32.mxu0 %vm2085_vm12, %v9760_v20  ;;  %v3213_v38 = vadd.f32 %v9485_v36, %v3174_v11  ;;  %v3177_v13 = vadd.f32 %v7396_v57, %v2715_v21  ;;  %v11054_v11 = vld [vmem:[#allocation37_spill] sm:$0xff] }
 0x279   :  { %v3129_v18 = vpop.f32.mrf.mxu1  ;;  %v2725_v34 = vadd.f32 %v11053_v14, %v11052_v16  ;;  %v3476_v44 = vadd.f32 %v9491_v22, %v3475_v45  ;;  %v2720_v3 = vadd.f32 %v11055_v60, %v11054_v11  ;;  %v9788_v50 = vmax.f32 %v3519_v24, 0.0  ;;  %v3485_v24 = vpop.f32.mrf.mxu0 }
 0x27a   :  { %v9776_v25 = vmax.f32 %v3518_v48, 0.0  ;;  %v3176_v28 = vadd.f32 %v3129_v18, %v2710_v26  ;;  %7554 = vmatmul.mubr.msk.f32.gmra.mxu0 %vm2085_vm12, %v9770_v63  ;;  %v3245_v55 = vmax.f32 %v3213_v38, 0.0  ;;  %v3216_v30 = vadd.f32 %v9485_v36, %v3177_v13 }
 0x27b   :  { %v7399_v15 = vpop.f32.mrf.mxu1  ;;  %v3521_v21 = vadd.f32 %v3471_v32, %v3246_v59  ;;  %v3491_v48 = vadd.f32 %v7463_v23, %v9491_v22  ;;  %v3561_v38 = vrot.slane %v9516_v5, 4  ;;  %v10939_v32 = vrot.slane %v9587_v39, 6 }
 0x27c   :  { %v3215_v43 = vadd.f32 %v9485_v36, %v3176_v28  ;;  %7556 = vmatprep.mubr.msk.f32.mxu0 %vm2085_vm12, %v9776_v25  ;;  %v3248_v8 = vmax.f32 %v3216_v30, 0.0  ;;  %v3520_v56 = vadd.f32 %v3466_v54, %v3245_v55  ;;  %v3179_v26 = vadd.f32 %v7399_v15, %v2725_v34 }
 0x27d   :  { %v3139_v57 = vpop.f32.mrf.mxu1  ;;  %v3562_v59 = vrot.slane %v9522_v41, 4  ;;  %v10942_v28 = vrot.slane %v9539_v17, 4  ;;  %v9803_v16 = vmax.f32 %v3521_v21, 0.0  ;;  %v10940_v55 = vrot.slane %v9612_v42, 6  ;;  %v11056_v41 = vld [vmem:[#allocation3_spill] sm:$0xff] }
 0x27e   :  { %v3247_v45 = vmax.f32 %v3215_v43, 0.0  ;;  %v3178_v13 = vadd.f32 %v3139_v57, %v2720_v3  ;;  %7557 = vmatmul.mubr.msk.f32.gmra.mxu0 %vm2085_vm12, %v9788_v50  ;;  %v9799_v18 = vmax.f32 %v3520_v56, 0.0  ;;  %v3218_v54 = vadd.f32 %v9485_v36, %v3179_v26 }
 0x27f   :  { %v3523_v23 = vadd.f32 %v3481_v19, %v3248_v8  ;;  %v3486_v15 = vadd.f32 %v9491_v22, %v3485_v24  ;;  %vm3626_vm14 = vcmp.ge.s32.totalorder %v11056_v41, 4  ;;  %v3624_v19 = vsel %vm3593_vm13, %v3561_v38, %v3562_v59 }
 0x280   :  { %v3522_v14 = vadd.f32 %v3476_v44, %v3247_v45  ;;  %v3217_v34 = vadd.f32 %v9485_v36, %v3178_v13  ;;  %v3250_v30 = vmax.f32 %v3218_v54, 0.0  ;;  %7559 = vmatprep.mubr.msk.f32.mxu0 %vm2085_vm12, %v9799_v18  ;;  %v9823_v22 = vsel %vm536_vm1, %v4403_v10, %v10939_v32 }
 0x281   :  { %v4407_v44 = vrot.slane %v9625_v0, 6  ;;  %v3623_v21 = vsel %vm3593_vm13, %v3562_v59, %v10942_v28  ;;  %v4409_v43 = vrot.slane %v9643_v53, 6  ;;  %v9832_v8 = vmax.f32 %v3523_v23, 0.0 }
 0x282   :  { %v9811_v11 = vmax.f32 %v3522_v14, 0.0  ;;  %v3249_v60 = vmax.f32 %v3217_v34, 0.0  ;;  %7560 = vmatmul.mubr.msk.f32.gmra.mxu0 %vm2085_vm12, %v9803_v16  ;;  %v3525_v3 = vadd.f32 %v3491_v48, %v3250_v30  ;;  %v3565_v10 = vrot.slane %v9572_v6, 4 }
 0x283   :  { %v4411_v26 = vrot.slane %v9666_v58, 6  ;;  %v4415_v57 = vrot.slane %v9717_v51, 6  ;;  %v9845_v45 = vsel %vm536_vm1, %v10940_v55, %v4407_v44  ;;  %v10945_v13 = vrot.slane %v9706_v12, 6 }
 0x284   :  { %v3524_v56 = vadd.f32 %v3486_v15, %v3249_v60  ;;  %7562 = vmatprep.mubr.msk.f32.mxu0 %vm2085_vm12, %v9811_v11  ;;  %v9839_v48 = vmax.f32 %v3525_v3, 0.0  ;;  %v4417_v24 = vrot.slane %v9735_v47, 6  ;;  %v4416_v59 = vrot.slane %v9722_v52, 6 }
 0x285   :  { %v4419_v6 = vrot.slane %v9750_v7, 6  ;;  %v4408_v14 = vrot.slane %v9634_v61, 6  ;;  %v4410_v34 = vrot.slane %v9664_v35, 6  ;;  %v4418_v30 = vrot.slane %v9752_v46, 6 }
 0x286   :  { %11057 = vst [vmem:[#allocation38_spill] sm:$0xff] %v9839_v48  ;;  %v9850_v54 = vmax.f32 %v3524_v56, 0.0  ;;  %7563 = vmatmul.mubr.msk.f32.gmra.mxu0 %vm2085_vm12, %v9832_v8  ;;  %v10943_v23 = vrot.slane %v9839_v48, 4  ;;  %v4423_v60 = vrot.slane %v9788_v50, 6  ;;  %v10944_v3 = vrot.slane %v9681_v1, 6 }
 0x287   :  { %v9871_v55 = vsel %vm536_vm1, %v4407_v44, %v4408_v14  ;;  %v9875_v49 = vsel %vm536_vm1, %v4408_v14, %v4409_v43  ;;  %v4425_v28 = vrot.slane %v9803_v16, 6  ;;  %v4424_v36 = vrot.slane %v9799_v18, 6  ;;  %v6445_v44 = vld [vmem:[%s10920_s7 + $0x10] sm:$0xff] }
 0x288   :  { %7565 = vmatprep.mubr.msk.f32.mxu0 %vm2085_vm12, %v9850_v54  ;;  %v3625_v32 = vsel %vm3593_vm13, %v10943_v23, %v3561_v38  ;;  %v4426_v15 = vrot.slane %v9811_v11, 6  ;;  %v4428_v23 = vrot.slane %v9850_v54, 6  ;;  %v9891_v14 = vsel %vm536_vm1, %v4409_v43, %v4410_v34 }
 0x289   :  { %v3722_v38 = vsel %vm3626_vm14, %v3625_v32, 0.0  ;;  %v9895_v56 = vsel %vm536_vm1, %v4410_v34, %v4411_v26  ;;  %v9901_v32 = vsel %vm536_vm1, %v4411_v26, %v10944_v3  ;;  %v9909_v43 = vsel %vm536_vm1, %v10945_v13, %v4415_v57  ;;  %v11059_v26 = vld [vmem:[#allocation22_spill] sm:$0xff] }
 0x28a   :  { %7566 = vmatmul.mubr.msk.f32.gmra.mxu0 %vm2085_vm12, %v9839_v48  ;;  %7468 = vmatprep.mubr.msk.f32.mxu1 %vm2085_vm12, %v3722_v38  ;;  %11058 = vst [vmem:[#allocation23_spill] sm:$0xff] %v9895_v56  ;;  %v4427_v38 = vrot.slane %v9832_v8, 6  ;;  %v9913_v34 = vsel %vm536_vm1, %v4415_v57, %v4416_v59  ;;  %v9917_v56 = vsel %vm536_vm1, %v4416_v59, %v4417_v24  ;;  %v11061_v57 = vrot.slane %v9760_v20, 6 }
 0x28b   :  { %7469 = vmatmul.mubr.msk.f32.vlgmr.msra.gmra.mxu1 %vm2085_vm12, %v3624_v19  ;;  %v9924_v3 = vsel %vm536_vm1, %v4417_v24, %v4418_v30  ;;  %v9928_v13 = vsel %vm536_vm1, %v4418_v30, %v4419_v6  ;;  %v11064_v24 = vrot.slane %v9776_v25, 6 }
 0x28c   :  { %7471 = vmatprep.mubr.msk.f32.mxu1 %vm2085_vm12, %v3623_v21  ;;  %7569 = vmatpush3.msra.mxu1 %v11059_v26  ;;  %11060 = vst [vmem:[#allocation8_spill] sm:$0xff] %v9928_v13  ;;  %v9934_v59 = vsel %vm536_vm1, %v4419_v6, %v11061_v57  ;;  %v11062_v21 = vrot.slane %v9547_v9, 4  ;;  %v11063_v26 = vrot.slane %v9539_v17, 4  ;;  %v9950_v13 = vsel %vm536_vm1, %v4423_v60, %v4424_v36 }
 0x28d   :  { %7570 = vmatprep.subr.mxu1 %v6445_v44  ;;  %v9946_v30 = vsel %vm536_vm1, %v11064_v24, %v4423_v60  ;;  %v9954_v6 = vsel %vm536_vm1, %v4424_v36, %v4425_v28  ;;  %v9958_v17 = vsel %vm536_vm1, %v4425_v28, %v4426_v15  ;;  %v9962_v57 = vsel %vm536_vm1, %v4426_v15, %v4427_v38 }
 0x28e   :  { %v3622_v19 = vsel %vm3593_vm13, %v11063_v26, %v11062_v21  ;;  %7571 = vmatpush3.msra.mxu1 %v6445_v44  ;;  %v9966_v21 = vsel %vm536_vm1, %v4427_v38, %v4428_v23  ;;  %v11065_v60 = vrot.slane %v9839_v48, 6  ;;  %v11066_v36 = vrot.slane %v9547_v9, 4 }
 0x28f   :  { %7472 = vmatmul.mubr.msk.f32.gmra.mxu1 %vm2085_vm12, %v3622_v19  ;;  %v3567_v15 = vrot.slane %v9587_v39, 4  ;;  %v3566_v44 = vrot.slane %v9574_v33, 4  ;;  %v3569_v38 = vrot.slane %v9612_v42, 4  ;;  %v11067_v33 = vld [vmem:[#allocation5_spill] sm:$0xff] }
 0x290   :  { %v9972_v26 = vsel %vm536_vm1, %v4428_v23, %v11065_v60  ;;  %v3621_v28 = vsel %vm3593_vm13, %v11066_v36, %v3565_v10  ;;  %v3568_v23 = vrot.slane %v9594_v27, 4  ;;  %vm3634_vm15 = vcmp.ge.s32.totalorder %v11067_v33, 4 }
 0x291   :  { %7474 = vmatprep.mubr.msk.f32.mxu1 %vm2085_vm12, %v3621_v28  ;;  %v3620_v24 = vsel %vm3593_vm13, %v3565_v10, %v3566_v44  ;;  %v3619_v9 = vsel %vm3593_vm13, %v3566_v44, %v3567_v15  ;;  %v3571_v36 = vrot.slane %v9634_v61, 4  ;;  %v3570_v28 = vrot.slane %v9625_v0, 4 }
 0x292   :  { %v3617_v19 = vsel %vm3593_vm13, %v3568_v23, %v3569_v38  ;;  %v3618_v60 = vsel %vm3593_vm13, %v3567_v15, %v3568_v23  ;;  %v3573_v15 = vrot.slane %v9664_v35, 4  ;;  %v3572_v23 = vrot.slane %v9643_v53, 4 }
 0x293   :  { %7475 = vmatmul.mubr.msk.f32.gmra.mxu1 %vm2085_vm12, %v3620_v24  ;;  %v3730_v10 = vsel %vm3634_vm15, %v3617_v19, 0.0  ;;  %v3616_v44 = vsel %vm3593_vm13, %v3569_v38, %v3570_v28  ;;  %v3615_v24 = vsel %vm3593_vm13, %v3570_v28, %v3571_v36  ;;  %v3575_v38 = vrot.slane %v9681_v1, 4 }
 0x294   :  { %7477 = vmatprep.mubr.msk.f32.mxu1 %vm2085_vm12, %v3619_v9  ;;  %v3614_v61 = vsel %vm3593_vm13, %v3571_v36, %v3572_v23  ;;  %v3613_v0 = vsel %vm3593_vm13, %v3572_v23, %v3573_v15  ;;  %v3574_v9 = vrot.slane %v9666_v58, 4  ;;  %v3577_v19 = vrot.slane %v9706_v12, 4  ;;  %v11068_v58 = vld [vmem:[#allocation6_spill] sm:$0xff] }
 0x295   :  { %v3576_v35 = vrot.slane %v9688_v37, 4  ;;  %vm3642_vm0 = vcmp.ge.s32.totalorder %v11068_v58, 4  ;;  %v3579_v28 = vrot.slane %v9722_v52, 4  ;;  %v3581_v23 = vrot.slane %v9752_v46, 4 }
 0x296   :  { %v3612_v53 = vsel %vm3593_vm13, %v3573_v15, %v3574_v9  ;;  %v3580_v52 = vrot.slane %v9735_v47, 4  ;;  %v3582_v46 = vrot.slane %v9750_v7, 4  ;;  %v11069_v7 = vld [vmem:[#allocation4_spill] sm:$0xff] }
 0x297   :  { %7478 = vmatmul.mubr.msk.f32.gmra.mxu1 %vm2085_vm12, %v3618_v60  ;;  %v3611_v60 = vsel %vm3593_vm13, %v3574_v9, %v3575_v38  ;;  %v3610_v36 = vsel %vm3593_vm13, %v3575_v38, %v3576_v35  ;;  %v3585_v9 = vrot.slane %v9776_v25, 4  ;;  %vm3650_vm3 = vcmp.ge.s32.totalorder %v11069_v7, 4 }
 0x298   :  { %7480 = vmatprep.mubr.msk.f32.mxu1 %vm2085_vm12, %v3730_v10  ;;  %v3609_v10 = vsel %vm3593_vm13, %v3576_v35, %v3577_v19  ;;  %v3605_v38 = vsel %vm3593_vm13, %v3580_v52, %v3581_v23  ;;  %v3604_v47 = vsel %vm3593_vm13, %v3581_v23, %v3582_v46 }
 0x29b   :  { %7481 = vmatmul.mubr.msk.f32.gmra.mxu1 %vm2085_vm12, %v3616_v44  ;;  %v3738_v44 = vsel %vm3642_vm0, %v3609_v10, 0.0  ;;  %v3587_v10 = vrot.slane %v9799_v18, 4  ;;  %v3588_v18 = vrot.slane %v9803_v16, 4 }
 0x29c   :  { %7483 = vmatprep.mubr.msk.f32.mxu1 %vm2085_vm12, %v3615_v24  ;;  %v3578_v24 = vrot.slane %v9717_v51, 4  ;;  %v3583_v51 = vrot.slane %v9760_v20, 4 }
 0x29d   :  { %v3598_v23 = vsel %vm3593_vm13, %v3587_v10, %v3588_v18 }
 0x29e   :  { %v3608_v15 = vsel %vm3593_vm13, %v3577_v19, %v3578_v24  ;;  %v3584_v19 = vrot.slane %v9770_v63, 4 }
 0x29f   :  { %7484 = vmatmul.mubr.msk.f32.gmra.mxu1 %vm2085_vm12, %v3614_v61  ;;  %v3607_v61 = vsel %vm3593_vm13, %v3578_v24, %v3579_v28  ;;  %v3589_v24 = vrot.slane %v9811_v11, 4  ;;  %v3590_v11 = vrot.slane %v9832_v8, 4  ;;  %v11072_v8 = vrot.slane %v9839_v48, 4 }
 0x2a0   :  { %7486 = vmatprep.mubr.msk.f32.mxu1 %vm2085_vm12, %v3613_v0  ;;  %v3606_v0 = vsel %vm3593_vm13, %v3579_v28, %v3580_v52  ;;  %v3601_v35 = vsel %vm3593_vm13, %v3584_v19, %v3585_v9  ;;  %v3586_v28 = vrot.slane %v9788_v50, 4  ;;  %v3591_v50 = vrot.slane %v9850_v54, 4 }
 0x2a1   :  { %v3596_v52 = vsel %vm3593_vm13, %v3589_v24, %v3590_v11  ;;  %v11070_v54 = vrot.slane %v9516_v5, 6  ;;  %v4405_v5 = vrot.slane %v9594_v27, 6 }
 0x2a2   :  { %v3595_v16 = vsel %vm3593_vm13, %v3590_v11, %v3591_v50 }
 0x2a3   :  { %7487 = vmatmul.mubr.msk.f32.gmra.mxu1 %vm2085_vm12, %v3612_v53  ;;  %v3603_v53 = vsel %vm3593_vm13, %v3582_v46, %v3583_v51 }
 0x2a4   :  { %7489 = vmatprep.mubr.msk.f32.mxu1 %vm2085_vm12, %v3611_v60  ;;  %v3602_v60 = vsel %vm3593_vm13, %v3583_v51, %v3584_v19 }
 0x2a7   :  { %7490 = vmatmul.mubr.msk.f32.gmra.mxu1 %vm2085_vm12, %v3610_v36  ;;  %v3746_v36 = vsel %vm3650_vm3, %v3601_v35, 0.0 }
 0x2a8   :  { %7492 = vmatprep.mubr.msk.f32.mxu1 %vm2085_vm12, %v3738_v44  ;;  %v3600_v44 = vsel %vm3593_vm13, %v3585_v9, %v3586_v28  ;;  %v11073_v9 = vrot.slane %v9612_v42, 6  ;;  %v11075_v42 = vld [vmem:[#allocation23_spill] sm:$0xff] }
 0x2ab   :  { %7493 = vmatmul.mubr.msk.f32.gmra.mxu1 %vm2085_vm12, %v3608_v15  ;;  %v3599_v15 = vsel %vm3593_vm13, %v3586_v28, %v3587_v10 }
 0x2ac   :  { %7495 = vmatprep.mubr.msk.f32.mxu1 %vm2085_vm12, %v3607_v61  ;;  %v3597_v61 = vsel %vm3593_vm13, %v3588_v18, %v3589_v24 }
 0x2af   :  { %7496 = vmatmul.mubr.msk.f32.gmra.mxu1 %vm2085_vm12, %v3606_v0  ;;  %v11071_v0 = vrot.slane %v9839_v48, 6 }
 0x2b0   :  { %7498 = vmatprep.mubr.msk.f32.mxu1 %vm2085_vm12, %v3605_v38  ;;  %v3594_v38 = vsel %vm3593_vm13, %v3591_v50, %v11072_v8 }
 0x2b1   :  { %v4461_v51 = vsel %vm536_vm1, %v11071_v0, %v11070_v54 }
 0x2b2   :  { %v4462_v46 = vsel %vm569_vm2, %v4461_v51, 0.0 }
 0x2b3   :  { %7499 = vmatmul.mubr.msk.f32.gmra.mxu1 %vm2085_vm12, %v3604_v47  ;;  %v10211_v47 = vld [vmem:[%s10923_s9 + $0x18] sm:$0xff] }
 0x2b4   :  { %7501 = vmatprep.mubr.msk.f32.mxu1 %vm2085_vm12, %v3603_v53  ;;  %11081 = vst [vmem:[#allocation24_spill] sm:$0xff] %v10211_v47 }
 0x2b7   :  { %7502 = vmatmul.mubr.msk.f32.gmra.mxu1 %vm2085_vm12, %v3602_v60 }
 0x2b8   :  { %7504 = vmatprep.mubr.msk.f32.mxu1 %vm2085_vm12, %v3746_v36 }
 0x2bb   :  { %7505 = vmatmul.mubr.msk.f32.gmra.mxu1 %vm2085_vm12, %v3600_v44 }
 0x2bc   :  { %7507 = vmatprep.mubr.msk.f32.mxu1 %vm2085_vm12, %v3599_v15 }
 0x2bf   :  { %7508 = vmatmul.mubr.msk.f32.gmra.mxu1 %vm2085_vm12, %v3598_v23 }
 0x2c0   :  { %7510 = vmatprep.mubr.msk.f32.mxu1 %vm2085_vm12, %v3597_v61 }
 0x2c3   :  { %7511 = vmatmul.mubr.msk.f32.gmra.mxu1 %vm2085_vm12, %v3596_v52 }
 0x2c4   :  { %7513 = vmatprep.mubr.msk.f32.mxu1 %vm2085_vm12, %v3595_v16 }
 0x2c7   :  { %7514 = vmatmul.mubr.msk.f32.gmra.mxu1 %vm2085_vm12, %v3594_v38 }
 0x2c8   :  { %7572 = vmatprep.mubr.msk.f32.mxu1 %vm2085_vm12, %v4462_v46 }
 0x2cb   :  { %7573 = vmatmul.mubr.msk.f32.vlgmr.msra.gmra.mxu1 %vm2085_vm12, %v9560_v31  ;;  %v4453_v31 = vsel %vm536_vm1, %v4405_v5, %v11073_v9 }
 0x2cc   :  { %7575 = vmatprep.mubr.msk.f32.mxu1 %vm2085_vm12, %v9583_v62  ;;  %v11074_v62 = vrot.slane %v9587_v39, 6  ;;  %v4413_v39 = vrot.slane %v9688_v37, 6 }
 0x2cf   :  { %7576 = vmatmul.mubr.msk.f32.gmra.mxu1 %vm2085_vm12, %v9608_v2  ;;  %v4454_v2 = vsel %vm536_vm1, %v11074_v62, %v4405_v5 }
 0x2d0   :  { %7578 = vmatprep.mubr.msk.f32.mxu1 %vm2085_vm12, %v9677_v29  ;;  %v4470_v29 = vsel %vm577_vm5, %v4453_v31, 0.0 }
 0x2d3   :  { %7579 = vmatmul.mubr.msk.f32.gmra.mxu1 %vm2085_vm12, %v9702_v40  ;;  %v11076_v40 = vrot.slane %v9706_v12, 6  ;;  %v11078_v12 = vld [vmem:[#allocation8_spill] sm:$0xff] }
 0x2d4   :  { %7581 = vmatprep.mubr.msk.f32.mxu1 %vm2085_vm12, %v9823_v22 }
 0x2d5   :  { %v4445_v22 = vsel %vm536_vm1, %v4413_v39, %v11076_v40 }
 0x2d7   :  { %7582 = vmatmul.mubr.msk.f32.gmra.mxu1 %vm2085_vm12, %v4454_v2 }
 0x2d8   :  { %7584 = vmatprep.mubr.msk.f32.mxu1 %vm2085_vm12, %v4470_v29 }
 0x2db   :  { %7585 = vmatmul.mubr.msk.f32.gmra.mxu1 %vm2085_vm12, %v9845_v45  ;;  %v4478_v45 = vsel %vm585_vm6, %v4445_v22, 0.0 }
 0x2dc   :  { %7587 = vmatprep.mubr.msk.f32.mxu1 %vm2085_vm12, %v9871_v55  ;;  %v11077_v55 = vrot.slane %v9681_v1, 6  ;;  %v4421_v1 = vrot.slane %v9770_v63, 6 }
 0x2df   :  { %7588 = vmatmul.mubr.msk.f32.gmra.mxu1 %vm2085_vm12, %v9875_v49  ;;  %v4446_v49 = vsel %vm536_vm1, %v11077_v55, %v4413_v39 }
 0x2e0   :  { %7590 = vmatprep.mubr.msk.f32.mxu1 %vm2085_vm12, %v9891_v14  ;;  %v11079_v14 = vrot.slane %v9776_v25, 6  ;;  %v5021_v25 = vld [vmem:[%s10923_s9 + $0x8] sm:$0xff] }
 0x2e1   :  { %7620 = vmatprep.subr.mxu0 %v5021_v25 }
 0x2e2   :  { %7621 = vmatpush3.msra.mxu0 %v5021_v25 }
 0x2e3   :  { %7591 = vmatmul.mubr.msk.f32.gmra.mxu1 %vm2085_vm12, %v11075_v42 }
 0x2e4   :  { %7593 = vmatprep.mubr.msk.f32.mxu1 %vm2085_vm12, %v9901_v32  ;;  %v4437_v32 = vsel %vm536_vm1, %v4421_v1, %v11079_v14 }
 0x2e7   :  { %7594 = vmatmul.mubr.msk.f32.gmra.mxu1 %vm2085_vm12, %v4446_v49 }
 0x2e8   :  { %7596 = vmatprep.mubr.msk.f32.mxu1 %vm2085_vm12, %v4478_v45 }
 0x2eb   :  { %7597 = vmatmul.mubr.msk.f32.gmra.mxu1 %vm2085_vm12, %v9909_v43  ;;  %v11080_v43 = vrot.slane %v9760_v20, 6  ;;  %v6481_v20 = vld [vmem:[%s10923_s9 + $0x28] sm:$0xff] }
 0x2ec   :  { %7599 = vmatprep.mubr.msk.f32.mxu1 %vm2085_vm12, %v9913_v34  ;;  %7672 = vmatprep.subr.mxu1 %v6481_v20  ;;  %v5020_v34 = vld [vmem:[%s10923_s9] sm:$0xff] }
 0x2ed   :  { %7673 = vmatpush3.msra.mxu1 %v6481_v20  ;;  %7622 = vmatprep.subr.mxu0 %v5020_v34  ;;  %v10289_v20 = vld [vmem:[%s10924_s8] ss:$0 sm:$0xff] }
 0x2ee   :  { %7623 = vmatpush3.msra.mxu0 %v5020_v34 }
 0x2ef   :  { %7600 = vmatmul.mubr.msk.f32.gmra.mxu1 %vm2085_vm12, %v9917_v56  ;;  %v4438_v56 = vsel %vm536_vm1, %v11080_v43, %v4421_v1  ;;  %7724 = vmatprep.subr.mxu0 %v10211_v47 }
 0x2f0   :  { %7602 = vmatprep.mubr.msk.f32.mxu1 %vm2085_vm12, %v9924_v3  ;;  %v4486_v3 = vsel %vm593_vm4, %v4437_v32, 0.0 }
 0x2f3   :  { %7603 = vmatmul.mubr.msk.f32.gmra.mxu1 %vm2085_vm12, %v11078_v12 }
 0x2f4   :  { %7605 = vmatprep.mubr.msk.f32.mxu1 %vm2085_vm12, %v9934_v59 }
 0x2f7   :  { %7606 = vmatmul.mubr.msk.f32.gmra.mxu1 %vm2085_vm12, %v4438_v56 }
 0x2f8   :  { %7608 = vmatprep.mubr.msk.f32.mxu1 %vm2085_vm12, %v4486_v3 }
 0x2fb   :  { %7609 = vmatmul.mubr.msk.f32.gmra.mxu1 %vm2085_vm12, %v9946_v30 }
 0x2fc   :  { %7611 = vmatprep.mubr.msk.f32.mxu1 %vm2085_vm12, %v9950_v13  ;;  %v6480_v13 = vld [vmem:[%s10923_s9 + $0x20] sm:$0xff] }
 0x2fd   :  { %7674 = vmatprep.subr.mxu1 %v6480_v13 }
 0x2fe   :  { %7675 = vmatpush3.msra.mxu1 %v6480_v13 }
 0x2ff   :  { %7612 = vmatmul.mubr.msk.f32.gmra.mxu1 %vm2085_vm12, %v9954_v6 }
 0x300   :  { %7614 = vmatprep.mubr.msk.f32.mxu1 %vm2085_vm12, %v9958_v17 }
 0x303   :  { %7615 = vmatmul.mubr.msk.f32.gmra.mxu1 %vm2085_vm12, %v9962_v57 }
 0x304   :  { %7617 = vmatprep.mubr.msk.f32.mxu1 %vm2085_vm12, %v9966_v21 }
 0x307   :  { %7618 = vmatmul.mubr.msk.f32.gmra.mxu1 %vm2085_vm12, %v9972_v26 }
 0x30d   :  { %v7522_v30 = vpop.f32.mrf.mxu0 }
 0x30f   :  { %v4239_v57 = vpop.f32.mrf.mxu0 }
 0x311   :  { %v7525_v19 = vpop.f32.mrf.mxu0 }
 0x313   :  { %v4249_v60 = vpop.f32.mrf.mxu0 }
 0x316   :  { %v7528_v28 = vpop.f32.mrf.mxu0 }
 0x318   :  { %v4259_v15 = vpop.f32.mrf.mxu0 }
 0x31a   :  { %v7531_v50 = vpop.f32.mrf.mxu0 }
 0x31c   :  { %v10234_v52 = vpop.f32.mrf.mxu0 }
 0x31e   :  { %v10240_v0 = vpop.f32.mrf.mxu0 }
 0x320   :  { %v10246_v38 = vpop.f32.mrf.mxu0 }
 0x322   :  { %v10252_v9 = vpop.f32.mrf.mxu0 }
 0x324   :  { %v10258_v2 = vpop.f32.mrf.mxu0 }
 0x326   :  { %v10264_v42 = vpop.f32.mrf.mxu0 }
 0x328   :  { %v10270_v55 = vpop.f32.mrf.mxu0 }
 0x32a   :  { %v10276_v1 = vpop.f32.mrf.mxu0 }
 0x32c   :  { %v10282_v32 = vpop.f32.mrf.mxu0 }
 0x32e   :  { %v10291_v25 = vpop.f32.mrf.mxu0 }
 0x330   :  { %v10294_v58 = vpop.f32.mrf.mxu0 }
 0x34b   :  { %v7470_v59 = vpop.f32.mrf.mxu1 }
 0x34c   :  { %v4245_v56 = vadd.f32 %v7522_v30, %v7470_v59 }
 0x34d   :  { %v3918_v6 = vpop.f32.mrf.mxu1 }
 0x34e   :  { %v4240_v13 = vadd.f32 %v4239_v57, %v3918_v6 }
 0x34f   :  { %v7473_v17 = vpop.f32.mrf.mxu1 }
 0x350   :  { %v4255_v63 = vadd.f32 %v7525_v19, %v7473_v17  ;;  %v10302_v19 = vpop.f32.mrf.mxu0 }
 0x351   :  { %v3928_v21 = vpop.f32.mrf.mxu1 }
 0x352   :  { %v4250_v33 = vadd.f32 %v4249_v60, %v3928_v21 }
 0x353   :  { %v7476_v26 = vpop.f32.mrf.mxu1 }
 0x355   :  { %v10214_v53 = vpop.f32.mrf.mxu1 }
 0x357   :  { %v10216_v35 = vpop.f32.mrf.mxu1 }
 0x359   :  { %v10218_v10 = vpop.f32.mrf.mxu1 }
 0x35b   :  { %v10220_v36 = vpop.f32.mrf.mxu1 }
 0x35d   :  { %v10222_v44 = vpop.f32.mrf.mxu1 }
 0x35f   :  { %v10224_v24 = vpop.f32.mrf.mxu1 }
 0x361   :  { %v10226_v18 = vpop.f32.mrf.mxu1 }
 0x363   :  { %v10228_v23 = vpop.f32.mrf.mxu1 }
 0x365   :  { %v10230_v61 = vpop.f32.mrf.mxu1 }
 0x367   :  { %v10232_v11 = vpop.f32.mrf.mxu1 }
 0x369   :  { %v10236_v16 = vpop.f32.mrf.mxu1 }
 0x36b   :  { %v10238_v54 = vpop.f32.mrf.mxu1 }
 0x36d   :  { %v10242_v51 = vpop.f32.mrf.mxu1 }
 0x36f   :  { %v10244_v8 = vpop.f32.mrf.mxu1 }
 0x371   :  { %v10248_v46 = vpop.f32.mrf.mxu1 }
 0x373   :  { %v10250_v5 = vpop.f32.mrf.mxu1 }
 0x375   :  { %v10254_v31 = vpop.f32.mrf.mxu1 }
 0x377   :  { %v10256_v62 = vpop.f32.mrf.mxu1 }
 0x379   :  { %v10260_v29 = vpop.f32.mrf.mxu1 }
 0x37b   :  { %v10262_v39 = vpop.f32.mrf.mxu1 }
 0x37d   :  { %v10266_v40 = vpop.f32.mrf.mxu1 }
 0x37f   :  { %v10268_v22 = vpop.f32.mrf.mxu1 }
 0x381   :  { %v10272_v49 = vpop.f32.mrf.mxu1 }
 0x383   :  { %v10274_v45 = vpop.f32.mrf.mxu1 }
 0x385   :  { %v10278_v12 = vpop.f32.mrf.mxu1 }
 0x387   :  { %v10280_v14 = vpop.f32.mrf.mxu1 }
 0x388   :  { %11082 = vst [vmem:[#allocation9_spill] sm:$0xff] %v10280_v14 }
 0x389   :  { %v10284_v43 = vpop.f32.mrf.mxu1 }
 0x38a   :  { %11083 = vst [vmem:[#allocation25_spill] sm:$0xff] %v10284_v43  ;;  %v4265_v43 = vadd.f32 %v7528_v28, %v7476_v26  ;;  %v10324_v28 = vpop.f32.mrf.mxu0 }
 0x38b   :  { %v7574_v3 = vpop.f32.mrf.mxu1 }
 0x38c   :  { %v4819_v34 = vadd.f32 %v7574_v3, %v4245_v56 }
 0x38d   :  { %v4659_v48 = vpop.f32.mrf.mxu1 }
 0x38e   :  { %v4858_v37 = vadd.f32 %v10289_v20, %v4819_v34  ;;  %v4818_v27 = vadd.f32 %v4659_v48, %v4240_v13  ;;  %v4260_v48 = vadd.f32 %v4259_v15, %v10214_v53  ;;  %v4285_v34 = vadd.f32 %v10240_v0, %v10220_v36 }
 0x38f   :  { %v7577_v7 = vpop.f32.mrf.mxu1  ;;  %v4280_v36 = vadd.f32 %v10246_v38, %v10222_v44 }
 0x390   :  { %v4857_v59 = vadd.f32 %v10289_v20, %v4818_v27  ;;  %v4821_v30 = vadd.f32 %v7577_v7, %v4255_v63  ;;  %v10297_v47 = vmax.f32 %v4858_v37, 0.0 }
 0x391   :  { %v4669_v41 = vpop.f32.mrf.mxu1 }
 0x392   :  { %v10299_v14 = vmax.f32 %v4857_v59, 0.0  ;;  %v4860_v6 = vadd.f32 %v10289_v20, %v4821_v30  ;;  %v4820_v57 = vadd.f32 %v4669_v41, %v4250_v33  ;;  %v5609_v27 = vrot.slane %v10297_v47, 6 }
 0x393   :  { %v7580_v17 = vpop.f32.mrf.mxu1  ;;  %v4275_v41 = vadd.f32 %v7531_v50, %v10216_v35  ;;  %v4270_v35 = vadd.f32 %v10234_v52, %v10218_v10 }
 0x394   :  { %v10955_v56 = vrot.slane %v10299_v14, 6  ;;  %v4823_v3 = vadd.f32 %v7580_v17, %v4265_v43  ;;  %7676 = vmatprep.mubr.msk.f32.mxu1 %vm2085_vm12, %v10299_v14  ;;  %v4859_v37 = vadd.f32 %v10289_v20, %v4820_v57  ;;  %v10314_v21 = vmax.f32 %v4860_v6, 0.0 }
 0x395   :  { %v4679_v63 = vpop.f32.mrf.mxu1  ;;  %7677 = vmatmul.mubr.msk.f32.vlgmr.msra.gmra.mxu1 %vm2085_vm12, %v10297_v47 }
 0x396   :  { %v4862_v33 = vadd.f32 %v10289_v20, %v4823_v3  ;;  %v4822_v7 = vadd.f32 %v4679_v63, %v4260_v48  ;;  %v10316_v26 = vmax.f32 %v4859_v37, 0.0  ;;  %v10322_v60 = vsel %vm536_vm1, %v10955_v56, %v5609_v27  ;;  %v10346_v48 = vpop.f32.mrf.mxu0 }
 0x397   :  { %v7583_v53 = vpop.f32.mrf.mxu1  ;;  %v5611_v10 = vrot.slane %v10314_v21, 6 }
 0x398   :  { %v4861_v15 = vadd.f32 %v10289_v20, %v4822_v7  ;;  %v4825_v43 = vadd.f32 %v7583_v53, %v4275_v41  ;;  %v5610_v50 = vrot.slane %v10316_v26, 6  ;;  %7679 = vmatprep.mubr.msk.f32.mxu1 %vm2085_vm12, %v10316_v26  ;;  %v10334_v59 = vmax.f32 %v4862_v33, 0.0 }
 0x399   :  { %v4689_v13 = vpop.f32.mrf.mxu1  ;;  %7680 = vmatmul.mubr.msk.f32.gmra.mxu1 %vm2085_vm12, %v10314_v21 }
 0x39a   :  { %v10336_v30 = vmax.f32 %v4861_v15, 0.0  ;;  %v4864_v6 = vadd.f32 %v10289_v20, %v4825_v43  ;;  %v4824_v52 = vadd.f32 %v4689_v13, %v4270_v35  ;;  %v10344_v17 = vsel %vm536_vm1, %v5609_v27, %v5610_v50  ;;  %v10372_v35 = vpop.f32.mrf.mxu0 }
 0x39b   :  { %v7586_v57 = vpop.f32.mrf.mxu1  ;;  %v10356_v41 = vsel %vm536_vm1, %v5610_v50, %v5611_v10  ;;  %v4295_v27 = vadd.f32 %v10252_v9, %v10224_v24  ;;  %v5613_v33 = vrot.slane %v10334_v59, 6  ;;  %v4290_v13 = vadd.f32 %v10258_v2, %v10226_v18 }
 0x39c   :  { %v5612_v0 = vrot.slane %v10336_v30, 6  ;;  %v4827_v3 = vadd.f32 %v7586_v57, %v4285_v34  ;;  %7682 = vmatprep.mubr.msk.f32.mxu1 %vm2085_vm12, %v10336_v30  ;;  %v4863_v37 = vadd.f32 %v10289_v20, %v4824_v52  ;;  %v10361_v7 = vmax.f32 %v4864_v6, 0.0 }
 0x39d   :  { %v4699_v63 = vpop.f32.mrf.mxu1  ;;  %7683 = vmatmul.mubr.msk.f32.gmra.mxu1 %vm2085_vm12, %v10334_v59 }
 0x39e   :  { %v4826_v44 = vadd.f32 %v4699_v63, %v4280_v36  ;;  %v10365_v38 = vmax.f32 %v4863_v37, 0.0  ;;  %v4866_v53 = vadd.f32 %v10289_v20, %v4827_v3  ;;  %v10370_v43 = vsel %vm536_vm1, %v5611_v10, %v5612_v0  ;;  %v10398_v37 = vpop.f32.mrf.mxu0 }
 0x39f   :  { %v7589_v15 = vpop.f32.mrf.mxu1  ;;  %v10377_v50 = vsel %vm536_vm1, %v5612_v0, %v5613_v33  ;;  %v4305_v10 = vadd.f32 %v10264_v42, %v10228_v23  ;;  %v5615_v52 = vrot.slane %v10361_v7, 6  ;;  %v4300_v23 = vadd.f32 %v10270_v55, %v10230_v61 }
 0x3a0   :  { %v4865_v24 = vadd.f32 %v10289_v20, %v4826_v44  ;;  %v4829_v9 = vadd.f32 %v7589_v15, %v4295_v27  ;;  %v5614_v34 = vrot.slane %v10365_v38, 6  ;;  %7685 = vmatprep.mubr.msk.f32.mxu1 %vm2085_vm12, %v10365_v38  ;;  %v10391_v36 = vmax.f32 %v4866_v53, 0.0 }
 0x3a1   :  { %v4709_v6 = vpop.f32.mrf.mxu1  ;;  %7686 = vmatmul.mubr.msk.f32.gmra.mxu1 %vm2085_vm12, %v10361_v7 }
 0x3a2   :  { %v10387_v57 = vmax.f32 %v4865_v24, 0.0  ;;  %v4868_v18 = vadd.f32 %v10289_v20, %v4829_v9  ;;  %v4828_v2 = vadd.f32 %v4709_v6, %v4290_v13  ;;  %v10396_v3 = vsel %vm536_vm1, %v5613_v33, %v5614_v34  ;;  %v10424_v6 = vpop.f32.mrf.mxu0 }
 0x3a3   :  { %v7592_v0 = vpop.f32.mrf.mxu1  ;;  %v10408_v53 = vsel %vm536_vm1, %v5614_v34, %v5615_v52  ;;  %v4315_v33 = vadd.f32 %v10276_v1, %v10232_v11  ;;  %v5617_v61 = vrot.slane %v10391_v36, 6 }
 0x3a4   :  { %v5616_v42 = vrot.slane %v10387_v57, 6  ;;  %v4831_v63 = vadd.f32 %v7592_v0, %v4305_v10  ;;  %7688 = vmatprep.mubr.msk.f32.mxu1 %vm2085_vm12, %v10387_v57  ;;  %v4867_v27 = vadd.f32 %v10289_v20, %v4828_v2  ;;  %v10416_v55 = vmax.f32 %v4868_v18, 0.0 }
 0x3a5   :  { %v4719_v44 = vpop.f32.mrf.mxu1  ;;  %7689 = vmatmul.mubr.msk.f32.gmra.mxu1 %vm2085_vm12, %v10391_v36  ;;  %v4310_v10 = vadd.f32 %v10282_v32, %v10236_v16 }
 0x3a6   :  { %v4870_v15 = vadd.f32 %v10289_v20, %v4831_v63  ;;  %v4830_v24 = vadd.f32 %v4719_v44, %v4300_v23  ;;  %v10418_v9 = vmax.f32 %v4867_v27, 0.0  ;;  %v10422_v34 = vsel %vm536_vm1, %v5615_v52, %v5616_v42 }
 0x3a7   :  { %v7595_v13 = vpop.f32.mrf.mxu1  ;;  %v10434_v0 = vsel %vm536_vm1, %v5616_v42, %v5617_v61  ;;  %v4325_v52 = vadd.f32 %v10291_v25, %v10238_v54  ;;  %v5619_v16 = vrot.slane %v10416_v55, 6  ;;  %v4320_v54 = vadd.f32 %v10294_v58, %v10242_v51 }
 0x3a8   :  { %v4869_v11 = vadd.f32 %v10289_v20, %v4830_v24  ;;  %v4833_v1 = vadd.f32 %v7595_v13, %v4315_v33  ;;  %v5618_v2 = vrot.slane %v10418_v9, 6  ;;  %7691 = vmatprep.mubr.msk.f32.mxu1 %vm2085_vm12, %v10418_v9  ;;  %v10438_v23 = vmax.f32 %v4870_v15, 0.0  ;;  %v7558_v33 = vpop.f32.mrf.mxu0 }
 0x3a9   :  { %v4729_v18 = vpop.f32.mrf.mxu1  ;;  %7692 = vmatmul.mubr.msk.f32.gmra.mxu1 %vm2085_vm12, %v10416_v55  ;;  %v5680_v4 = vsel %vm577_vm5, %v10422_v34, 0.0  ;;  %vm6048_vm5 = vcmask 1043459  }
 0x3aa   :  { %v10440_v63 = vmax.f32 %v4869_v11, 0.0  ;;  %v4872_v27 = vadd.f32 %v10289_v20, %v4833_v1  ;;  %v4832_v32 = vadd.f32 %v4729_v18, %v4310_v10  ;;  %v10448_v42 = vsel %vm536_vm1, %v5617_v61, %v5618_v2 }
 0x3ab   :  { %v7598_v44 = vpop.f32.mrf.mxu1  ;;  %v10458_v11 = vsel %vm536_vm1, %v5618_v2, %v5619_v16  ;;  %v4335_v61 = vadd.f32 %v10302_v19, %v10244_v8  ;;  %v5621_v1 = vrot.slane %v10438_v23, 6 }
 0x3ac   :  { %v5620_v25 = vrot.slane %v10440_v63, 6  ;;  %v4835_v15 = vadd.f32 %v7598_v44, %v4325_v52  ;;  %7694 = vmatprep.mubr.msk.f32.mxu1 %vm2085_vm12, %v10440_v63  ;;  %v4871_v24 = vadd.f32 %v10289_v20, %v4832_v32  ;;  %v10463_v10 = vmax.f32 %v4872_v27, 0.0  ;;  %v4359_v32 = vpop.f32.mrf.mxu0 }
 0x3ad   :  { %v4739_v13 = vpop.f32.mrf.mxu1  ;;  %7695 = vmatmul.mubr.msk.f32.gmra.mxu1 %vm2085_vm12, %v10438_v23  ;;  %v4330_v44 = vadd.f32 %v10324_v28, %v10248_v46 }
 0x3ae   :  { %v4834_v58 = vadd.f32 %v4739_v13, %v4320_v54  ;;  %v10467_v51 = vmax.f32 %v4871_v24, 0.0  ;;  %v4874_v18 = vadd.f32 %v10289_v20, %v4835_v15  ;;  %v10472_v2 = vsel %vm536_vm1, %v5619_v16, %v5620_v25 }
 0x3af   :  { %v7601_v52 = vpop.f32.mrf.mxu1  ;;  %v10477_v27 = vsel %vm536_vm1, %v5620_v25, %v5621_v1  ;;  %v4345_v16 = vadd.f32 %v10346_v48, %v10250_v5  ;;  %v5623_v24 = vrot.slane %v10463_v10, 6  ;;  %v4340_v5 = vadd.f32 %v10372_v35, %v10254_v31 }
 0x3b0   :  { %v4873_v8 = vadd.f32 %v10289_v20, %v4834_v58  ;;  %v4837_v19 = vadd.f32 %v7601_v52, %v4335_v61  ;;  %v5622_v54 = vrot.slane %v10467_v51, 6  ;;  %7697 = vmatprep.mubr.msk.f32.mxu1 %vm2085_vm12, %v10467_v51  ;;  %v10491_v25 = vmax.f32 %v4874_v18, 0.0  ;;  %v7561_v52 = vpop.f32.mrf.mxu0 }
 0x3b1   :  { %v4749_v15 = vpop.f32.mrf.mxu1  ;;  %7698 = vmatmul.mubr.msk.f32.gmra.mxu1 %vm2085_vm12, %v10463_v10 }
 0x3b2   :  { %v10487_v13 = vmax.f32 %v4873_v8, 0.0  ;;  %v4876_v46 = vadd.f32 %v10289_v20, %v4837_v19  ;;  %v4836_v28 = vadd.f32 %v4749_v15, %v4330_v44  ;;  %v10496_v58 = vsel %vm536_vm1, %v5621_v1, %v5622_v54 }
 0x3b3   :  { %v7604_v61 = vpop.f32.mrf.mxu1  ;;  %v10506_v19 = vsel %vm536_vm1, %v5622_v54, %v5623_v24  ;;  %v4355_v1 = vadd.f32 %v10398_v37, %v10256_v62  ;;  %v5625_v31 = vrot.slane %v10491_v25, 6 }
 0x3b4   :  { %v5624_v48 = vrot.slane %v10487_v13, 6  ;;  %v4839_v8 = vadd.f32 %v7604_v61, %v4345_v16  ;;  %7700 = vmatprep.mubr.msk.f32.mxu1 %vm2085_vm12, %v10487_v13  ;;  %v4875_v18 = vadd.f32 %v10289_v20, %v4836_v28  ;;  %v10514_v35 = vmax.f32 %v4876_v46, 0.0  ;;  %v4369_v61 = vpop.f32.mrf.mxu0 }
 0x3b5   :  { %v4759_v56 = vpop.f32.mrf.mxu1  ;;  %7701 = vmatmul.mubr.msk.f32.gmra.mxu1 %vm2085_vm12, %v10491_v25 }
 0x3b6   :  { %v4878_v44 = vadd.f32 %v10289_v20, %v4839_v8  ;;  %v4838_v15 = vadd.f32 %v4759_v56, %v4340_v5  ;;  %v10516_v16 = vmax.f32 %v4875_v18, 0.0  ;;  %v10520_v54 = vsel %vm536_vm1, %v5623_v24, %v5624_v48 }
 0x3b7   :  { %v7607_v28 = vpop.f32.mrf.mxu1  ;;  %11084 = vst [vmem:[#allocation10_spill] sm:$0xff] %v10520_v54  ;;  %v4350_v56 = vadd.f32 %v10424_v6, %v10260_v29  ;;  %v10530_v8 = vsel %vm536_vm1, %v5624_v48, %v5625_v31  ;;  %v4365_v24 = vadd.f32 %v7558_v33, %v10262_v39  ;;  %v5627_v29 = vrot.slane %v10514_v35, 6  ;;  %v7564_v48 = vpop.f32.mrf.mxu0 }
 0x3b8   :  { %v4877_v62 = vadd.f32 %v10289_v20, %v4838_v15  ;;  %v4841_v37 = vadd.f32 %v7607_v28, %v4355_v1  ;;  %v5626_v5 = vrot.slane %v10516_v16, 6  ;;  %7703 = vmatprep.mubr.msk.f32.mxu1 %vm2085_vm12, %v10516_v16  ;;  %11085 = vst [vmem:[#allocation26_spill] sm:$0xff] %v10530_v8  ;;  %v10533_v18 = vmax.f32 %v4878_v44, 0.0 }
 0x3b9   :  { %v4769_v46 = vpop.f32.mrf.mxu1  ;;  %7704 = vmatmul.mubr.msk.f32.gmra.mxu1 %vm2085_vm12, %v10514_v35  ;;  %v4360_v39 = vadd.f32 %v4359_v32, %v10266_v40 }
 0x3ba   :  { %v10535_v54 = vmax.f32 %v4877_v62, 0.0  ;;  %v4880_v6 = vadd.f32 %v10289_v20, %v4841_v37  ;;  %v4840_v1 = vadd.f32 %v4769_v46, %v4350_v56  ;;  %v10543_v28 = vsel %vm536_vm1, %v5625_v31, %v5626_v5 }
 0x3bb   :  { %v7610_v15 = vpop.f32.mrf.mxu1  ;;  %v10552_v37 = vsel %vm536_vm1, %v5626_v5, %v5627_v29  ;;  %v4375_v56 = vadd.f32 %v7561_v52, %v10268_v22  ;;  %v5629_v31 = vrot.slane %v10533_v18, 6  ;;  %v4379_v5 = vpop.f32.mrf.mxu0 }
 0x3bc   :  { %v5628_v33 = vrot.slane %v10535_v54, 6  ;;  %v4843_v44 = vadd.f32 %v7610_v15, %v4365_v24  ;;  %7706 = vmatprep.mubr.msk.f32.mxu1 %vm2085_vm12, %v10535_v54  ;;  %v4879_v62 = vadd.f32 %v10289_v20, %v4840_v1  ;;  %v10558_v40 = vmax.f32 %v4880_v6, 0.0 }
 0x3bd   :  { %v4779_v8 = vpop.f32.mrf.mxu1  ;;  %7707 = vmatmul.mubr.msk.f32.gmra.mxu1 %vm2085_vm12, %v10533_v18  ;;  %v4370_v6 = vadd.f32 %v4369_v61, %v10272_v49 }
 0x3be   :  { %v4842_v46 = vadd.f32 %v4779_v8, %v4360_v39  ;;  %v10560_v32 = vmax.f32 %v4879_v62, 0.0  ;;  %v4882_v24 = vadd.f32 %v10289_v20, %v4843_v44  ;;  %v10565_v15 = vsel %vm536_vm1, %v5627_v29, %v5628_v33 }
 0x3bf   :  { %v7613_v1 = vpop.f32.mrf.mxu1  ;;  %11086 = vst [vmem:[#allocation11_spill] sm:$0xff] %v10565_v15  ;;  %v10570_v8 = vsel %vm536_vm1, %v5628_v33, %v5629_v31  ;;  %v4385_v62 = vadd.f32 %v7564_v48, %v10274_v45  ;;  %v5631_v33 = vrot.slane %v10558_v40, 6  ;;  %v4380_v45 = vadd.f32 %v4379_v5, %v10278_v12 }
 0x3c0   :  { %v4881_v22 = vadd.f32 %v10289_v20, %v4842_v46  ;;  %v4845_v52 = vadd.f32 %v7613_v1, %v4375_v56  ;;  %11087 = vst [vmem:[#allocation27_spill] sm:$0xff] %v10570_v8  ;;  %v5630_v39 = vrot.slane %v10560_v32, 6  ;;  %7709 = vmatprep.mubr.msk.f32.mxu1 %vm2085_vm12, %v10560_v32  ;;  %v10583_v56 = vmax.f32 %v4882_v24, 0.0  ;;  %v7567_v1 = vpop.f32.mrf.mxu0 }
 0x3c1   :  { %v4789_v44 = vpop.f32.mrf.mxu1  ;;  %7710 = vmatmul.mubr.msk.f32.gmra.mxu1 %vm2085_vm12, %v10558_v40 }
 0x3c2   :  { %v10577_v29 = vmax.f32 %v4881_v22, 0.0  ;;  %v4884_v15 = vadd.f32 %v10289_v20, %v4845_v52  ;;  %v4844_v49 = vadd.f32 %v4789_v44, %v4370_v6  ;;  %v10587_v46 = vsel %vm536_vm1, %v5629_v31, %v5630_v39  ;;  %v11090_v6 = vld [vmem:[#allocation9_spill] sm:$0xff] }
 0x3c3   :  { %v7616_v61 = vpop.f32.mrf.mxu1  ;;  %11088 = vst [vmem:[#allocation12_spill] sm:$0xff] %v10587_v46  ;;  %v10596_v24 = vsel %vm536_vm1, %v5630_v39, %v5631_v33  ;;  %v4395_v44 = vadd.f32 %v7567_v1, %v11090_v6  ;;  %v5633_v5 = vrot.slane %v10583_v56, 6  ;;  %v4389_v39 = vpop.f32.mrf.mxu0  ;;  %v11092_v6 = vld [vmem:[#allocation25_spill] sm:$0xff] }
 0x3c4   :  { %v5632_v48 = vrot.slane %v10577_v29, 6  ;;  %v4847_v22 = vadd.f32 %v7616_v61, %v4385_v62  ;;  %7712 = vmatprep.mubr.msk.f32.mxu1 %vm2085_vm12, %v10577_v29  ;;  %v4883_v52 = vadd.f32 %v10289_v20, %v4844_v49  ;;  %11089 = vst [vmem:[#allocation28_spill] sm:$0xff] %v10596_v24  ;;  %v10599_v31 = vmax.f32 %v4884_v15, 0.0 }
 0x3c5   :  { %v4799_v8 = vpop.f32.mrf.mxu1  ;;  %7713 = vmatmul.mubr.msk.f32.gmra.mxu1 %vm2085_vm12, %v10583_v56  ;;  %v4390_v24 = vadd.f32 %v4389_v39, %v11092_v6  ;;  %v4926_v6 = vrot.slane %v10316_v26, 4 }
 0x3c6   :  { %v4886_v46 = vadd.f32 %v10289_v20, %v4847_v22  ;;  %v4846_v12 = vadd.f32 %v4799_v8, %v4380_v45  ;;  %v10605_v62 = vmax.f32 %v4883_v52, 0.0  ;;  %v10609_v61 = vsel %vm536_vm1, %v5631_v33, %v5632_v48 }
 0x3c7   :  { %v7619_v49 = vpop.f32.mrf.mxu1  ;;  %11091 = vst [vmem:[#allocation13_spill] sm:$0xff] %v10609_v61  ;;  %v10620_v52 = vsel %vm536_vm1, %v5632_v48, %v5633_v5  ;;  %v5635_v33 = vrot.slane %v10599_v31, 6 }
 0x3c8   :  { %v4885_v1 = vadd.f32 %v10289_v20, %v4846_v12  ;;  %v4849_v15 = vadd.f32 %v7619_v49, %v4395_v44  ;;  %v5634_v8 = vrot.slane %v10605_v62, 6  ;;  %v10614_v45 = vmax.f32 %v4886_v46, 0.0  ;;  %7715 = vmatprep.mubr.msk.f32.mxu1 %vm2085_vm12, %v10605_v62 }
 0x3c9   :  { %v4809_v22 = vpop.f32.mrf.mxu1  ;;  %7716 = vmatmul.mubr.msk.f32.gmra.mxu1 %vm2085_vm12, %v10599_v31 }
 0x3ca   :  { %v10623_v61 = vmax.f32 %v4885_v1, 0.0  ;;  %v4888_v44 = vadd.f32 %v10289_v20, %v4849_v15  ;;  %v4848_v12 = vadd.f32 %v4809_v22, %v4390_v24  ;;  %v10630_v46 = vsel %vm536_vm1, %v5633_v5, %v5634_v8 }
 0x3cb   :  { %v10639_v48 = vsel %vm536_vm1, %v5634_v8, %v5635_v33  ;;  %v5637_v1 = vrot.slane %v10614_v45, 6  ;;  %v4924_v24 = vrot.slane %v10299_v14, 4 }
 0x3cc   :  { %v5636_v49 = vrot.slane %v10623_v61, 6  ;;  %v10633_v39 = vmax.f32 %v4888_v44, 0.0  ;;  %7718 = vmatprep.mubr.msk.f32.mxu1 %vm2085_vm12, %v10623_v61  ;;  %11093 = vst [vmem:[#allocation29_spill] sm:$0xff] %v10639_v48  ;;  %v4887_v15 = vadd.f32 %v10289_v20, %v4848_v12  ;;  %v4925_v20 = vrot.slane %v10297_v47, 4 }
 0x3cd   :  { %7719 = vmatmul.mubr.msk.f32.gmra.mxu1 %vm2085_vm12, %v10614_v45 }
 0x3ce   :  { %v10956_v5 = vrot.slane %v10633_v39, 4  ;;  %v10648_v22 = vmax.f32 %v4887_v15, 0.0  ;;  %v10652_v44 = vsel %vm536_vm1, %v5635_v33, %v5636_v49  ;;  %v10656_v8 = vsel %vm536_vm1, %v5636_v49, %v5637_v1  ;;  %v6546_v49 = vld [vmem:[%s10923_s9 + $0x10] sm:$0xff] }
 0x3cf   :  { %11094 = vst [vmem:[#allocation14_spill] sm:$0xff] %v10656_v8  ;;  %v4986_v47 = vsel %vm3593_vm13, %v4924_v24, %v4925_v20  ;;  %v4985_v48 = vsel %vm3593_vm13, %v4925_v20, %v4926_v6  ;;  %v4927_v8 = vrot.slane %v10314_v21, 4  ;;  %v4932_v21 = vrot.slane %v10387_v57, 4 }
 0x3d0   :  { %v4987_v12 = vsel %vm3593_vm13, %v10956_v5, %v4924_v24  ;;  %v5638_v26 = vrot.slane %v10648_v22, 6  ;;  %7721 = vmatprep.mubr.msk.f32.mxu1 %vm2085_vm12, %v10648_v22  ;;  %v4928_v5 = vrot.slane %v10336_v30, 4  ;;  %v11097_v30 = vld [vmem:[#allocation24_spill] sm:$0xff]  ;;  %v4934_v57 = vrot.slane %v10418_v9, 4 }
 0x3d1   :  { %v4988_v15 = vsel %vm3626_vm14, %v4987_v12, 0.0  ;;  %7722 = vmatmul.mubr.msk.f32.gmra.mxu1 %vm2085_vm12, %v10633_v39  ;;  %v4984_v20 = vsel %vm3593_vm13, %v4926_v6, %v4927_v8  ;;  %v4935_v9 = vrot.slane %v10416_v55, 4  ;;  %v4939_v55 = vrot.slane %v10463_v10, 4 }
 0x3d2   :  { %7624 = vmatprep.mubr.msk.f32.mxu0 %vm2085_vm12, %v4988_v15  ;;  %v10683_v12 = vsel %vm536_vm1, %v5637_v1, %v5638_v26  ;;  %v11096_v15 = vrot.slane %v10633_v39, 6  ;;  %v4930_v1 = vrot.slane %v10365_v38, 4 }
 0x3d3   :  { %7625 = vmatmul.mubr.msk.f32.vlgmr.msra.gmra.mxu0 %vm2085_vm12, %v4986_v47  ;;  %v4983_v47 = vsel %vm3593_vm13, %v4927_v8, %v4928_v5  ;;  %v4933_v8 = vrot.slane %v10391_v36, 4  ;;  %v4938_v36 = vrot.slane %v10467_v51, 4 }
 0x3d4   :  { %v10689_v24 = vsel %vm536_vm1, %v5638_v26, %v11096_v15  ;;  %7627 = vmatprep.mubr.msk.f32.mxu0 %vm2085_vm12, %v4985_v48  ;;  %7725 = vmatpush3.msra.mxu0 %v11097_v30  ;;  %v4929_v26 = vrot.slane %v10334_v59, 4  ;;  %v4931_v48 = vrot.slane %v10361_v7, 4  ;;  %v4936_v30 = vrot.slane %v10440_v63, 4 }
 0x3d5   :  { %7726 = vmatprep.subr.mxu0 %v6546_v49  ;;  %v4937_v63 = vrot.slane %v10438_v23, 4  ;;  %v4972_v23 = vsel %vm3593_vm13, %v4938_v36, %v4939_v55 }
 0x3d6   :  { %7727 = vmatpush3.msra.mxu0 %v6546_v49  ;;  %v4982_v15 = vsel %vm3593_vm13, %v4928_v5, %v4929_v26  ;;  %v4981_v38 = vsel %vm3593_vm13, %v4929_v26, %v4930_v1  ;;  %v4979_v6 = vsel %vm3593_vm13, %v4931_v48, %v4932_v21  ;;  %v4980_v59 = vsel %vm3593_vm13, %v4930_v1, %v4931_v48 }
 0x3d7   :  { %7628 = vmatmul.mubr.msk.f32.gmra.mxu0 %vm2085_vm12, %v4984_v20  ;;  %v4996_v5 = vsel %vm3634_vm15, %v4979_v6, 0.0  ;;  %v4978_v49 = vsel %vm3593_vm13, %v4932_v21, %v4933_v8  ;;  %v4977_v20 = vsel %vm3593_vm13, %v4933_v8, %v4934_v57  ;;  %v4976_v1 = vsel %vm3593_vm13, %v4934_v57, %v4935_v9 }
 0x3d8   :  { %7630 = vmatprep.mubr.msk.f32.mxu0 %vm2085_vm12, %v4983_v47  ;;  %v4975_v47 = vsel %vm3593_vm13, %v4935_v9, %v4936_v30  ;;  %v4940_v26 = vrot.slane %v10487_v13, 4  ;;  %v4974_v21 = vsel %vm3593_vm13, %v4936_v30, %v4937_v63  ;;  %v4973_v51 = vsel %vm3593_vm13, %v4937_v63, %v4938_v36 }
 0x3d9   :  { %v4942_v13 = vrot.slane %v10516_v16, 4  ;;  %v4943_v16 = vrot.slane %v10514_v35, 4  ;;  %v4947_v35 = vrot.slane %v10558_v40, 4 }
 0x3da   :  { %v4971_v48 = vsel %vm3593_vm13, %v4939_v55, %v4940_v26 }
 0x3db   :  { %7631 = vmatmul.mubr.msk.f32.gmra.mxu0 %vm2085_vm12, %v4982_v15  ;;  %v5004_v15 = vsel %vm3642_vm0, %v4971_v48, 0.0 }
 0x3dc   :  { %7633 = vmatprep.mubr.msk.f32.mxu0 %vm2085_vm12, %v4981_v38  ;;  %v4941_v38 = vrot.slane %v10491_v25, 4  ;;  %v4946_v25 = vrot.slane %v10560_v32, 4 }
 0x3de   :  { %v4970_v6 = vsel %vm3593_vm13, %v4940_v26, %v4941_v38  ;;  %v4969_v57 = vsel %vm3593_vm13, %v4941_v38, %v4942_v13 }
 0x3df   :  { %7634 = vmatmul.mubr.msk.f32.gmra.mxu0 %vm2085_vm12, %v4980_v59  ;;  %v4944_v59 = vrot.slane %v10535_v54, 4  ;;  %v4945_v54 = vrot.slane %v10533_v18, 4  ;;  %v4964_v18 = vsel %vm3593_vm13, %v4946_v25, %v4947_v35 }
 0x3e0   :  { %7636 = vmatprep.mubr.msk.f32.mxu0 %vm2085_vm12, %v4996_v5  ;;  %v4968_v5 = vsel %vm3593_vm13, %v4942_v13, %v4943_v16 }
 0x3e1   :  { %v4967_v8 = vsel %vm3593_vm13, %v4943_v16, %v4944_v59  ;;  %v4966_v30 = vsel %vm3593_vm13, %v4944_v59, %v4945_v54  ;;  %v4965_v32 = vsel %vm3593_vm13, %v4945_v54, %v4946_v25 }
 0x3e3   :  { %7637 = vmatmul.mubr.msk.f32.gmra.mxu0 %vm2085_vm12, %v4978_v49  ;;  %v4948_v49 = vrot.slane %v10577_v29, 4  ;;  %v4950_v29 = vrot.slane %v10605_v62, 4  ;;  %v4951_v62 = vrot.slane %v10599_v31, 4 }
 0x3e4   :  { %7639 = vmatprep.mubr.msk.f32.mxu0 %vm2085_vm12, %v4977_v20 }
 0x3e5   :  { %v4963_v20 = vsel %vm3593_vm13, %v4947_v35, %v4948_v49  ;;  %v4960_v26 = vsel %vm3593_vm13, %v4950_v29, %v4951_v62 }
 0x3e6   :  { %v5012_v9 = vsel %vm3650_vm3, %v4963_v20, 0.0 }
 0x3e7   :  { %7640 = vmatmul.mubr.msk.f32.gmra.mxu0 %vm2085_vm12, %v4976_v1  ;;  %v4949_v1 = vrot.slane %v10583_v56, 4  ;;  %v4954_v56 = vrot.slane %v10648_v22, 4  ;;  %v11101_v22 = vrot.slane %v10299_v14, 6  ;;  %v11104_v14 = vld [vmem:[#allocation10_spill] sm:$0xff] }
 0x3e8   :  { %7642 = vmatprep.mubr.msk.f32.mxu0 %vm2085_vm12, %v4975_v47  ;;  %v4952_v47 = vrot.slane %v10623_v61, 4  ;;  %v4953_v61 = vrot.slane %v10614_v45, 4  ;;  %v11103_v45 = vrot.slane %v10633_v39, 4 }
 0x3e9   :  { %v4962_v36 = vsel %vm3593_vm13, %v4948_v49, %v4949_v1  ;;  %v4961_v63 = vsel %vm3593_vm13, %v4949_v1, %v4950_v29 }
 0x3ea   :  { %v4959_v55 = vsel %vm3593_vm13, %v4951_v62, %v4952_v47  ;;  %v4957_v31 = vsel %vm3593_vm13, %v4953_v61, %v4954_v56 }
 0x3eb   :  { %7643 = vmatmul.mubr.msk.f32.gmra.mxu0 %vm2085_vm12, %v4974_v21  ;;  %v4958_v21 = vsel %vm3593_vm13, %v4952_v47, %v4953_v61 }
 0x3ec   :  { %7645 = vmatprep.mubr.msk.f32.mxu0 %vm2085_vm12, %v4973_v51  ;;  %v11102_v51 = vrot.slane %v10633_v39, 6 }
 0x3ee   :  { %v5671_v48 = vsel %vm536_vm1, %v11102_v51, %v11101_v22  ;;  %vm7834_vm1 = vmmov 0  }
 0x3ef   :  { %7646 = vmatmul.mubr.msk.f32.gmra.mxu0 %vm2085_vm12, %v4972_v23  ;;  %v4956_v23 = vsel %vm3593_vm13, %v4954_v56, %v11103_v45  ;;  %v5672_v13 = vsel %vm569_vm2, %v5671_v48, 0.0  ;;  %v18_v56 = vstv %s10926_s12  ;;  %vm6042_vm2 = vcmask 1041409  }
 0x3f0   :  { %7648 = vmatprep.mubr.msk.f32.mxu0 %vm2085_vm12, %v5004_v15  ;;  %19 = vst [vmem:[#allocation2] sm:$0x1] %v18_v56 }
 0x3f3   :  { %7649 = vmatmul.mubr.msk.f32.gmra.mxu0 %vm2085_vm12, %v4970_v6 }
 0x3f4   :  { %7651 = vmatprep.mubr.msk.f32.mxu0 %vm2085_vm12, %v4969_v57 }
 0x3f7   :  { %7652 = vmatmul.mubr.msk.f32.gmra.mxu0 %vm2085_vm12, %v4968_v5  ;;  %v6027_v5 = vld [vmem:[%s10925_s11] sm:$0xff] }
 0x3f8   :  { %7654 = vmatprep.mubr.msk.f32.mxu0 %vm2085_vm12, %v4967_v8 }
 0x3fb   :  { %7655 = vmatmul.mubr.msk.f32.gmra.mxu0 %vm2085_vm12, %v4966_v30 }
 0x3fc   :  { %7657 = vmatprep.mubr.msk.f32.mxu0 %vm2085_vm12, %v4965_v32 }
 0x3ff   :  { %7658 = vmatmul.mubr.msk.f32.gmra.mxu0 %vm2085_vm12, %v4964_v18 }
 0x400   :  { %7660 = vmatprep.mubr.msk.f32.mxu0 %vm2085_vm12, %v5012_v9 }
 0x403   :  { %7661 = vmatmul.mubr.msk.f32.gmra.mxu0 %vm2085_vm12, %v4962_v36 }
 0x404   :  { %7663 = vmatprep.mubr.msk.f32.mxu0 %vm2085_vm12, %v4961_v63 }
 0x407   :  { %7664 = vmatmul.mubr.msk.f32.gmra.mxu0 %vm2085_vm12, %v4960_v26 }
 0x408   :  { %7666 = vmatprep.mubr.msk.f32.mxu0 %vm2085_vm12, %v4959_v55 }
 0x40b   :  { %7667 = vmatmul.mubr.msk.f32.gmra.mxu0 %vm2085_vm12, %v4958_v21 }
 0x40c   :  { %7669 = vmatprep.mubr.msk.f32.mxu0 %vm2085_vm12, %v4957_v31 }
 0x40f   :  { %7670 = vmatmul.mubr.msk.f32.gmra.mxu0 %vm2085_vm12, %v4956_v23 }
 0x410   :  { %7728 = vmatprep.mubr.msk.f32.mxu0 %vm2085_vm12, %v5672_v13 }
 0x413   :  { %7729 = vmatmul.mubr.msk.f32.vlgmr.msra.gmra.mxu0 %vm2085_vm12, %v10322_v60  ;;  %v5688_v60 = vsel %vm585_vm6, %v11104_v14, 0.0  ;;  %vm6122_vm6 = vcmask 3072  }
 0x414   :  { %7731 = vmatprep.mubr.msk.f32.mxu0 %vm2085_vm12, %v10344_v17  ;;  %v11105_v17 = vld [vmem:[#allocation26_spill] sm:$0xff] }
 0x417   :  { %7732 = vmatmul.mubr.msk.f32.gmra.mxu0 %vm2085_vm12, %v10356_v41  ;;  %v11106_v41 = vld [vmem:[#allocation11_spill] sm:$0xff] }
 0x418   :  { %7734 = vmatprep.mubr.msk.f32.mxu0 %vm2085_vm12, %v10370_v43  ;;  %v11107_v43 = vld [vmem:[#allocation27_spill] sm:$0xff] }
 0x41b   :  { %7735 = vmatmul.mubr.msk.f32.gmra.mxu0 %vm2085_vm12, %v10377_v50  ;;  %v11108_v50 = vld [vmem:[#allocation12_spill] sm:$0xff] }
 0x41c   :  { %7737 = vmatprep.mubr.msk.f32.mxu0 %vm2085_vm12, %v10396_v3  ;;  %v11109_v3 = vld [vmem:[#allocation28_spill] sm:$0xff] }
 0x41f   :  { %7738 = vmatmul.mubr.msk.f32.gmra.mxu0 %vm2085_vm12, %v10408_v53  ;;  %v11110_v53 = vld [vmem:[#allocation13_spill] sm:$0xff] }
 0x420   :  { %7740 = vmatprep.mubr.msk.f32.mxu0 %vm2085_vm12, %v5680_v4  ;;  %v5696_v34 = vsel %vm593_vm4, %v11110_v53, 0.0  ;;  %vm6045_vm4 = vcmask 1042434  }
 0x423   :  { %7741 = vmatmul.mubr.msk.f32.gmra.mxu0 %vm2085_vm12, %v10434_v0  ;;  %v11111_v0 = vld [vmem:[#allocation29_spill] sm:$0xff] }
 0x424   :  { %7743 = vmatprep.mubr.msk.f32.mxu0 %vm2085_vm12, %v10448_v42  ;;  %v11112_v42 = vld [vmem:[#allocation14_spill] sm:$0xff] }
 0x427   :  { %7744 = vmatmul.mubr.msk.f32.gmra.mxu0 %vm2085_vm12, %v10458_v11 }
 0x428   :  { %7746 = vmatprep.mubr.msk.f32.mxu0 %vm2085_vm12, %v10472_v2 }
 0x42b   :  { %7747 = vmatmul.mubr.msk.f32.gmra.mxu0 %vm2085_vm12, %v10477_v27 }
 0x42c   :  { %7749 = vmatprep.mubr.msk.f32.mxu0 %vm2085_vm12, %v10496_v58 }
 0x42f   :  { %7750 = vmatmul.mubr.msk.f32.gmra.mxu0 %vm2085_vm12, %v10506_v19 }
 0x430   :  { %7752 = vmatprep.mubr.msk.f32.mxu0 %vm2085_vm12, %v5688_v60 }
 0x433   :  { %7753 = vmatmul.mubr.msk.f32.gmra.mxu0 %vm2085_vm12, %v11105_v17 }
 0x434   :  { %7755 = vmatprep.mubr.msk.f32.mxu0 %vm2085_vm12, %v10543_v28  ;;  %v7833_v28 = vmov 0.0  }
 0x435   :  { %7776 = vmatprep.subr.mxu1 %v7833_v28  ;;  %7780 = vmatprep.mubr.msk.f32.mxu1 %vm7834_vm1, %v7833_v28 }
 0x437   :  { %7756 = vmatmul.mubr.msk.f32.gmra.mxu0 %vm2085_vm12, %v10552_v37  ;;  %v6028_v37 = vld [vmem:[%s10925_s11 + $0x8] sm:$0xff] }
 0x438   :  { %7758 = vmatprep.mubr.msk.f32.mxu0 %vm2085_vm12, %v11106_v41  ;;  %7777 = vmatpush3.msra.mxu1 %v6028_v37 }
 0x439   :  { %7778 = vmatprep.subr.mxu1 %v7833_v28 }
 0x43a   :  { %7779 = vmatpush3.msra.mxu1 %v6027_v5 }
 0x43b   :  { %7759 = vmatmul.mubr.msk.f32.gmra.mxu0 %vm2085_vm12, %v11107_v43 }
 0x43c   :  { %7761 = vmatprep.mubr.msk.f32.mxu0 %vm2085_vm12, %v11108_v50 }
 0x43f   :  { %7762 = vmatmul.mubr.msk.f32.gmra.mxu0 %vm2085_vm12, %v11109_v3 }
 0x440   :  { %7764 = vmatprep.mubr.msk.f32.mxu0 %vm2085_vm12, %v5696_v34 }
 0x443   :  { %7765 = vmatmul.mubr.msk.f32.gmra.mxu0 %vm2085_vm12, %v10620_v52 }
 0x444   :  { %7767 = vmatprep.mubr.msk.f32.mxu0 %vm2085_vm12, %v10630_v46 }
 0x447   :  { %7768 = vmatmul.mubr.msk.f32.gmra.mxu0 %vm2085_vm12, %v11111_v0 }
 0x448   :  { %7770 = vmatprep.mubr.msk.f32.mxu0 %vm2085_vm12, %v10652_v44 }
 0x44b   :  { %7771 = vmatmul.mubr.msk.f32.gmra.mxu0 %vm2085_vm12, %v11112_v42 }
 0x44c   :  { %7773 = vmatprep.mubr.msk.f32.mxu0 %vm2085_vm12, %v10683_v12 }
 0x44f   :  { %7774 = vmatmul.mubr.msk.f32.gmra.mxu0 %vm2085_vm12, %v10689_v24 }
 0x455   :  { %v7678_v11 = vpop.f32.mrf.mxu1 }
 0x457   :  { %v5477_v2 = vpop.f32.mrf.mxu1 }
 0x459   :  { %v7681_v27 = vpop.f32.mrf.mxu1 }
 0x45b   :  { %v5485_v58 = vpop.f32.mrf.mxu1 }
 0x45d   :  { %v7684_v19 = vpop.f32.mrf.mxu1 }
 0x45f   :  { %v5493_v52 = vpop.f32.mrf.mxu1 }
 0x461   :  { %v7687_v46 = vpop.f32.mrf.mxu1 }
 0x463   :  { %v5501_v39 = vpop.f32.mrf.mxu1 }
 0x465   :  { %v7690_v44 = vpop.f32.mrf.mxu1 }
 0x467   :  { %v5510_v33 = vpop.f32.mrf.mxu1 }
 0x469   :  { %v7693_v12 = vpop.f32.mrf.mxu1 }
 0x46b   :  { %v5518_v24 = vpop.f32.mrf.mxu1 }
 0x46d   :  { %v7696_v7 = vpop.f32.mrf.mxu1 }
 0x46f   :  { %v5526_v10 = vpop.f32.mrf.mxu1 }
 0x471   :  { %v7699_v15 = vpop.f32.mrf.mxu1 }
 0x473   :  { %v5534_v38 = vpop.f32.mrf.mxu1 }
 0x475   :  { %v7702_v6 = vpop.f32.mrf.mxu1 }
 0x476   :  { %v6580_v6 = vld [vmem:[%s10927_s10] ss:$0 sm:$0xff] }
 0x477   :  { %v5543_v59 = vpop.f32.mrf.mxu1 }
 0x479   :  { %v7705_v57 = vpop.f32.mrf.mxu1 }
 0x47b   :  { %v5551_v16 = vpop.f32.mrf.mxu1 }
 0x47d   :  { %v7708_v25 = vpop.f32.mrf.mxu1 }
 0x47f   :  { %v5559_v8 = vpop.f32.mrf.mxu1 }
 0x481   :  { %v7711_v54 = vpop.f32.mrf.mxu1 }
 0x483   :  { %v5567_v49 = vpop.f32.mrf.mxu1 }
 0x485   :  { %v7714_v35 = vpop.f32.mrf.mxu1 }
 0x487   :  { %v5576_v30 = vpop.f32.mrf.mxu1 }
 0x488   :  { %v11113_v30 = vld [vmem:[#allocation39_spill] sm:$0xff] }
 0x489   :  { %v7717_v32 = vpop.f32.mrf.mxu1 }
 0x48b   :  { %v5584_v20 = vpop.f32.mrf.mxu1 }
 0x48d   :  { %v7720_v18 = vpop.f32.mrf.mxu1 }
 0x48f   :  { %v5592_v29 = vpop.f32.mrf.mxu1 }
 0x491   :  { %v10898_v40 = vpop.f32.mrf.mxu1 }
 0x493   :  { %v7626_v9 = vpop.f32.mrf.mxu0  ;;  %v5600_v1 = vpop.f32.mrf.mxu1 }
 0x495   :  { %v5184_v36 = vpop.f32.mrf.mxu0 }
 0x496   :  { %v11114_v36 = vld [vmem:[#allocation7_spill] sm:$0xff] }
 0x497   :  { %v7629_v47 = vpop.f32.mrf.mxu0 }
 0x499   :  { %v5192_v63 = vpop.f32.mrf.mxu0 }
 0x49b   :  { %v7632_v62 = vpop.f32.mrf.mxu0 }
 0x49d   :  { %v5200_v26 = vpop.f32.mrf.mxu0 }
 0x49f   :  { %v7635_v55 = vpop.f32.mrf.mxu0 }
 0x4a0   :  { %v5506_v61 = vadd.f32 %v7687_v46, %v7635_v55 }
 0x4a1   :  { %v5208_v21 = vpop.f32.mrf.mxu0 }
 0x4a3   :  { %v7638_v31 = vpop.f32.mrf.mxu0 }
 0x4a5   :  { %v5217_v22 = vpop.f32.mrf.mxu0 }
 0x4a7   :  { %v7641_v51 = vpop.f32.mrf.mxu0 }
 0x4a9   :  { %v5225_v48 = vpop.f32.mrf.mxu0 }
 0x4ab   :  { %v7644_v45 = vpop.f32.mrf.mxu0 }
 0x4ad   :  { %v5233_v23 = vpop.f32.mrf.mxu0 }
 0x4af   :  { %v7647_v13 = vpop.f32.mrf.mxu0 }
 0x4b0   :  { %v5539_v4 = vadd.f32 %v7699_v15, %v7647_v13 }
 0x4b1   :  { %v5241_v14 = vpop.f32.mrf.mxu0 }
 0x4b2   :  { %v11115_v14 = vld [vmem:[#allocation35_spill] sm:$0xff] }
 0x4b3   :  { %v7650_v60 = vpop.f32.mrf.mxu0 }
 0x4b5   :  { %v5250_v17 = vpop.f32.mrf.mxu0 }
 0x4b7   :  { %v7653_v41 = vpop.f32.mrf.mxu0 }
 0x4b9   :  { %v5258_v43 = vpop.f32.mrf.mxu0 }
 0x4bb   :  { %v7656_v50 = vpop.f32.mrf.mxu0 }
 0x4bd   :  { %v5266_v3 = vpop.f32.mrf.mxu0 }
 0x4bf   :  { %v7659_v53 = vpop.f32.mrf.mxu0 }
 0x4c0   :  { %v5572_v34 = vadd.f32 %v7711_v54, %v7659_v53 }
 0x4c1   :  { %v5274_v0 = vpop.f32.mrf.mxu0 }
 0x4c3   :  { %v7662_v42 = vpop.f32.mrf.mxu0 }
 0x4c5   :  { %v5283_v11 = vpop.f32.mrf.mxu0 }
 0x4c7   :  { %v7665_v2 = vpop.f32.mrf.mxu0 }
 0x4c9   :  { %v5291_v27 = vpop.f32.mrf.mxu0 }
 0x4cb   :  { %v7668_v58 = vpop.f32.mrf.mxu0 }
 0x4cd   :  { %v5299_v19 = vpop.f32.mrf.mxu0 }
 0x4ce   :  { %v11116_v19 = vld [vmem:[#allocation38_spill] sm:$0xff] }
 0x4cf   :  { %v7671_v28 = vpop.f32.mrf.mxu0 }
 0x4d0   :  { %v5605_v42 = vadd.f32 %v10898_v40, %v7671_v28 }
 0x4d1   :  { %v5307_v37 = vpop.f32.mrf.mxu0 }
 0x4d3   :  { %v7730_v52 = vpop.f32.mrf.mxu0 }
 0x4d5   :  { %v5869_v46 = vpop.f32.mrf.mxu0 }
 0x4d7   :  { %v7733_v39 = vpop.f32.mrf.mxu0 }
 0x4d9   :  { %v5877_v44 = vpop.f32.mrf.mxu0 }
 0x4da   :  { %v6581_v44 = vld [vmem:[#allocation2] ss:$0 sm:$0xff] }
 0x4db   :  { %v7736_v33 = vpop.f32.mrf.mxu0 }
 0x4dd   :  { %v5885_v12 = vpop.f32.mrf.mxu0 }
 0x4df   :  { %v7739_v24 = vpop.f32.mrf.mxu0 }
 0x4e0   :  { %v6000_v38 = vadd.f32 %v7739_v24, %v5506_v61 }
 0x4e1   :  { %v5893_v7 = vpop.f32.mrf.mxu0 }
 0x4e2   :  { %v6011_v16 = vadd.f32 %v6580_v6, %v6000_v38 }
 0x4e3   :  { %v7742_v10 = vpop.f32.mrf.mxu0 }
 0x4e4   :  { %v6015_v8 = vmax.f32 %v6011_v16, 0.0 }
 0x4e5   :  { %v5902_v15 = vpop.f32.mrf.mxu0 }
 0x4e6   :  { %v6019_v32 = vadd.f32 %v6015_v8, %v11113_v30 }
 0x4e7   :  { %v7745_v59 = vpop.f32.mrf.mxu0 }
 0x4e8   :  { %v6023_v1 = vmax.f32 %v6019_v32, 0.0 }
 0x4e9   :  { %v5910_v57 = vpop.f32.mrf.mxu0 }
 0x4ea   :  { %v6040_v56 = vrot.slane %v6023_v1, 7 }
 0x4eb   :  { %v7748_v5 = vpop.f32.mrf.mxu0 }
 0x4ed   :  { %v5918_v25 = vpop.f32.mrf.mxu0 }
 0x4ef   :  { %v7751_v54 = vpop.f32.mrf.mxu0 }
 0x4f0   :  { %v6001_v49 = vadd.f32 %v7751_v54, %v5539_v4 }
 0x4f1   :  { %v5926_v35 = vpop.f32.mrf.mxu0 }
 0x4f2   :  { %v6012_v20 = vadd.f32 %v6580_v6, %v6001_v49 }
 0x4f3   :  { %v7754_v18 = vpop.f32.mrf.mxu0 }
 0x4f4   :  { %v6016_v29 = vmax.f32 %v6012_v20, 0.0 }
 0x4f5   :  { %v5935_v9 = vpop.f32.mrf.mxu0 }
 0x4f6   :  { %v6020_v47 = vadd.f32 %v6016_v29, %v11114_v36 }
 0x4f7   :  { %v7757_v63 = vpop.f32.mrf.mxu0 }
 0x4f8   :  { %v6024_v62 = vmax.f32 %v6020_v47, 0.0 }
 0x4f9   :  { %v5943_v26 = vpop.f32.mrf.mxu0 }
 0x4fa   :  { %v6041_v55 = vrot.slane %v6024_v62, 6 }
 0x4fb   :  { %v7760_v61 = vpop.f32.mrf.mxu0 }
 0x4fc   :  { %v6043_v21 = vsel %vm6042_vm2, %v6041_v55, %v6040_v56 }
 0x4fd   :  { %v5951_v31 = vpop.f32.mrf.mxu0 }
 0x4ff   :  { %v7763_v22 = vpop.f32.mrf.mxu0 }
 0x500   :  { %v6002_v51 = vadd.f32 %v7763_v22, %v5572_v34 }
 0x501   :  { %v5959_v48 = vpop.f32.mrf.mxu0 }
 0x502   :  { %v6013_v45 = vadd.f32 %v6580_v6, %v6002_v51 }
 0x503   :  { %v7766_v23 = vpop.f32.mrf.mxu0 }
 0x504   :  { %v6017_v13 = vmax.f32 %v6013_v45, 0.0 }
 0x505   :  { %v5968_v4 = vpop.f32.mrf.mxu0 }
 0x506   :  { %v6021_v60 = vadd.f32 %v6017_v13, %v11115_v14 }
 0x507   :  { %v7769_v17 = vpop.f32.mrf.mxu0 }
 0x508   :  { %v6025_v41 = vmax.f32 %v6021_v60, 0.0 }
 0x509   :  { %v5976_v43 = vpop.f32.mrf.mxu0 }
 0x50a   :  { %v6044_v50 = vrot.slane %v6025_v41, 5 }
 0x50b   :  { %v7772_v3 = vpop.f32.mrf.mxu0 }
 0x50c   :  { %v6046_v53 = vsel %vm6045_vm4, %v6044_v50, %v6043_v21 }
 0x50d   :  { %v5984_v0 = vpop.f32.mrf.mxu0 }
 0x50f   :  { %v7775_v11 = vpop.f32.mrf.mxu0 }
 0x510   :  { %v6003_v2 = vadd.f32 %v7775_v11, %v5605_v42 }
 0x511   :  { %v5992_v34 = vpop.f32.mrf.mxu0 }
 0x512   :  { %v6014_v27 = vadd.f32 %v6580_v6, %v6003_v2 }
 0x514   :  { %v6018_v58 = vmax.f32 %v6014_v27, 0.0 }
 0x516   :  { %v6022_v37 = vadd.f32 %v6018_v58, %v11116_v19 }
 0x518   :  { %v6026_v52 = vmax.f32 %v6022_v37, 0.0 }
 0x51a   :  { %v6047_v46 = vrot.slane %v6026_v52, 4 }
 0x51c   :  { %v6049_v39 = vsel %vm6048_vm5, %v6047_v46, %v6046_v53 }
 0x51d   :  { %7781 = vmatmul.mubr.msk.f32.vlgmr.msra.gmra.mxu1 %vm2085_vm12, %v6049_v39 }
 0x5dd   :  { %v6118_v33 = vpop.f32.mrf.mxu1 }
 0x5de   :  { %v6119_v12 = vadd.f32 %v6581_v44, %v6118_v33 }
 0x5df   :  { %v7782_v24 = vpop.f32.mrf.mxu1 }
 0x5e0   :  { %6123 = vst.msk [vmem:[%s10928_s13] sm:$0xf] %vm6122_vm6, %v6119_v12 }

</bundles_post_ra>
